<compile_context>
chip_gen: v6e
topology: v6e:2x2x1
jax: 0.10.0
libtpu: 0.0.40
codegen_flags: <defaults>
</compile_context>

<pallas_src>
import numpy as np
import jax
import jax.numpy as jnp
from jax import lax
from jax.experimental import pallas as pl
from jax.experimental.pallas import tpu as pltpu

# ---- module hyper-parameters (PareHead defaults that matter for forward) ----
NUM_JOINTS = 24
POSE_FEAT_DIM = 128                        # num_features_pare == pose_mlp_inp_dim
SMPL_FEAT_DIM = 64                         # num_features_smpl == smpl_final_dim
POSE_INP = NUM_JOINTS * POSE_FEAT_DIM      # 3072
SHAPE_MLP_INP = NUM_JOINTS * SMPL_FEAT_DIM  # 1536
NUM_CAM_PARAMS = 3
ROT6D_W = 6 * NUM_JOINTS                   # 144   (component-major columns)
ROTMAT_W = 9 * NUM_JOINTS                  # 216   (component-major columns)
SC_PAD = 128                               # fused shape(10)+cam(3) padded to 128 lanes


def _split_bf16(x_f32):
    """Error-compensated bf16 split: x ≈ hi + lo (hi, lo bf16; exact residual)."""
    hi = x_f32.astype(jnp.bfloat16)
    lo = (x_f32 - hi.astype(jnp.float32)).astype(jnp.bfloat16)
    return hi, lo


def _pare_head_kernel(pose_x_ref, pose_whi_ref, pose_wlo_ref, pose_b_ref,
                      sc_x_ref, sc_w_ref, sc_b_ref,
                      rot6d_ref, rotmat_ref, sc_out_ref):
    # ---------------- fused shape + cam linear (one lane-dense MXU call) ----
    sc = jnp.dot(sc_x_ref[...], sc_w_ref[...],
                 preferred_element_type=jnp.float32)          # (TB, 128)
    sc_out_ref[...] = sc + sc_b_ref[...]

    # ---------------- pose MLP as one block-diagonal matmul ------------------
    # pose6[b, o*24 + j] = sum_c point_local_feat[b, c, j] * pose_w[j, c, o] + b[j, o]
    # 3-pass error-compensated bf16 matmul (near-f32 precision, f32 accumulate):
    xh, xl = _split_bf16(pose_x_ref[...])
    w_hi = pose_whi_ref[...]
    w_lo = pose_wlo_ref[...]
    pose6 = (jnp.dot(xh, w_hi, preferred_element_type=jnp.float32)
             + jnp.dot(xl, w_hi, preferred_element_type=jnp.float32)
             + jnp.dot(xh, w_lo, preferred_element_type=jnp.float32))   # (TB, 144)
    pose6 = pose6 + pose_b_ref[...]
    rot6d_ref[...] = pose6

    # ---------------- rot6d -> rotmat (Gram-Schmidt, PARE convention) -------
    # component-major columns: o = 0..5 -> slices of width 24 (lane-dense).
    J = NUM_JOINTS
    a1x = pose6[:, 0 * J:1 * J]
    a2x = pose6[:, 1 * J:2 * J]
    a1y = pose6[:, 2 * J:3 * J]
    a2y = pose6[:, 3 * J:4 * J]
    a1z = pose6[:, 4 * J:5 * J]
    a2z = pose6[:, 5 * J:6 * J]

    eps2 = 1e-24  # (1e-12)^2 -> identical to clamping the norm at 1e-12
    inv_n1 = lax.rsqrt(jnp.maximum(a1x * a1x + a1y * a1y + a1z * a1z, eps2))
    b1x = a1x * inv_n1
    b1y = a1y * inv_n1
    b1z = a1z * inv_n1

    dot = b1x * a2x + b1y * a2y + b1z * a2z
    u2x = a2x - dot * b1x
    u2y = a2y - dot * b1y
    u2z = a2z - dot * b1z
    inv_n2 = lax.rsqrt(jnp.maximum(u2x * u2x + u2y * u2y + u2z * u2z, eps2))
    b2x = u2x * inv_n2
    b2y = u2y * inv_n2
    b2z = u2z * inv_n2

    b3x = b1y * b2z - b1z * b2y
    b3y = b1z * b2x - b1x * b2z
    b3z = b1x * b2y - b1y * b2x

    # single lane-dense store; column = m*24 + j with m = row*3 + col of the 3x3
    rotmat_ref[...] = jnp.concatenate(
        [b1x, b2x, b3x, b1y, b2y, b3y, b1z, b2z, b3z], axis=-1)  # (TB, 216)


def _pick_batch_tile(B):
    for cand in (256, 128, 64, 32, 16, 8):
        if B % cand == 0:
            return cand
    return B  # small / irregular batch: one full-array block


def pare_head_forward(point_local_feat, cam_shape_feats, kparams, output=None):
    """Equivalent of PareHead.forward(point_local_feat, cam_shape_feats, output)."""
    if output is None:
        output = {}
    B = point_local_feat.shape[0]
    J = NUM_JOINTS

    # pure reshapes (no transpose): column = c*24 + j for both inputs
    pose_x = point_local_feat.reshape(B, POSE_INP).astype(jnp.float32)
    sc_x = cam_shape_feats.reshape(B, SHAPE_MLP_INP).astype(jnp.bfloat16)

    TB = _pick_batch_tile(B)
    grid = (pl.cdiv(B, TB),)

    def batch_map(i):
        return (i, 0)

    def const_map(i):
        return (0, 0)

    in_specs = [
        pl.BlockSpec((TB, POSE_INP), batch_map),
        pl.BlockSpec((POSE_INP, ROT6D_W), const_map),
        pl.BlockSpec((POSE_INP, ROT6D_W), const_map),
        pl.BlockSpec((1, ROT6D_W), const_map),
        pl.BlockSpec((TB, SHAPE_MLP_INP), batch_map),
        pl.BlockSpec((SHAPE_MLP_INP, SC_PAD), const_map),
        pl.BlockSpec((1, SC_PAD), const_map),
    ]
    out_specs = (
        pl.BlockSpec((TB, ROT6D_W), batch_map),
        pl.BlockSpec((TB, ROTMAT_W), batch_map),
        pl.BlockSpec((TB, SC_PAD), batch_map),
    )
    out_shape = (
        jax.ShapeDtypeStruct((B, ROT6D_W), jnp.float32),   # rot6d, component-major
        jax.ShapeDtypeStruct((B, ROTMAT_W), jnp.float32),  # rotmat, component-major
        jax.ShapeDtypeStruct((B, SC_PAD), jnp.float32),    # [shape(10) | cam(3) | pad]
    )

    rot6d_cm, rotmat_cm, sc_out = pl.pallas_call(
        _pare_head_kernel,
        out_shape=out_shape,
        grid=grid,
        in_specs=in_specs,
        out_specs=out_specs,
        compiler_params=pltpu.CompilerParams(
            dimension_semantics=("parallel",)),
    )(pose_x, kparams['pose_w_hi'], kparams['pose_w_lo'], kparams['pose_b_flat'],
      sc_x, kparams['sc_w'], kparams['sc_b'])

    # cheap reshuffles on tiny per-row data
    pred_rot6d = jnp.transpose(rot6d_cm.reshape(B, 6, J), (0, 2, 1))            # (B,24,6)
    pred_rotmat = jnp.transpose(rotmat_cm.reshape(B, 3, 3, J), (0, 3, 1, 2))    # (B,24,3,3)
    pred_shape = sc_out[:, :10]
    pred_cam = sc_out[:, 10:10 + NUM_CAM_PARAMS]

    output.update({
        'pred_rotmat': pred_rotmat,
        'pred_cam': pred_cam,
        'pred_shape': pred_shape,
        'pred_rot6d': pred_rot6d,
        'pred_pose': pred_rotmat,
    })
    return output


def init_params(key):
    """Deterministic synthetic parameters (canonical PyTorch-shaped layouts)."""
    ks = jax.random.split(key, 6)
    s = 0.02
    params = {
        # LocallyConnected2d(128 -> 6, output_size=[24, 1], kernel_size=1):
        # torch weight (1, 6, 128, 24, 1, 1) -> stored joint-major (J, Cp, 6)
        'pose_w': s * jax.random.normal(ks[0], (NUM_JOINTS, POSE_FEAT_DIM, 6), jnp.float32),
        'pose_b': s * jax.random.normal(ks[1], (NUM_JOINTS, 1, 6), jnp.float32),
        # shape_mlp: Linear(24*64 -> 10)  (stored transposed for x @ W^T)
        'shape_w_t': s * jax.random.normal(ks[2], (SHAPE_MLP_INP, 10), jnp.float32),
        'shape_b': s * jax.random.normal(ks[3], (1, 10), jnp.float32),
        # cam_mlp: Linear(24*64 -> 3)
        'cam_w_t': s * jax.random.normal(ks[4], (SHAPE_MLP_INP, NUM_CAM_PARAMS), jnp.float32),
        'cam_b': s * jax.random.normal(ks[5], (1, NUM_CAM_PARAMS), jnp.float32),
        # SMPL mean-param buffers: present in the module but unused in forward()
        # (iterative_regression=False, inits=None).
        'init_pose': jnp.zeros((1, 144), jnp.float32),
        'init_shape': jnp.zeros((1, 10), jnp.float32),
        'init_cam': jnp.array([[0.9, 0.0, 0.0]], jnp.float32),
    }
    return params


def pack_kernel_params(params):
    """One-time repack of canonical weights into kernel (lane-dense) layouts."""
    J, Cp = NUM_JOINTS, POSE_FEAT_DIM
    pw = np.asarray(params['pose_w'], np.float32)             # (J, Cp, 6)
    pb = np.asarray(params['pose_b'], np.float32)[:, 0, :]    # (J, 6)

    # block-diagonal pose weight: row = c*J + j, col = o*J + j
    w_bd = np.zeros((Cp * J, 6 * J), np.float32)
    for j in range(J):
        w_bd[j::J, j::J] = pw[j]                               # (Cp, 6) block
    b_flat = pb.T.reshape(1, 6 * J)                            # col = o*J + j

    # hi/lo bf16 split of the pose weight (for 3-pass error-compensated matmul)
    w_bd_f32 = jnp.asarray(w_bd, jnp.float32)
    w_hi = w_bd_f32.astype(jnp.bfloat16)
    w_lo = (w_bd_f32 - w_hi.astype(jnp.float32)).astype(jnp.bfloat16)

    # fused (and zero-padded) shape + cam weight
    w_sc = np.zeros((SHAPE_MLP_INP, SC_PAD), np.float32)
    w_sc[:, :10] = np.asarray(params['shape_w_t'], np.float32)
    w_sc[:, 10:10 + NUM_CAM_PARAMS] = np.asarray(params['cam_w_t'], np.float32)
    b_sc = np.zeros((1, SC_PAD), np.float32)
    b_sc[0, :10] = np.asarray(params['shape_b'], np.float32)[0]
    b_sc[0, 10:10 + NUM_CAM_PARAMS] = np.asarray(params['cam_b'], np.float32)[0]

    return {
        'pose_w_hi': w_hi,
        'pose_w_lo': w_lo,
        'pose_b_flat': jnp.asarray(b_flat, jnp.float32),
        'sc_w': jnp.asarray(w_sc, jnp.bfloat16),
        'sc_b': jnp.asarray(b_sc, jnp.float32),
    }


def _reference(point_local_feat, cam_shape_feats, params):
    """Pure-numpy reference of the same forward pass (canonical f32 weights)."""
    plf = np.asarray(point_local_feat, np.float64)      # (B, Cp, J)
    csf = np.asarray(cam_shape_feats, np.float64)       # (B, Cs, J)
    pw = np.asarray(params['pose_w'], np.float64)       # (J, Cp, 6)
    pb = np.asarray(params['pose_b'], np.float64)[:, 0, :]  # (J, 6)
    B = plf.shape[0]

    pose6 = np.einsum('bcj,jco->bjo', plf, pw) + pb[None]          # (B, J, 6)
    sx = csf.reshape(B, -1)
    pred_shape = sx @ np.asarray(params['shape_w_t'], np.float64) + np.asarray(params['shape_b'], np.float64)
    pred_cam = sx @ np.asarray(params['cam_w_t'], np.float64) + np.asarray(params['cam_b'], np.float64)

    x = pose6.reshape(-1, 3, 2)
    a1, a2 = x[:, :, 0], x[:, :, 1]
    b1 = a1 / np.maximum(np.linalg.norm(a1, axis=-1, keepdims=True), 1e-12)
    u2 = a2 - np.sum(b1 * a2, axis=-1, keepdims=True) * b1
    b2 = u2 / np.maximum(np.linalg.norm(u2, axis=-1, keepdims=True), 1e-12)
    b3 = np.cross(b1, b2)
    rotmat = np.stack([b1, b2, b3], axis=-1).reshape(B, NUM_JOINTS, 3, 3)
    return pose6, rotmat, pred_shape, pred_cam


if __name__ == "__main__":
    key = jax.random.PRNGKey(0)
    kp, kx1, kx2 = jax.random.split(key, 3)
    params = init_params(kp)
    kparams = pack_kernel_params(params)

    B = 2
    point_local_feat = jax.random.normal(kx1, (B, POSE_FEAT_DIM, NUM_JOINTS), jnp.float32)
    cam_shape_feats = jax.random.normal(kx2, (B, SMPL_FEAT_DIM, NUM_JOINTS), jnp.float32)

    out = pare_head_forward(point_local_feat, cam_shape_feats, kparams, output={})
    jax.block_until_ready(out['pred_rotmat'])

    ref6, refR, refS, refC = _reference(point_local_feat, cam_shape_feats, params)
    np.testing.assert_allclose(np.asarray(out['pred_rot6d']), ref6, rtol=1e-2, atol=1e-2)
    np.testing.assert_allclose(np.asarray(out['pred_rotmat']), refR, rtol=1e-2, atol=1e-2)
    np.testing.assert_allclose(np.asarray(out['pred_shape']), refS, rtol=1e-2, atol=1e-2)
    np.testing.assert_allclose(np.asarray(out['pred_cam']), refC, rtol=1e-2, atol=1e-2)

    assert out['pred_rotmat'].shape == (B, 24, 3, 3)
    assert out['pred_rot6d'].shape == (B, 24, 6)
    assert out['pred_shape'].shape == (B, 10)
    assert out['pred_cam'].shape == (B, 3)
    print("KERNEL_OK")
</pallas_src>

<mosaic_0001>
module attributes {stable_mosaic.version = 11 : i64} {
  func.func @_pare_head_kernel(%arg0: i32, %arg1: memref<2x3072xf32, #tpu.memory_space<vmem>>, %arg2: memref<3072x144xbf16, #tpu.memory_space<vmem>>, %arg3: memref<3072x144xbf16, #tpu.memory_space<vmem>>, %arg4: memref<1x144xf32, #tpu.memory_space<vmem>>, %arg5: memref<2x1536xbf16, #tpu.memory_space<vmem>>, %arg6: memref<1536x128xbf16, #tpu.memory_space<vmem>>, %arg7: memref<1x128xf32, #tpu.memory_space<vmem>>, %arg8: memref<2x144xf32, #tpu.memory_space<vmem>>, %arg9: memref<2x216xf32, #tpu.memory_space<vmem>>, %arg10: memref<2x128xf32, #tpu.memory_space<vmem>>) attributes {dimension_semantics = [#tpu.dimension_semantics<parallel>], iteration_bounds = array<i64: 1>, scalar_prefetch = 0 : i64, scratch_operands = 0 : i64, tpu.core_type = #tpu.core_type<tc>, window_params = [{transform_indices = @transform_0, window_bounds = array<i64: 2, 3072>}, {pipeline_mode = #tpu.pipeline_mode<synchronous>, transform_indices = @transform_1, window_bounds = array<i64: 3072, 144>}, {pipeline_mode = #tpu.pipeline_mode<synchronous>, transform_indices = @transform_2, window_bounds = array<i64: 3072, 144>}, {pipeline_mode = #tpu.pipeline_mode<synchronous>, transform_indices = @transform_3, window_bounds = array<i64: 1, 144>}, {transform_indices = @transform_4, window_bounds = array<i64: 2, 1536>}, {pipeline_mode = #tpu.pipeline_mode<synchronous>, transform_indices = @transform_5, window_bounds = array<i64: 1536, 128>}, {pipeline_mode = #tpu.pipeline_mode<synchronous>, transform_indices = @transform_6, window_bounds = array<i64: 1, 128>}, {transform_indices = @transform_7, window_bounds = array<i64: 2, 144>}, {transform_indices = @transform_8, window_bounds = array<i64: 2, 216>}, {transform_indices = @transform_9, window_bounds = array<i64: 2, 128>}]} {
    %c0 = arith.constant 0 : index
    %c0_0 = arith.constant 0 : index
    %0 = vector.load %arg5[%c0, %c0_0] : memref<2x1536xbf16, #tpu.memory_space<vmem>>, vector<2x1536xbf16>
    %c0_1 = arith.constant 0 : index
    %c0_2 = arith.constant 0 : index
    %1 = vector.load %arg6[%c0_1, %c0_2] : memref<1536x128xbf16, #tpu.memory_space<vmem>>, vector<1536x128xbf16>
    %cst = arith.constant dense<0.000000e+00> : vector<2x128xf32>
    %2 = tpu.matmul %0, %1, %cst {dimension_numbers = #tpu.dot_dimension_numbers<[1], [0], [0], [1], [0, 0, 1, 1], [], []>} : vector<2x1536xbf16>, vector<1536x128xbf16>, vector<2x128xf32> -> vector<2x128xf32>
    %c0_3 = arith.constant 0 : index
    %c0_4 = arith.constant 0 : index
    %3 = vector.load %arg7[%c0_3, %c0_4] : memref<1x128xf32, #tpu.memory_space<vmem>>, vector<1x128xf32>
    %4 = vector.broadcast %3 : vector<1x128xf32> to vector<2x128xf32>
    %5 = arith.addf %2, %4 : vector<2x128xf32>
    %c0_5 = arith.constant 0 : index
    %c0_6 = arith.constant 0 : index
    %6 = vector.load %arg10[%c0_5, %c0_6] : memref<2x128xf32, #tpu.memory_space<vmem>>, vector<2x128xf32>
    tpu.vector_store %arg10[%c0_5, %c0_6], %5 {strides = array<i32>} : memref<2x128xf32, #tpu.memory_space<vmem>>, vector<2x128xf32>,
    %c0_7 = arith.constant 0 : index
    %c0_8 = arith.constant 0 : index
    %7 = vector.load %arg1[%c0_7, %c0_8] : memref<2x3072xf32, #tpu.memory_space<vmem>>, vector<2x3072xf32>
    %8 = arith.truncf %7 : vector<2x3072xf32> to vector<2x3072xbf16>
    %9 = arith.extf %8 : vector<2x3072xbf16> to vector<2x3072xf32>
    %10 = arith.subf %7, %9 : vector<2x3072xf32>
    %11 = arith.truncf %10 : vector<2x3072xf32> to vector<2x3072xbf16>
    %c0_9 = arith.constant 0 : index
    %c0_10 = arith.constant 0 : index
    %12 = vector.load %arg2[%c0_9, %c0_10] : memref<3072x144xbf16, #tpu.memory_space<vmem>>, vector<3072x144xbf16>
    %c0_11 = arith.constant 0 : index
    %c0_12 = arith.constant 0 : index
    %13 = vector.load %arg3[%c0_11, %c0_12] : memref<3072x144xbf16, #tpu.memory_space<vmem>>, vector<3072x144xbf16>
    %cst_13 = arith.constant dense<0.000000e+00> : vector<2x144xf32>
    %14 = tpu.matmul %8, %12, %cst_13 {dimension_numbers = #tpu.dot_dimension_numbers<[1], [0], [0], [1], [0, 0, 1, 1], [], []>} : vector<2x3072xbf16>, vector<3072x144xbf16>, vector<2x144xf32> -> vector<2x144xf32>
    %cst_14 = arith.constant dense<0.000000e+00> : vector<2x144xf32>
    %15 = tpu.matmul %11, %12, %cst_14 {dimension_numbers = #tpu.dot_dimension_numbers<[1], [0], [0], [1], [0, 0, 1, 1], [], []>} : vector<2x3072xbf16>, vector<3072x144xbf16>, vector<2x144xf32> -> vector<2x144xf32>
    %16 = arith.addf %14, %15 : vector<2x144xf32>
    %cst_15 = arith.constant dense<0.000000e+00> : vector<2x144xf32>
    %17 = tpu.matmul %8, %13, %cst_15 {dimension_numbers = #tpu.dot_dimension_numbers<[1], [0], [0], [1], [0, 0, 1, 1], [], []>} : vector<2x3072xbf16>, vector<3072x144xbf16>, vector<2x144xf32> -> vector<2x144xf32>
    %18 = arith.addf %16, %17 : vector<2x144xf32>
    %c0_16 = arith.constant 0 : index
    %c0_17 = arith.constant 0 : index
    %19 = vector.load %arg4[%c0_16, %c0_17] : memref<1x144xf32, #tpu.memory_space<vmem>>, vector<1x144xf32>
    %20 = vector.broadcast %19 : vector<1x144xf32> to vector<2x144xf32>
    %21 = arith.addf %18, %20 : vector<2x144xf32>
    %c0_18 = arith.constant 0 : index
    %c0_19 = arith.constant 0 : index
    %22 = vector.load %arg8[%c0_18, %c0_19] : memref<2x144xf32, #tpu.memory_space<vmem>>, vector<2x144xf32>
    tpu.vector_store %arg8[%c0_18, %c0_19], %21 {strides = array<i32>} : memref<2x144xf32, #tpu.memory_space<vmem>>, vector<2x144xf32>,
    %23 = vector.extract_strided_slice %21 {offsets = [0, 0], sizes = [2, 24], strides = [1, 1]} : vector<2x144xf32> to vector<2x24xf32>
    %24 = vector.extract_strided_slice %21 {offsets = [0, 24], sizes = [2, 24], strides = [1, 1]} : vector<2x144xf32> to vector<2x24xf32>
    %25 = vector.extract_strided_slice %21 {offsets = [0, 48], sizes = [2, 24], strides = [1, 1]} : vector<2x144xf32> to vector<2x24xf32>
    %26 = vector.extract_strided_slice %21 {offsets = [0, 72], sizes = [2, 24], strides = [1, 1]} : vector<2x144xf32> to vector<2x24xf32>
    %27 = vector.extract_strided_slice %21 {offsets = [0, 96], sizes = [2, 24], strides = [1, 1]} : vector<2x144xf32> to vector<2x24xf32>
    %28 = vector.extract_strided_slice %21 {offsets = [0, 120], sizes = [2, 24], strides = [1, 1]} : vector<2x144xf32> to vector<2x24xf32>
    %29 = arith.mulf %23, %23 : vector<2x24xf32>
    %30 = arith.mulf %25, %25 : vector<2x24xf32>
    %31 = arith.addf %29, %30 : vector<2x24xf32>
    %32 = arith.mulf %27, %27 : vector<2x24xf32>
    %33 = arith.addf %31, %32 : vector<2x24xf32>
    %cst_20 = arith.constant 1.000000e-24 : f32
    %34 = vector.broadcast %cst_20 : f32 to vector<2x24xf32>
    %35 = arith.maximumf %33, %34 : vector<2x24xf32>
    %36 = math.rsqrt %35 : vector<2x24xf32>
    %37 = arith.mulf %23, %36 : vector<2x24xf32>
    %38 = arith.mulf %25, %36 : vector<2x24xf32>
    %39 = arith.mulf %27, %36 : vector<2x24xf32>
    %40 = arith.mulf %37, %24 : vector<2x24xf32>
    %41 = arith.mulf %38, %26 : vector<2x24xf32>
    %42 = arith.addf %40, %41 : vector<2x24xf32>
    %43 = arith.mulf %39, %28 : vector<2x24xf32>
    %44 = arith.addf %42, %43 : vector<2x24xf32>
    %45 = arith.mulf %44, %37 : vector<2x24xf32>
    %46 = arith.subf %24, %45 : vector<2x24xf32>
    %47 = arith.mulf %44, %38 : vector<2x24xf32>
    %48 = arith.subf %26, %47 : vector<2x24xf32>
    %49 = arith.mulf %44, %39 : vector<2x24xf32>
    %50 = arith.subf %28, %49 : vector<2x24xf32>
    %51 = arith.mulf %46, %46 : vector<2x24xf32>
    %52 = arith.mulf %48, %48 : vector<2x24xf32>
    %53 = arith.addf %51, %52 : vector<2x24xf32>
    %54 = arith.mulf %50, %50 : vector<2x24xf32>
    %55 = arith.addf %53, %54 : vector<2x24xf32>
    %cst_21 = arith.constant 1.000000e-24 : f32
    %56 = vector.broadcast %cst_21 : f32 to vector<2x24xf32>
    %57 = arith.maximumf %55, %56 : vector<2x24xf32>
    %58 = math.rsqrt %57 : vector<2x24xf32>
    %59 = arith.mulf %46, %58 : vector<2x24xf32>
    %60 = arith.mulf %48, %58 : vector<2x24xf32>
    %61 = arith.mulf %50, %58 : vector<2x24xf32>
    %62 = arith.mulf %38, %61 : vector<2x24xf32>
    %63 = arith.mulf %39, %60 : vector<2x24xf32>
    %64 = arith.subf %62, %63 : vector<2x24xf32>
    %65 = arith.mulf %39, %59 : vector<2x24xf32>
    %66 = arith.mulf %37, %61 : vector<2x24xf32>
    %67 = arith.subf %65, %66 : vector<2x24xf32>
    %68 = arith.mulf %37, %60 : vector<2x24xf32>
    %69 = arith.mulf %38, %59 : vector<2x24xf32>
    %70 = arith.subf %68, %69 : vector<2x24xf32>
    %71 = tpu.concatenate %37, %59, %64, %38, %60, %67, %39, %61, %70 in 1 : vector<2x24xf32>, vector<2x24xf32>, vector<2x24xf32>, vector<2x24xf32>, vector<2x24xf32>, vector<2x24xf32>, vector<2x24xf32>, vector<2x24xf32>, vector<2x24xf32> -> vector<2x216xf32>
    %c0_22 = arith.constant 0 : index
    %c0_23 = arith.constant 0 : index
    %72 = vector.load %arg9[%c0_22, %c0_23] : memref<2x216xf32, #tpu.memory_space<vmem>>, vector<2x216xf32>
    tpu.vector_store %arg9[%c0_22, %c0_23], %71 {strides = array<i32>} : memref<2x216xf32, #tpu.memory_space<vmem>>, vector<2x216xf32>,
    return
  }
  func.func @transform_0(%arg0: i32) -> (i32, i32) {
    %c0_i32 = arith.constant 0 : i32
    %c0_i32_0 = arith.constant 0 : i32
    return %arg0, %c0_i32 : i32, i32
  }
  func.func @transform_1(%arg0: i32) -> (i32, i32) {
    %c0_i32 = arith.constant 0 : i32
    %c0_i32_0 = arith.constant 0 : i32
    %c0_i32_1 = arith.constant 0 : i32
    return %c0_i32, %c0_i32_0 : i32, i32
  }
  func.func @transform_2(%arg0: i32) -> (i32, i32) {
    %c0_i32 = arith.constant 0 : i32
    %c0_i32_0 = arith.constant 0 : i32
    %c0_i32_1 = arith.constant 0 : i32
    return %c0_i32, %c0_i32_0 : i32, i32
  }
  func.func @transform_3(%arg0: i32) -> (i32, i32) {
    %c0_i32 = arith.constant 0 : i32
    %c0_i32_0 = arith.constant 0 : i32
    %c0_i32_1 = arith.constant 0 : i32
    return %c0_i32, %c0_i32_0 : i32, i32
  }
  func.func @transform_4(%arg0: i32) -> (i32, i32) {
    %c0_i32 = arith.constant 0 : i32
    %c0_i32_0 = arith.constant 0 : i32
    return %arg0, %c0_i32 : i32, i32
  }
  func.func @transform_5(%arg0: i32) -> (i32, i32) {
    %c0_i32 = arith.constant 0 : i32
    %c0_i32_0 = arith.constant 0 : i32
    %c0_i32_1 = arith.constant 0 : i32
    return %c0_i32, %c0_i32_0 : i32, i32
  }
  func.func @transform_6(%arg0: i32) -> (i32, i32) {
    %c0_i32 = arith.constant 0 : i32
    %c0_i32_0 = arith.constant 0 : i32
    %c0_i32_1 = arith.constant 0 : i32
    return %c0_i32, %c0_i32_0 : i32, i32
  }
  func.func @transform_7(%arg0: i32) -> (i32, i32) {
    %c0_i32 = arith.constant 0 : i32
    %c0_i32_0 = arith.constant 0 : i32
    return %arg0, %c0_i32 : i32, i32
  }
  func.func @transform_8(%arg0: i32) -> (i32, i32) {
    %c0_i32 = arith.constant 0 : i32
    %c0_i32_0 = arith.constant 0 : i32
    return %arg0, %c0_i32 : i32, i32
  }
  func.func @transform_9(%arg0: i32) -> (i32, i32) {
    %c0_i32 = arith.constant 0 : i32
    %c0_i32_0 = arith.constant 0 : i32
    return %arg0, %c0_i32 : i32, i32
  }
}

</mosaic_0001>

<bundles_post_ra>
// kernel: tpu_custom_call.1
= control target key start
LH: loop header
LB: loop body
LE: loop exit
PB: predicated region body
PF: predicated region fallthrough
CT: control target
= control target key end

     0   :  { %15 = vsyncpa [#allocation3], 0  ;;  %v239_v29 = vlaneseq  ;;  %v10689_v36 = vmov 1966171168   ;;  %s14968_s0 = inlined_call_operand.vmem [shape: f32[2,3072], index: 0, kind: input, shape index: {}]   ;;  %s14969_s1 = inlined_call_operand.vmem [shape: bf16[3072,144], index: 1, kind: input, shape index: {}]   ;;  %s14970_s2 = inlined_call_operand.vmem [shape: bf16[3072,144], index: 2, kind: input, shape index: {}]   ;;  %s14971_s3 = inlined_call_operand.vmem [shape: f32[1,144], index: 3, kind: input, shape index: {}]   ;;  %s14972_s4 = inlined_call_operand.vmem [shape: bf16[2,1536], index: 4, kind: input, shape index: {}]   ;;  %s14973_s5 = inlined_call_operand.vmem [shape: bf16[1536,128], index: 5, kind: input, shape index: {}]   ;;  %s14974_s6 = inlined_call_operand.vmem [shape: f32[1,128], index: 6, kind: input, shape index: {}]   ;;  %s14975_s7 = inlined_call_operand.hbm [shape: f32[2,144], index: 7, kind: output, shape index: {0}]   ;;  %s14976_s8 = inlined_call_operand.hbm [shape: f32[2,216], index: 8, kind: output, shape index: {1}]   ;;  %s14977_s9 = inlined_call_operand.hbm [shape: f32[2,128], index: 9, kind: output, shape index: {2}]  }
   0x1   :  { %v8990_v0 = vld [vmem:[%s14973_s5 + $0x78] sm:$0xff]   ;;  %v8994_v4 = vld [vmem:[%s14973_s5 + $0x70] sm:$0xff]   ;;  %v8998_v8 = vld [vmem:[%s14973_s5 + $0x68] sm:$0xff]   ;;  %v237_v37 = vunpack.c.l.s4 %v10689_v36 }
   0x2   :  { %v8991_v1 = vld [vmem:[%s14973_s5 + $0xf8] sm:$0xff]   ;;  %8842 = vmatprep.subr.bf16.mxu0 %v8990_v0  ;;  %v8995_v5 = vld [vmem:[%s14973_s5 + $0xf0] sm:$0xff]   ;;  %v8999_v9 = vld [vmem:[%s14973_s5 + $0xe8] sm:$0xff]   ;;  %v10854_v34 = vshrl.u32 %v239_v29, 7 }
   0x3   :  { %v8992_v2 = vld [vmem:[%s14973_s5 + $0x38] sm:$0xff]   ;;  %8864 = vmatprep.subr.bf16.mxu1 %v8991_v1  ;;  %v8996_v6 = vld [vmem:[%s14973_s5 + $0x30] sm:$0xff]   ;;  %v9000_v10 = vld [vmem:[%s14973_s5 + $0x28] sm:$0xff]   ;;  %v238_v40 = vunpack.c.0.s8 %v237_v37 }
   0x4   :  { %v8993_v3 = vld [vmem:[%s14973_s5 + $0xb8] sm:$0xff]   ;;  %8843 = vmatpush3.bf16.msra.mxu0 %v8992_v2  ;;  %v8997_v7 = vld [vmem:[%s14973_s5 + $0xb0] sm:$0xff]   ;;  %v9001_v11 = vld [vmem:[%s14973_s5 + $0xa8] sm:$0xff]  }
   0x5   :  { %8865 = vmatpush3.bf16.msra.mxu1 %v8993_v3  ;;  %8844 = vmatprep.subr.bf16.mxu0 %v8994_v4  ;;  %v9002_v12 = vld [vmem:[%s14973_s5 + $0x60] sm:$0xff]   ;;  %v9006_v16 = vld [vmem:[%s14973_s5 + $0x58] sm:$0xff]   ;;  %v9010_v20 = vld [vmem:[%s14973_s5 + $0x50] sm:$0xff]   ;;  %v10863_v41 = vsub.s32 %v238_v40, %v10854_v34 }
   0x6   :  { %8866 = vmatprep.subr.bf16.mxu1 %v8995_v5  ;;  %v9003_v13 = vld [vmem:[%s14973_s5 + $0xe0] sm:$0xff]   ;;  %v9007_v17 = vld [vmem:[%s14973_s5 + $0xd8] sm:$0xff]   ;;  %v9011_v21 = vld [vmem:[%s14973_s5 + $0xd0] sm:$0xff]  }
   0x7   :  { %v9004_v14 = vld [vmem:[%s14973_s5 + $0x20] sm:$0xff]   ;;  %v9008_v18 = vld [vmem:[%s14973_s5 + $0x18] sm:$0xff]   ;;  %v9012_v22 = vld [vmem:[%s14973_s5 + $0x10] sm:$0xff]  }
   0x8   :  { %8845 = vmatpush3.bf16.msra.mxu0 %v8996_v6  ;;  %v9005_v15 = vld [vmem:[%s14973_s5 + $0xa0] sm:$0xff]   ;;  %v9009_v19 = vld [vmem:[%s14973_s5 + $0x98] sm:$0xff]   ;;  %v9013_v23 = vld [vmem:[%s14973_s5 + $0x90] sm:$0xff]  }
   0x9   :  { %8867 = vmatpush3.bf16.msra.mxu1 %v8997_v7  ;;  %8846 = vmatprep.subr.bf16.mxu0 %v8998_v8  ;;  %v9014_v24 = vld [vmem:[%s14973_s5 + $0x48] sm:$0xff]   ;;  %v9018_v28 = vld [vmem:[%s14973_s5 + $0x40] sm:$0xff]   ;;  %v9023_v35 = vld [vmem:[%s14973_s5 + $0x178] sm:$0xff]  }
   0xa   :  { %8868 = vmatprep.subr.bf16.mxu1 %v8999_v9  ;;  %v9015_v25 = vld [vmem:[%s14973_s5 + $0xc8] sm:$0xff]   ;;  %v9019_v30 = vld [vmem:[%s14973_s5 + $0xc0] sm:$0xff]   ;;  %v9024_v38 = vld [vmem:[%s14973_s5 + $0x1f8] sm:$0xff]  }
   0xb   :  { %v9016_v26 = vld [vmem:[%s14973_s5 + $0x8] sm:$0xff]   ;;  %v9020_v31 = vld [vmem:[%s14973_s5] sm:$0xff]   ;;  %v9025_v47 = vld [vmem:[%s14973_s5 + $0x138] sm:$0xff]  }
   0xc   :  { %8847 = vmatpush3.bf16.msra.mxu0 %v9000_v10  ;;  %v9017_v27 = vld [vmem:[%s14973_s5 + $0x88] sm:$0xff]   ;;  %v9021_v32 = vld [vmem:[%s14973_s5 + $0x80] sm:$0xff]   ;;  %v9026_v49 = vld [vmem:[%s14973_s5 + $0x1b8] sm:$0xff]  }
   0xd   :  { %8869 = vmatpush3.bf16.msra.mxu1 %v9001_v11  ;;  %8848 = vmatprep.subr.bf16.mxu0 %v9002_v12  ;;  %v32_v33 = vld [vmem:[%s14972_s4] sm:$0xff]  ;;  %v9027_v52 = vld [vmem:[%s14973_s5 + $0x170] sm:$0xff]   ;;  %v9031_v58 = vld [vmem:[%s14973_s5 + $0x168] sm:$0xff]  }
   0xe   :  { %8870 = vmatprep.subr.bf16.mxu1 %v9003_v13  ;;  %v235_v39 = vcombine.high %v32_v33, %v32_v33  ;;  %v242_v42 = vrot.slane %v32_v33, %v10863_v41  ;;  %v9028_v54 = vld [vmem:[%s14973_s5 + $0x1f0] sm:$0xff]   ;;  %v9032_v59 = vld [vmem:[%s14973_s5 + $0x1e8] sm:$0xff]   ;;  %v9035_v62 = vld [vmem:[%s14973_s5 + $0x160] sm:$0xff]  }
   0xf   :  { %v9029_v55 = vld [vmem:[%s14973_s5 + $0x130] sm:$0xff]   ;;  %v9033_v60 = vld [vmem:[%s14973_s5 + $0x128] sm:$0xff]   ;;  %v9036_v63 = vld [vmem:[%s14973_s5 + $0x1e0] sm:$0xff]  }
  0x10   :  { %8849 = vmatpush3.bf16.msra.mxu0 %v9004_v14  ;;  %v10867_v43 = vrot.slane %v235_v39, %v10863_v41  ;;  %v250_v44 = vcombine.high %v242_v42, %v242_v42  ;;  %v258_v45 = vrot.slane %v242_v42, %v10863_v41  ;;  %v9030_v57 = vld [vmem:[%s14973_s5 + $0x1b0] sm:$0xff]   ;;  %v9034_v61 = vld [vmem:[%s14973_s5 + $0x1a8] sm:$0xff]   ;;  %v9037_v0 = vld [vmem:[%s14973_s5 + $0x120] sm:$0xff]  }
  0x11   :  { %8871 = vmatpush3.bf16.msra.mxu1 %v9005_v15  ;;  %8850 = vmatprep.subr.bf16.mxu0 %v9006_v16  ;;  %v9038_v1 = vld [vmem:[%s14973_s5 + $0x1a0] sm:$0xff]   ;;  %v9039_v2 = vld [vmem:[%s14973_s5 + $0x158] sm:$0xff]   ;;  %v9043_v6 = vld [vmem:[%s14973_s5 + $0x150] sm:$0xff]  }
  0x12   :  { %8872 = vmatprep.subr.bf16.mxu1 %v9007_v17  ;;  %v251_v46 = vcombine.high %v10867_v43, %v10867_v43  ;;  %v272_v48 = vrot.slane %v250_v44, %v10863_v41  ;;  %v280_v51 = vcombine.high %v258_v45, %v258_v45  ;;  %v9040_v3 = vld [vmem:[%s14973_s5 + $0x1d8] sm:$0xff]   ;;  %v9044_v7 = vld [vmem:[%s14973_s5 + $0x1d0] sm:$0xff]   ;;  %v9047_v10 = vld [vmem:[%s14973_s5 + $0x148] sm:$0xff]  }
  0x13   :  { %v9041_v4 = vld [vmem:[%s14973_s5 + $0x118] sm:$0xff]   ;;  %v9045_v8 = vld [vmem:[%s14973_s5 + $0x110] sm:$0xff]   ;;  %v9048_v11 = vld [vmem:[%s14973_s5 + $0x1c8] sm:$0xff]  }
  0x14   :  { %8851 = vmatpush3.bf16.msra.mxu0 %v9008_v18  ;;  %v279_v50 = vrot.slane %v251_v46, %v10863_v41  ;;  %928 = vmatprep.mubr.bf16.mxu0 %v272_v48  ;;  %v282_v53 = vcombine.high %v272_v48, %v272_v48  ;;  %v9042_v5 = vld [vmem:[%s14973_s5 + $0x198] sm:$0xff]   ;;  %v9046_v9 = vld [vmem:[%s14973_s5 + $0x190] sm:$0xff]   ;;  %v9049_v12 = vld [vmem:[%s14973_s5 + $0x108] sm:$0xff]   ;;  %v265_v18 = vrot.slane %v10867_v43, %v10863_v41 }
  0x15   :  { %8873 = vmatpush3.bf16.msra.mxu1 %v9009_v19  ;;  %8852 = vmatprep.subr.bf16.mxu0 %v9010_v20  ;;  %v9050_v13 = vld [vmem:[%s14973_s5 + $0x188] sm:$0xff]   ;;  %v9051_v14 = vld [vmem:[%s14973_s5 + $0x140] sm:$0xff]   ;;  %v9055_v19 = vld [vmem:[%s14973_s5 + $0x278] sm:$0xff]  }
  0x16   :  { %8874 = vmatprep.subr.bf16.mxu1 %v9011_v21  ;;  %v283_v56 = vcombine.high %v279_v50, %v279_v50  ;;  %968 = vmatprep.mubr.bf16.mxu1 %v282_v53  ;;  %v9052_v15 = vld [vmem:[%s14973_s5 + $0x1c0] sm:$0xff]   ;;  %v9056_v20 = vld [vmem:[%s14973_s5 + $0x2f8] sm:$0xff]   ;;  %v9064_v29 = vld [vmem:[%s14973_s5 + $0x2e8] sm:$0xff]  }
  0x17   :  { %v9053_v16 = vld [vmem:[%s14973_s5 + $0x100] sm:$0xff]   ;;  %v9057_v21 = vld [vmem:[%s14973_s5 + $0x238] sm:$0xff]   ;;  %v9075_v42 = vld [vmem:[%s14973_s5 + $0x250] sm:$0xff]  }
  0x18   :  { %8853 = vmatpush3.bf16.msra.mxu0 %v9012_v22  ;;  %v9054_v17 = vld [vmem:[%s14973_s5 + $0x180] sm:$0xff]   ;;  %v9058_v22 = vld [vmem:[%s14973_s5 + $0x2b8] sm:$0xff]   ;;  %v9076_v43 = vld [vmem:[%s14973_s5 + $0x2d0] sm:$0xff]  }
  0x19   :  { %8875 = vmatpush3.bf16.msra.mxu1 %v9013_v23  ;;  %8854 = vmatprep.subr.bf16.mxu0 %v9014_v24  ;;  %v281_v23 = vcombine.high %v265_v18, %v265_v18  ;;  %v9059_v24 = vld [vmem:[%s14973_s5 + $0x270] sm:$0xff]   ;;  %v9068_v33 = vld [vmem:[%s14973_s5 + $0x2e0] sm:$0xff]   ;;  %v9071_v37 = vld [vmem:[%s14973_s5 + $0x258] sm:$0xff]  }
  0x1a   :  { %8876 = vmatprep.subr.bf16.mxu1 %v9015_v25  ;;  %v9060_v25 = vld [vmem:[%s14973_s5 + $0x2f0] sm:$0xff]   ;;  %v9070_v36 = vld [vmem:[%s14973_s5 + $0x2a0] sm:$0xff]   ;;  %v9073_v39 = vld [vmem:[%s14973_s5 + $0x218] sm:$0xff]  }
  0x1b   :  { %v9074_v40 = vld [vmem:[%s14973_s5 + $0x298] sm:$0xff]   ;;  %v9077_v44 = vld [vmem:[%s14973_s5 + $0x210] sm:$0xff]   ;;  %v9079_v46 = vld [vmem:[%s14973_s5 + $0x248] sm:$0xff]  }
  0x1c   :  { %8855 = vmatpush3.bf16.msra.mxu0 %v9016_v26  ;;  %v9061_v26 = vld [vmem:[%s14973_s5 + $0x230] sm:$0xff]   ;;  %v9080_v48 = vld [vmem:[%s14973_s5 + $0x2c8] sm:$0xff]  }
  0x1d   :  { %8877 = vmatpush3.bf16.msra.mxu1 %v9017_v27  ;;  %8856 = vmatprep.subr.bf16.mxu0 %v9018_v28  ;;  %v9062_v27 = vld [vmem:[%s14973_s5 + $0x2b0] sm:$0xff]   ;;  %v9063_v28 = vld [vmem:[%s14973_s5 + $0x268] sm:$0xff]  }
  0x1e   :  { %8878 = vmatprep.subr.bf16.mxu1 %v9019_v30  ;;  %v9065_v30 = vld [vmem:[%s14973_s5 + $0x228] sm:$0xff]  }
  0x1f   :  { %v9082_v53 = vld [vmem:[%s14973_s5 + $0x288] sm:$0xff]  }
  0x20   :  { %8857 = vmatpush3.bf16.msra.mxu0 %v9020_v31  ;;  %v9066_v31 = vld [vmem:[%s14973_s5 + $0x2a8] sm:$0xff]  }
  0x21   :  { %8879 = vmatpush3.bf16.msra.mxu1 %v9021_v32  ;;  %8886 = vmatprep.subr.bf16.mxu0 %v9023_v35  ;;  %v9067_v32 = vld [vmem:[%s14973_s5 + $0x260] sm:$0xff]  }
  0x22   :  { %8908 = vmatprep.subr.bf16.mxu1 %v9024_v38  ;;  %v9069_v35 = vld [vmem:[%s14973_s5 + $0x220] sm:$0xff]   ;;  %v9072_v38 = vld [vmem:[%s14973_s5 + $0x2d8] sm:$0xff]  }
  0x23   :  { %929 = vmatmul.mubr.bf16.vlgmr.msra.gmra.mxu0 %v258_v45  ;;  %v9078_v45 = vld [vmem:[%s14973_s5 + $0x290] sm:$0xff]  }
  0x24   :  { %8887 = vmatpush3.bf16.msra.mxu0 %v9025_v47  ;;  %969 = vmatmul.mubr.bf16.vlgmr.msra.gmra.mxu1 %v280_v51  ;;  %v7977_v47 = vld.sshfl [vmem:[%s14972_s4 + $0x8] sm:$0x33 pattern:$0x75316420]  ;;  %v9083_v51 = vld [vmem:[%s14973_s5 + $0x240] sm:$0xff]  }
  0x25   :  { %8888 = vmatprep.subr.bf16.mxu0 %v9027_v52  ;;  %8909 = vmatpush3.bf16.msra.mxu1 %v9026_v49  ;;  %v291_v49 = vcombine.high %v7977_v47, %v7977_v47 }
  0x26   :  { %1008 = vmatprep.mubr.bf16.mxu0 %v279_v50  ;;  %8910 = vmatprep.subr.bf16.mxu1 %v9028_v54  ;;  %v9081_v50 = vld [vmem:[%s14973_s5 + $0x208] sm:$0xff]   ;;  %v9084_v54 = vld [vmem:[%s14973_s5 + $0x2c0] sm:$0xff]  }
  0x27   :  { %1048 = vmatprep.mubr.bf16.mxu1 %v283_v56  ;;  %v305_v52 = vrot.slane %v291_v49, %v10863_v41  ;;  %v9085_v56 = vld [vmem:[%s14973_s5 + $0x200] sm:$0xff]  }
  0x28   :  { %8889 = vmatpush3.bf16.msra.mxu0 %v9029_v55 }
  0x29   :  { %8890 = vmatprep.subr.bf16.mxu0 %v9031_v58  ;;  %8911 = vmatpush3.bf16.msra.mxu1 %v9030_v57  ;;  %v307_v55 = vcombine.high %v305_v52, %v305_v52  ;;  %v298_v57 = vrot.slane %v7977_v47, %v10863_v41  ;;  %v9089_v58 = vld [vmem:[%s14969_s1 + $0x74] ss:$8 sps:$4 sm:$0xff]  }
  0x2a   :  { %8912 = vmatprep.subr.bf16.mxu1 %v9032_v59  ;;  %v9086_v59 = vld [vmem:[%s14973_s5 + $0x280] sm:$0xff]  }
  0x2b   :  { %v306_v41 = vcombine.high %v298_v57, %v298_v57 }
  0x2c   :  { %8891 = vmatpush3.bf16.msra.mxu0 %v9033_v60  ;;  %v9092_v60 = vld [vmem:[%s14969_s1 + $0x174] ss:$8 sps:$4 sm:$0xff]  }
  0x2d   :  { %8892 = vmatprep.subr.bf16.mxu0 %v9035_v62  ;;  %8913 = vmatpush3.bf16.msra.mxu1 %v9034_v61  ;;  %v9087_v61 = vld [vmem:[%s14969_s1 + $0x70] ss:$8 sps:$4 sm:$0xff]   ;;  %v9095_v62 = vld [vmem:[%s14969_s1 + $0x64] ss:$8 sps:$4 sm:$0xff]  }
  0x2e   :  { %8914 = vmatprep.subr.bf16.mxu1 %v9036_v63  ;;  %v9090_v63 = vld [vmem:[%s14969_s1 + $0x170] ss:$8 sps:$4 sm:$0xff]  }
  0x30   :  { %8893 = vmatpush3.bf16.msra.mxu0 %v9037_v0  ;;  %v9098_v0 = vld [vmem:[%s14969_s1 + $0x164] ss:$8 sps:$4 sm:$0xff]  }
  0x31   :  { %8894 = vmatprep.subr.bf16.mxu0 %v9039_v2  ;;  %8915 = vmatpush3.bf16.msra.mxu1 %v9038_v1  ;;  %v9093_v1 = vld [vmem:[%s14969_s1 + $0x60] ss:$8 sps:$4 sm:$0xff]   ;;  %v9101_v2 = vld [vmem:[%s14969_s1 + $0x54] ss:$8 sps:$4 sm:$0xff]  }
  0x32   :  { %8916 = vmatprep.subr.bf16.mxu1 %v9040_v3  ;;  %v9096_v3 = vld [vmem:[%s14969_s1 + $0x160] ss:$8 sps:$4 sm:$0xff]  }
  0x34   :  { %8895 = vmatpush3.bf16.msra.mxu0 %v9041_v4  ;;  %v9104_v4 = vld [vmem:[%s14969_s1 + $0x154] ss:$8 sps:$4 sm:$0xff]  }
  0x35   :  { %8896 = vmatprep.subr.bf16.mxu0 %v9043_v6  ;;  %8917 = vmatpush3.bf16.msra.mxu1 %v9042_v5  ;;  %v9099_v5 = vld [vmem:[%s14969_s1 + $0x50] ss:$8 sps:$4 sm:$0xff]   ;;  %v9107_v6 = vld [vmem:[%s14969_s1 + $0x44] ss:$8 sps:$4 sm:$0xff]  }
  0x36   :  { %8918 = vmatprep.subr.bf16.mxu1 %v9044_v7  ;;  %v9102_v7 = vld [vmem:[%s14969_s1 + $0x150] ss:$8 sps:$4 sm:$0xff]  }
  0x38   :  { %8897 = vmatpush3.bf16.msra.mxu0 %v9045_v8  ;;  %v9110_v8 = vld [vmem:[%s14969_s1 + $0x144] ss:$8 sps:$4 sm:$0xff]  }
  0x39   :  { %8898 = vmatprep.subr.bf16.mxu0 %v9047_v10  ;;  %8919 = vmatpush3.bf16.msra.mxu1 %v9046_v9  ;;  %v9105_v9 = vld [vmem:[%s14969_s1 + $0x40] ss:$8 sps:$4 sm:$0xff]   ;;  %v9113_v10 = vld [vmem:[%s14969_s1 + $0x34] ss:$8 sps:$4 sm:$0xff]  }
  0x3a   :  { %8920 = vmatprep.subr.bf16.mxu1 %v9048_v11  ;;  %v9108_v11 = vld [vmem:[%s14969_s1 + $0x140] ss:$8 sps:$4 sm:$0xff]  }
  0x3c   :  { %8899 = vmatpush3.bf16.msra.mxu0 %v9049_v12  ;;  %v9116_v12 = vld [vmem:[%s14969_s1 + $0x134] ss:$8 sps:$4 sm:$0xff]  }
  0x3d   :  { %8900 = vmatprep.subr.bf16.mxu0 %v9051_v14  ;;  %8921 = vmatpush3.bf16.msra.mxu1 %v9050_v13  ;;  %v9111_v13 = vld [vmem:[%s14969_s1 + $0x30] ss:$8 sps:$4 sm:$0xff]   ;;  %v9119_v14 = vld [vmem:[%s14969_s1 + $0x24] ss:$8 sps:$4 sm:$0xff]  }
  0x3e   :  { %8922 = vmatprep.subr.bf16.mxu1 %v9052_v15  ;;  %v9114_v15 = vld [vmem:[%s14969_s1 + $0x130] ss:$8 sps:$4 sm:$0xff]  }
  0x40   :  { %8901 = vmatpush3.bf16.msra.mxu0 %v9053_v16  ;;  %v9122_v16 = vld [vmem:[%s14969_s1 + $0x124] ss:$8 sps:$4 sm:$0xff]  }
  0x41   :  { %8930 = vmatprep.subr.bf16.mxu0 %v9055_v19  ;;  %8923 = vmatpush3.bf16.msra.mxu1 %v9054_v17  ;;  %v9117_v17 = vld [vmem:[%s14969_s1 + $0x20] ss:$8 sps:$4 sm:$0xff]  }
  0x42   :  { %8952 = vmatprep.subr.bf16.mxu1 %v9056_v20  ;;  %v9125_v20 = vld [vmem:[%s14969_s1 + $0x14] ss:$8 sps:$4 sm:$0xff]  }
  0x43   :  { %1009 = vmatmul.mubr.bf16.vlgmr.msra.gmra.mxu0 %v265_v18  ;;  %v10690_v18 = vmov 1983009808  }
  0x44   :  { %8931 = vmatpush3.bf16.msra.mxu0 %v9057_v21  ;;  %1049 = vmatmul.mubr.bf16.vlgmr.msra.gmra.mxu1 %v281_v23  ;;  %v1151_v19 = vunpack.c.l.s4 %v10690_v18  ;;  %v9120_v21 = vld [vmem:[%s14969_s1 + $0x120] ss:$8 sps:$4 sm:$0xff]   ;;  %v9123_v23 = vld [vmem:[%s14969_s1 + $0x10] ss:$8 sps:$4 sm:$0xff]  }
  0x45   :  { %8932 = vmatprep.subr.bf16.mxu0 %v9059_v24  ;;  %8953 = vmatpush3.bf16.msra.mxu1 %v9058_v22  ;;  %v9128_v22 = vld [vmem:[%s14969_s1 + $0x114] ss:$8 sps:$4 sm:$0xff]  }
  0x46   :  { %8954 = vmatprep.subr.bf16.mxu1 %v9060_v25  ;;  %1088 = vmatprep.mubr.bf16.mxu0 %v305_v52  ;;  %v1152_v24 = vunpack.c.0.s8 %v1151_v19  ;;  %v9131_v25 = vld [vmem:[%s14969_s1 + $0x4] ss:$8 sps:$4 sm:$0xff]   ;;  %v9152_v52 = vld [vmem:[%s14969_s1 + $0x1d4] ss:$8 sps:$4 sm:$0xff]  }
  0x47   :  { %1128 = vmatprep.mubr.bf16.mxu1 %v307_v55 }
  0x48   :  { %8933 = vmatpush3.bf16.msra.mxu0 %v9061_v26  ;;  %v9126_v26 = vld [vmem:[%s14969_s1 + $0x110] ss:$8 sps:$4 sm:$0xff]  }
  0x49   :  { %8934 = vmatprep.subr.bf16.mxu0 %v9063_v28  ;;  %8955 = vmatpush3.bf16.msra.mxu1 %v9062_v27  ;;  %v9134_v27 = vld [vmem:[%s14969_s1 + $0x104] ss:$8 sps:$4 sm:$0xff]   ;;  %v9129_v28 = vld [vmem:[%s14969_s1] ss:$8 sps:$4 sm:$0xff]  }
  0x4a   :  { %8956 = vmatprep.subr.bf16.mxu1 %v9064_v29  ;;  %v11161_v29 = vsub.s32 %v1152_v24, %v10854_v34  ;;  %v9182_v24 = vld [vmem:[%s14969_s1 + $0x184] ss:$8 sps:$4 sm:$0xff]  }
  0x4c   :  { %8935 = vmatpush3.bf16.msra.mxu0 %v9065_v30  ;;  %v9137_v30 = vld [vmem:[%s14969_s1 + $0xf4] ss:$8 sps:$4 sm:$0xff]  }
  0x4d   :  { %8936 = vmatprep.subr.bf16.mxu0 %v9067_v32  ;;  %8957 = vmatpush3.bf16.msra.mxu1 %v9066_v31  ;;  %v9132_v31 = vld [vmem:[%s14969_s1 + $0x100] ss:$8 sps:$4 sm:$0xff]   ;;  %v9140_v32 = vld [vmem:[%s14969_s1 + $0x1f4] ss:$8 sps:$4 sm:$0xff]  }
  0x4e   :  { %8958 = vmatprep.subr.bf16.mxu1 %v9068_v33  ;;  %v9135_v33 = vld [vmem:[%s14969_s1 + $0xf0] ss:$8 sps:$4 sm:$0xff]  }
  0x50   :  { %8937 = vmatpush3.bf16.msra.mxu0 %v9069_v35  ;;  %v1137_v35 = vld [vmem:[%s14968_s0] sm:$0xff] }
  0x51   :  { %8938 = vmatprep.subr.bf16.mxu0 %v9071_v37  ;;  %8959 = vmatpush3.bf16.msra.mxu1 %v9070_v36  ;;  %v9143_v36 = vld [vmem:[%s14969_s1 + $0xe4] ss:$8 sps:$4 sm:$0xff]   ;;  %v1149_v37 = vcombine.high %v1137_v35, %v1137_v35 }
  0x52   :  { %8960 = vmatprep.subr.bf16.mxu1 %v9072_v38  ;;  %v1156_v38 = vrot.slane %v1137_v35, %v11161_v29 }
  0x54   :  { %8939 = vmatpush3.bf16.msra.mxu0 %v9073_v39  ;;  %v9138_v39 = vld [vmem:[%s14969_s1 + $0x1f0] ss:$8 sps:$4 sm:$0xff]  }
  0x55   :  { %8940 = vmatprep.subr.bf16.mxu0 %v9075_v42  ;;  %8961 = vmatpush3.bf16.msra.mxu1 %v9074_v40  ;;  %v9146_v40 = vld [vmem:[%s14969_s1 + $0x1e4] ss:$8 sps:$4 sm:$0xff]   ;;  %v1163_v42 = vrot.slane %v1149_v37, %v11161_v29  ;;  %v9190_v37 = vld [vmem:[%s14969_s1 + $0x260] ss:$8 sps:$4 sm:$0xff]  }
  0x56   :  { %8962 = vmatprep.subr.bf16.mxu1 %v9076_v43  ;;  %v1164_v43 = vcombine.high %v1156_v38, %v1156_v38 }
  0x57   :  { %v1165_v47 = vcombine.high %v1163_v42, %v1163_v42  ;;  %v11199_v49 = vpack.c.bf16 %v1163_v42, %v1163_v42  ;;  %v9196_v42 = vld [vmem:[%s14969_s1 + $0x250] ss:$8 sps:$4 sm:$0xff]  }
  0x58   :  { %8941 = vmatpush3.bf16.msra.mxu0 %v9077_v44  ;;  %v11189_v44 = vpack.c.bf16 %v1156_v38, %v1156_v38  ;;  %v9198_v38 = vld [vmem:[%s14969_s1 + $0x254] ss:$8 sps:$4 sm:$0xff]  }
  0x59   :  { %8942 = vmatprep.subr.bf16.mxu0 %v9079_v46  ;;  %8963 = vmatpush3.bf16.msra.mxu1 %v9078_v45  ;;  %v9141_v45 = vld [vmem:[%s14969_s1 + $0xe0] ss:$8 sps:$4 sm:$0xff]   ;;  %v9149_v46 = vld [vmem:[%s14969_s1 + $0xd4] ss:$8 sps:$4 sm:$0xff]   ;;  %v1301_v55 = vunpack.c.l.bf16 %v11199_v49 }
  0x5a   :  { %8964 = vmatprep.subr.bf16.mxu1 %v9080_v48  ;;  %v11197_v48 = vpack.c.bf16 %v1164_v43, %v1164_v43  ;;  %v9204_v43 = vld [vmem:[%s14969_s1 + $0x244] ss:$8 sps:$4 sm:$0xff]  }
  0x5c   :  { %8943 = vmatpush3.bf16.msra.mxu0 %v9081_v50  ;;  %v1299_v50 = vunpack.c.l.bf16 %v11189_v44 }
  0x5d   :  { %8944 = vmatprep.subr.bf16.mxu0 %v9083_v51  ;;  %8965 = vmatpush3.bf16.msra.mxu1 %v9082_v53  ;;  %v9144_v51 = vld [vmem:[%s14969_s1 + $0x1e0] ss:$8 sps:$4 sm:$0xff]   ;;  %v11208_v53 = vpack.c.bf16 %v1165_v47, %v1165_v47 }
  0x5e   :  { %8966 = vmatprep.subr.bf16.mxu1 %v9084_v54  ;;  %v1300_v54 = vunpack.c.l.bf16 %v11197_v48  ;;  %v1138_v47 = vld [vmem:[%s14968_s0 + $0x8] sm:$0xff] }
  0x60   :  { %8945 = vmatpush3.bf16.msra.mxu0 %v9085_v56  ;;  %v9147_v56 = vld [vmem:[%s14969_s1 + $0xd0] ss:$8 sps:$4 sm:$0xff]  }
  0x61   :  { %4305 = vmatprep.subr.bf16.mxu0 %v9089_v58  ;;  %8967 = vmatpush3.bf16.msra.mxu1 %v9086_v59  ;;  %v1302_v58 = vunpack.c.l.bf16 %v11208_v53  ;;  %v1347_v59 = vcombine.low %v1299_v50, %v1300_v54  ;;  %v9202_v50 = vld [vmem:[%s14969_s1 + $0x240] ss:$8 sps:$4 sm:$0xff]   ;;  %v9210_v54 = vld [vmem:[%s14969_s1 + $0x234] ss:$8 sps:$4 sm:$0xff]  }
  0x62   :  { %4346 = vmatprep.subr.bf16.mxu1 %v9092_v60  ;;  %v9150_v60 = vld [vmem:[%s14969_s1 + $0x1d0] ss:$8 sps:$4 sm:$0xff]  }
  0x63   :  { %1089 = vmatmul.mubr.bf16.vlgmr.msra.gmra.mxu0 %v298_v57  ;;  %v9155_v57 = vld [vmem:[%s14969_s1 + $0xc4] ss:$8 sps:$4 sm:$0xff]  }
  0x64   :  { %4306 = vmatpush1.bf16.msra.mxu0 %v9087_v61  ;;  %1129 = vmatmul.mubr.bf16.vlgmr.msra.gmra.mxu1 %v306_v41  ;;  %v9158_v61 = vld [vmem:[%s14969_s1 + $0x1c4] ss:$8 sps:$4 sm:$0xff]   ;;  %v1348_v41 = vcombine.low %v1301_v55, %v1302_v58  ;;  %v9205_v55 = vld [vmem:[%s14969_s1 + $0x340] ss:$8 sps:$4 sm:$0xff]  }
  0x65   :  { %4307 = vmatprep.subr.bf16.mxu0 %v9095_v62  ;;  %4347 = vmatpush1.bf16.msra.mxu1 %v9090_v63  ;;  %v1355_v62 = vrot.slane %v1347_v59, %v11161_v29  ;;  %v9153_v63 = vld [vmem:[%s14969_s1 + $0xc0] ss:$8 sps:$4 sm:$0xff]   ;;  %v9213_v59 = vld [vmem:[%s14969_s1 + $0x334] ss:$8 sps:$4 sm:$0xff]  }
  0x66   :  { %4348 = vmatprep.subr.bf16.mxu1 %v9098_v0  ;;  %v9161_v0 = vld [vmem:[%s14969_s1 + $0xb4] ss:$8 sps:$4 sm:$0xff]  }
  0x68   :  { %4308 = vmatpush1.bf16.msra.mxu0 %v9093_v1  ;;  %v1362_v1 = vrot.slane %v1348_v41, %v11161_v29 }
  0x69   :  { %4309 = vmatprep.subr.bf16.mxu0 %v9101_v2  ;;  %4349 = vmatpush1.bf16.msra.mxu1 %v9096_v3  ;;  %v9156_v2 = vld [vmem:[%s14969_s1 + $0x1c0] ss:$8 sps:$4 sm:$0xff]   ;;  %v9164_v3 = vld [vmem:[%s14969_s1 + $0x1b4] ss:$8 sps:$4 sm:$0xff]  }
  0x6a   :  { %4350 = vmatprep.subr.bf16.mxu1 %v9104_v4  ;;  %v1363_v4 = vcombine.low %v1355_v62, %v1362_v1  ;;  %v9211_v1 = vld [vmem:[%s14969_s1 + $0x330] ss:$8 sps:$4 sm:$0xff]  }
  0x6c   :  { %4310 = vmatpush1.bf16.msra.mxu0 %v9099_v5  ;;  %v9159_v5 = vld [vmem:[%s14969_s1 + $0xb0] ss:$8 sps:$4 sm:$0xff]  }
  0x6d   :  { %4311 = vmatprep.subr.bf16.mxu0 %v9107_v6  ;;  %4351 = vmatpush1.bf16.msra.mxu1 %v9102_v7  ;;  %v9167_v6 = vld [vmem:[%s14969_s1 + $0xa4] ss:$8 sps:$4 sm:$0xff]   ;;  %v1455_v7 = vsub.f32 %v1137_v35, %v1363_v4  ;;  %v9187_v35 = vld [vmem:[%s14969_s1 + $0x370] ss:$8 sps:$4 sm:$0xff]  }
  0x6e   :  { %4352 = vmatprep.subr.bf16.mxu1 %v9110_v8  ;;  %v9162_v8 = vld [vmem:[%s14969_s1 + $0x1b0] ss:$8 sps:$4 sm:$0xff]  }
  0x70   :  { %4312 = vmatpush1.bf16.msra.mxu0 %v9105_v9  ;;  %v9170_v9 = vld [vmem:[%s14969_s1 + $0x1a4] ss:$8 sps:$4 sm:$0xff]  }
  0x71   :  { %4313 = vmatprep.subr.bf16.mxu0 %v9113_v10  ;;  %4353 = vmatpush1.bf16.msra.mxu1 %v9108_v11  ;;  %v1474_v10 = vrot.slane %v1455_v7, %v11161_v29  ;;  %v1467_v11 = vcombine.high %v1455_v7, %v1455_v7 }
  0x72   :  { %4354 = vmatprep.subr.bf16.mxu1 %v9116_v12  ;;  %v9165_v12 = vld [vmem:[%s14969_s1 + $0xa0] ss:$8 sps:$4 sm:$0xff]  }
  0x74   :  { %4314 = vmatpush1.bf16.msra.mxu0 %v9111_v13  ;;  %v9173_v13 = vld [vmem:[%s14969_s1 + $0x94] ss:$8 sps:$4 sm:$0xff]  }
  0x75   :  { %4315 = vmatprep.subr.bf16.mxu0 %v9119_v14  ;;  %4355 = vmatpush1.bf16.msra.mxu1 %v9114_v15  ;;  %v1482_v14 = vcombine.high %v1474_v10, %v1474_v10  ;;  %v1481_v15 = vrot.slane %v1467_v11, %v11161_v29 }
  0x76   :  { %4356 = vmatprep.subr.bf16.mxu1 %v9122_v16  ;;  %v9168_v16 = vld [vmem:[%s14969_s1 + $0x1a0] ss:$8 sps:$4 sm:$0xff]  }
  0x77   :  { %v1594_v18 = vpack.c.bf16 %v1482_v14, %v1482_v14  ;;  %v1483_v19 = vcombine.high %v1481_v15, %v1481_v15  ;;  %v9220_v14 = vld [vmem:[%s14969_s1 + $0x210] ss:$8 sps:$4 sm:$0xff]  }
  0x78   :  { %4316 = vmatpush1.bf16.msra.mxu0 %v9117_v17  ;;  %v9176_v17 = vld [vmem:[%s14969_s1 + $0x194] ss:$8 sps:$4 sm:$0xff]  }
  0x79   :  { %4317 = vmatprep.subr.bf16.mxu0 %v9125_v20  ;;  %4357 = vmatpush1.bf16.msra.mxu1 %v9120_v21  ;;  %v9171_v20 = vld [vmem:[%s14969_s1 + $0x90] ss:$8 sps:$4 sm:$0xff]   ;;  %v9179_v21 = vld [vmem:[%s14969_s1 + $0x84] ss:$8 sps:$4 sm:$0xff]  }
  0x7a   :  { %4358 = vmatprep.subr.bf16.mxu1 %v9128_v22  ;;  %4337 = vmatprep.mubr.bf16.mxu0 %v1594_v18  ;;  %v1596_v22 = vpack.c.bf16 %v1483_v19, %v1483_v19  ;;  %v9231_v19 = vld [vmem:[%s14969_s1 + $0x304] ss:$8 sps:$4 sm:$0xff]  }
  0x7c   :  { %4318 = vmatpush1.bf16.msra.mxu0 %v9123_v23  ;;  %v9174_v23 = vld [vmem:[%s14969_s1 + $0x190] ss:$8 sps:$4 sm:$0xff]   ;;  %4378 = vmatprep.mubr.bf16.mxu1 %v1596_v22  ;;  %v9234_v22 = vld [vmem:[%s14969_s1 + $0x2f4] ss:$8 sps:$4 sm:$0xff]  }
  0x7d   :  { %4319 = vmatprep.subr.bf16.mxu0 %v9131_v25  ;;  %4359 = vmatpush1.bf16.msra.mxu1 %v9126_v26  ;;  %v9177_v25 = vld [vmem:[%s14969_s1 + $0x80] ss:$8 sps:$4 sm:$0xff]   ;;  %v9186_v26 = vld [vmem:[%s14969_s1 + $0x274] ss:$8 sps:$4 sm:$0xff]  }
  0x7e   :  { %4360 = vmatprep.subr.bf16.mxu1 %v9134_v27  ;;  %v9180_v27 = vld [vmem:[%s14969_s1 + $0x180] ss:$8 sps:$4 sm:$0xff]  }
  0x80   :  { %4320 = vmatpush1.bf16.msra.mxu0 %v9129_v28  ;;  %v1593_v28 = vpack.c.bf16 %v1474_v10, %v1474_v10  ;;  %v9217_v10 = vld [vmem:[%s14969_s1 + $0x320] ss:$8 sps:$4 sm:$0xff]  }
  0x81   :  { %4321 = vmatprep.subr.bf16.mxu0 %v9137_v30  ;;  %4361 = vmatpush1.bf16.msra.mxu1 %v9132_v31  ;;  %v9189_v30 = vld [vmem:[%s14969_s1 + $0x374] ss:$8 sps:$4 sm:$0xff]   ;;  %v9184_v31 = vld [vmem:[%s14969_s1 + $0x270] ss:$8 sps:$4 sm:$0xff]  }
  0x82   :  { %4362 = vmatprep.subr.bf16.mxu1 %v9140_v32  ;;  %v1595_v32 = vpack.c.bf16 %v1481_v15, %v1481_v15 }
  0x84   :  { %4322 = vmatpush2.bf16.msra.mxu0 %v9135_v33  ;;  %v9192_v33 = vld [vmem:[%s14969_s1 + $0x264] ss:$8 sps:$4 sm:$0xff]  }
  0x85   :  { %4323 = vmatprep.subr.bf16.mxu0 %v9143_v36  ;;  %4363 = vmatpush2.bf16.msra.mxu1 %v9138_v39  ;;  %v9195_v36 = vld [vmem:[%s14969_s1 + $0x364] ss:$8 sps:$4 sm:$0xff]   ;;  %v9193_v39 = vld [vmem:[%s14969_s1 + $0x360] ss:$8 sps:$4 sm:$0xff]  }
  0x86   :  { %4364 = vmatprep.subr.bf16.mxu1 %v9146_v40  ;;  %v9201_v40 = vld [vmem:[%s14969_s1 + $0x354] ss:$8 sps:$4 sm:$0xff]  }
  0x88   :  { %4324 = vmatpush2.bf16.msra.mxu0 %v9141_v45  ;;  %v9199_v45 = vld [vmem:[%s14969_s1 + $0x350] ss:$8 sps:$4 sm:$0xff]  }
  0x89   :  { %4325 = vmatprep.subr.bf16.mxu0 %v9149_v46  ;;  %4365 = vmatpush2.bf16.msra.mxu1 %v9144_v51  ;;  %v9207_v46 = vld [vmem:[%s14969_s1 + $0x344] ss:$8 sps:$4 sm:$0xff]   ;;  %v1166_v51 = vcombine.high %v1138_v47, %v1138_v47 }
  0x8a   :  { %4366 = vmatprep.subr.bf16.mxu1 %v9152_v52  ;;  %v1173_v52 = vrot.slane %v1138_v47, %v11161_v29 }
  0x8c   :  { %4326 = vmatpush2.bf16.msra.mxu0 %v9147_v56  ;;  %v1180_v56 = vrot.slane %v1166_v51, %v11161_v29  ;;  %v11339_v58 = vpack.c.bf16 %v1173_v52, %v1173_v52  ;;  %v9258_v51 = vld [vmem:[%s14969_s1 + $0x2b4] ss:$8 sps:$4 sm:$0xff]  }
  0x8d   :  { %4327 = vmatprep.subr.bf16.mxu0 %v9155_v57  ;;  %4367 = vmatpush2.bf16.msra.mxu1 %v9150_v60  ;;  %v1181_v57 = vcombine.high %v1173_v52, %v1173_v52  ;;  %v9208_v60 = vld [vmem:[%s14969_s1 + $0x230] ss:$8 sps:$4 sm:$0xff]   ;;  %v9253_v52 = vld [vmem:[%s14969_s1 + $0x3c0] ss:$8 sps:$4 sm:$0xff]  }
  0x8e   :  { %4368 = vmatprep.subr.bf16.mxu1 %v9158_v61  ;;  %v1182_v61 = vcombine.high %v1180_v56, %v1180_v56  ;;  %v11349_v62 = vpack.c.bf16 %v1180_v56, %v1180_v56  ;;  %v9264_v56 = vld [vmem:[%s14969_s1 + $0x2a4] ss:$8 sps:$4 sm:$0xff]  }
  0x8f   :  { %v11347_v41 = vpack.c.bf16 %v1181_v57, %v1181_v57  ;;  %v9259_v57 = vld [vmem:[%s14969_s1 + $0x3b0] ss:$8 sps:$4 sm:$0xff]  }
  0x90   :  { %4328 = vmatpush2.bf16.msra.mxu0 %v9153_v63  ;;  %v1303_v63 = vunpack.c.l.bf16 %v11339_v58  ;;  %v1305_v4 = vunpack.c.l.bf16 %v11349_v62 }
  0x91   :  { %4329 = vmatprep.subr.bf16.mxu0 %v9161_v0  ;;  %4369 = vmatpush2.bf16.msra.mxu1 %v9156_v2  ;;  %v9216_v0 = vld [vmem:[%s14969_s1 + $0x224] ss:$8 sps:$4 sm:$0xff]   ;;  %v11358_v2 = vpack.c.bf16 %v1182_v61, %v1182_v61  ;;  %v9270_v61 = vld [vmem:[%s14969_s1 + $0x294] ss:$8 sps:$4 sm:$0xff]  }
  0x92   :  { %4370 = vmatprep.subr.bf16.mxu1 %v9164_v3  ;;  %v1304_v3 = vunpack.c.l.bf16 %v11347_v41 }
  0x93   :  { %v1306_v7 = vunpack.c.l.bf16 %v11358_v2 }
  0x94   :  { %4330 = vmatpush2.bf16.msra.mxu0 %v9159_v5  ;;  %v9219_v5 = vld [vmem:[%s14969_s1 + $0x324] ss:$8 sps:$4 sm:$0xff]  }
  0x95   :  { %4331 = vmatprep.subr.bf16.mxu0 %v9167_v6  ;;  %4371 = vmatpush2.bf16.msra.mxu1 %v9162_v8  ;;  %v9214_v6 = vld [vmem:[%s14969_s1 + $0x220] ss:$8 sps:$4 sm:$0xff]   ;;  %v1364_v8 = vcombine.low %v1303_v63, %v1304_v3  ;;  %v1365_v11 = vcombine.low %v1305_v4, %v1306_v7  ;;  %v9268_v3 = vld [vmem:[%s14969_s1 + $0x290] ss:$8 sps:$4 sm:$0xff]  }
  0x96   :  { %4372 = vmatprep.subr.bf16.mxu1 %v9170_v9  ;;  %v9222_v9 = vld [vmem:[%s14969_s1 + $0x214] ss:$8 sps:$4 sm:$0xff]   ;;  %v9265_v63 = vld [vmem:[%s14969_s1 + $0x3a0] ss:$8 sps:$4 sm:$0xff]   ;;  %v9271_v7 = vld [vmem:[%s14969_s1 + $0x390] ss:$8 sps:$4 sm:$0xff]  }
  0x97   :  { %v1379_v15 = vrot.slane %v1365_v11, %v11161_v29  ;;  %v9279_v11 = vld [vmem:[%s14969_s1 + $0x384] ss:$8 sps:$4 sm:$0xff]  }
  0x98   :  { %4332 = vmatpush2.bf16.msra.mxu0 %v9165_v12  ;;  %v1372_v12 = vrot.slane %v1364_v8, %v11161_v29 }
  0x99   :  { %4333 = vmatprep.subr.bf16.mxu0 %v9173_v13  ;;  %4373 = vmatpush2.bf16.msra.mxu1 %v9168_v16  ;;  %v9225_v13 = vld [vmem:[%s14969_s1 + $0x314] ss:$8 sps:$4 sm:$0xff]   ;;  %v9228_v16 = vld [vmem:[%s14969_s1 + $0x204] ss:$8 sps:$4 sm:$0xff]  }
  0x9a   :  { %4374 = vmatprep.subr.bf16.mxu1 %v9176_v17  ;;  %v9223_v17 = vld [vmem:[%s14969_s1 + $0x310] ss:$8 sps:$4 sm:$0xff]   ;;  %v1380_v18 = vcombine.low %v1372_v12, %v1379_v15  ;;  %v9274_v12 = vld [vmem:[%s14969_s1 + $0x280] ss:$8 sps:$4 sm:$0xff]  }
  0x9c   :  { %4334 = vmatpush2.bf16.msra.mxu0 %v9171_v20  ;;  %v9226_v20 = vld [vmem:[%s14969_s1 + $0x200] ss:$8 sps:$4 sm:$0xff]  }
  0x9d   :  { %4335 = vmatprep.subr.bf16.mxu0 %v9179_v21  ;;  %4375 = vmatpush2.bf16.msra.mxu1 %v9174_v23  ;;  %v1456_v21 = vsub.f32 %v1138_v47, %v1380_v18  ;;  %v9229_v23 = vld [vmem:[%s14969_s1 + $0x300] ss:$8 sps:$4 sm:$0xff]   ;;  %v9255_v47 = vld [vmem:[%s14969_s1 + $0x3c4] ss:$8 sps:$4 sm:$0xff]  }
  0x9e   :  { %4376 = vmatprep.subr.bf16.mxu1 %v9182_v24  ;;  %v9277_v18 = vld [vmem:[%s14969_s1 + $0x380] ss:$8 sps:$4 sm:$0xff]  }
  0x9f   :  { %v11402_v24 = vrot.slane %v1456_v21, %v11161_v29 }
  0xa0   :  { %4336 = vmatpush2.bf16.msra.mxu0 %v9177_v25  ;;  %v1484_v25 = vcombine.high %v1456_v21, %v1456_v21 }
  0xa1   :  { %4387 = vmatprep.subr.bf16.mxu0 %v9186_v26  ;;  %4377 = vmatpush2.bf16.msra.mxu1 %v9180_v27  ;;  %v9237_v26 = vld [vmem:[%s14969_s1 + $0x3f4] ss:$8 sps:$4 sm:$0xff]   ;;  %v9232_v27 = vld [vmem:[%s14969_s1 + $0x2f0] ss:$8 sps:$4 sm:$0xff]  }
  0xa2   :  { %4428 = vmatprep.subr.bf16.mxu1 %v9189_v30  ;;  %v11413_v30 = vrot.slane %v1484_v25, %v11161_v29  ;;  %v9281_v25 = vld [vmem:[%s14969_s1 + $0x470] ss:$8 sps:$4 sm:$0xff]  }
  0xa3   :  { %4338 = vmatmul.mubr.bf16.vlgmr.msra.gmra.mxu0 %v1593_v28  ;;  %v1499_v28 = vcombine.high %v11402_v24, %v11402_v24 }
  0xa4   :  { %4388 = vmatpush1.bf16.msra.mxu0 %v9184_v31  ;;  %4379 = vmatmul.mubr.bf16.vlgmr.msra.gmra.mxu1 %v1595_v32  ;;  %v9240_v31 = vld [vmem:[%s14969_s1 + $0x2e4] ss:$8 sps:$4 sm:$0xff]   ;;  %v9235_v32 = vld [vmem:[%s14969_s1 + $0x3f0] ss:$8 sps:$4 sm:$0xff]  }
  0xa5   :  { %4389 = vmatprep.subr.bf16.mxu0 %v9192_v33  ;;  %4429 = vmatpush1.bf16.msra.mxu1 %v9187_v35  ;;  %v1598_v33 = vpack.c.bf16 %v1499_v28, %v1499_v28  ;;  %v1500_v35 = vcombine.high %v11413_v30, %v11413_v30  ;;  %v1599_v28 = vpack.c.bf16 %v11413_v30, %v11413_v30  ;;  %v9292_v30 = vld [vmem:[%s14969_s1 + $0x564] ss:$8 sps:$4 sm:$0xff]  }
  0xa6   :  { %4430 = vmatprep.subr.bf16.mxu1 %v9195_v36  ;;  %v9243_v36 = vld [vmem:[%s14969_s1 + $0x3e4] ss:$8 sps:$4 sm:$0xff]  }
  0xa7   :  { %4419 = vmatprep.mubr.bf16.mxu0 %v1598_v33 }
  0xa8   :  { %4390 = vmatpush1.bf16.msra.mxu0 %v9190_v37  ;;  %v9238_v37 = vld [vmem:[%s14969_s1 + $0x2e0] ss:$8 sps:$4 sm:$0xff]  }
  0xa9   :  { %4391 = vmatprep.subr.bf16.mxu0 %v9198_v38  ;;  %4431 = vmatpush1.bf16.msra.mxu1 %v9193_v39  ;;  %v1600_v38 = vpack.c.bf16 %v1500_v35, %v1500_v35  ;;  %v9246_v39 = vld [vmem:[%s14969_s1 + $0x2d4] ss:$8 sps:$4 sm:$0xff]  }
  0xaa   :  { %4432 = vmatprep.subr.bf16.mxu1 %v9201_v40  ;;  %v9241_v40 = vld [vmem:[%s14969_s1 + $0x3e0] ss:$8 sps:$4 sm:$0xff]  }
  0xab   :  { %4460 = vmatprep.mubr.bf16.mxu1 %v1600_v38 }
  0xac   :  { %4392 = vmatpush1.bf16.msra.mxu0 %v9196_v42  ;;  %v9249_v42 = vld [vmem:[%s14969_s1 + $0x3d4] ss:$8 sps:$4 sm:$0xff]  }
  0xad   :  { %4393 = vmatprep.subr.bf16.mxu0 %v9204_v43  ;;  %4433 = vmatpush1.bf16.msra.mxu1 %v9199_v45  ;;  %v9244_v43 = vld [vmem:[%s14969_s1 + $0x2d0] ss:$8 sps:$4 sm:$0xff]   ;;  %v9252_v45 = vld [vmem:[%s14969_s1 + $0x2c4] ss:$8 sps:$4 sm:$0xff]  }
  0xae   :  { %4434 = vmatprep.subr.bf16.mxu1 %v9207_v46  ;;  %v9247_v46 = vld [vmem:[%s14969_s1 + $0x3d0] ss:$8 sps:$4 sm:$0xff]  }
  0xb0   :  { %4394 = vmatpush1.bf16.msra.mxu0 %v9202_v50  ;;  %v9250_v50 = vld [vmem:[%s14969_s1 + $0x2c0] ss:$8 sps:$4 sm:$0xff]  }
  0xb1   :  { %4395 = vmatprep.subr.bf16.mxu0 %v9210_v54  ;;  %4435 = vmatpush1.bf16.msra.mxu1 %v9205_v55  ;;  %v9261_v54 = vld [vmem:[%s14969_s1 + $0x3b4] ss:$8 sps:$4 sm:$0xff]   ;;  %v9256_v55 = vld [vmem:[%s14969_s1 + $0x2b0] ss:$8 sps:$4 sm:$0xff]  }
  0xb2   :  { %4436 = vmatprep.subr.bf16.mxu1 %v9213_v59  ;;  %v9267_v59 = vld [vmem:[%s14969_s1 + $0x3a4] ss:$8 sps:$4 sm:$0xff]  }
  0xb4   :  { %4396 = vmatpush1.bf16.msra.mxu0 %v9208_v60  ;;  %v9262_v60 = vld [vmem:[%s14969_s1 + $0x2a0] ss:$8 sps:$4 sm:$0xff]  }
  0xb5   :  { %4397 = vmatprep.subr.bf16.mxu0 %v9216_v0  ;;  %4437 = vmatpush1.bf16.msra.mxu1 %v9211_v1  ;;  %v9273_v0 = vld [vmem:[%s14969_s1 + $0x394] ss:$8 sps:$4 sm:$0xff]  }
  0xb6   :  { %4438 = vmatprep.subr.bf16.mxu1 %v9219_v5  ;;  %v1139_v1 = vld [vmem:[%s14968_s0 + $0x10] sm:$0xff] }
  0xb7   :  { %v1183_v4 = vcombine.high %v1139_v1, %v1139_v1  ;;  %v1190_v5 = vrot.slane %v1139_v1, %v11161_v29 }
  0xb8   :  { %4398 = vmatpush1.bf16.msra.mxu0 %v9214_v6  ;;  %v9276_v6 = vld [vmem:[%s14969_s1 + $0x284] ss:$8 sps:$4 sm:$0xff]  }
  0xb9   :  { %4399 = vmatprep.subr.bf16.mxu0 %v9222_v9  ;;  %4439 = vmatpush1.bf16.msra.mxu1 %v9217_v10  ;;  %v1197_v8 = vrot.slane %v1183_v4, %v11161_v29  ;;  %v1198_v9 = vcombine.high %v1190_v5, %v1190_v5  ;;  %v11500_v10 = vpack.c.bf16 %v1190_v5, %v1190_v5  ;;  %v9302_v4 = vld [vmem:[%s14969_s1 + $0x540] ss:$8 sps:$4 sm:$0xff]  }
  0xba   :  { %4440 = vmatprep.subr.bf16.mxu1 %v9225_v13 }
  0xbb   :  { %v1199_v13 = vcombine.high %v1197_v8, %v1197_v8  ;;  %v11510_v15 = vpack.c.bf16 %v1197_v8, %v1197_v8  ;;  %v9305_v8 = vld [vmem:[%s14969_s1 + $0x430] ss:$8 sps:$4 sm:$0xff]  }
  0xbc   :  { %4400 = vmatpush1.bf16.msra.mxu0 %v9220_v14  ;;  %v11508_v14 = vpack.c.bf16 %v1198_v9, %v1198_v9 }
  0xbd   :  { %4401 = vmatprep.subr.bf16.mxu0 %v9228_v16  ;;  %4441 = vmatpush1.bf16.msra.mxu1 %v9223_v17  ;;  %v1307_v16 = vunpack.c.l.bf16 %v11500_v10  ;;  %v9283_v17 = vld [vmem:[%s14969_s1 + $0x474] ss:$8 sps:$4 sm:$0xff]   ;;  %v1309_v21 = vunpack.c.l.bf16 %v11510_v15 }
  0xbe   :  { %4442 = vmatprep.subr.bf16.mxu1 %v9231_v19  ;;  %v11519_v19 = vpack.c.bf16 %v1199_v13, %v1199_v13  ;;  %v9316_v13 = vld [vmem:[%s14969_s1 + $0x524] ss:$8 sps:$4 sm:$0xff]  }
  0xc0   :  { %4402 = vmatpush1.bf16.msra.mxu0 %v9226_v20  ;;  %v1308_v20 = vunpack.c.l.bf16 %v11508_v14 }
  0xc1   :  { %4403 = vmatprep.subr.bf16.mxu0 %v9234_v22  ;;  %4443 = vmatpush1.bf16.msra.mxu1 %v9229_v23  ;;  %v1597_v22 = vpack.c.bf16 %v11402_v24, %v11402_v24  ;;  %v9286_v23 = vld [vmem:[%s14969_s1 + $0x574] ss:$8 sps:$4 sm:$0xff]   ;;  %v9289_v24 = vld [vmem:[%s14969_s1 + $0x464] ss:$8 sps:$4 sm:$0xff]  }
  0xc2   :  { %4444 = vmatprep.subr.bf16.mxu1 %v9237_v26  ;;  %v1310_v26 = vunpack.c.l.bf16 %v11519_v19 }
  0xc4   :  { %4404 = vmatpush2.bf16.msra.mxu0 %v9232_v27  ;;  %v1381_v27 = vcombine.low %v1307_v16, %v1308_v20  ;;  %v9311_v16 = vld [vmem:[%s14969_s1 + $0x420] ss:$8 sps:$4 sm:$0xff]   ;;  %v9322_v20 = vld [vmem:[%s14969_s1 + $0x514] ss:$8 sps:$4 sm:$0xff]  }
  0xc5   :  { %4405 = vmatprep.subr.bf16.mxu0 %v9240_v31  ;;  %4445 = vmatpush2.bf16.msra.mxu1 %v9235_v32  ;;  %v9284_v31 = vld [vmem:[%s14969_s1 + $0x570] ss:$8 sps:$4 sm:$0xff]   ;;  %v1382_v32 = vcombine.low %v1309_v21, %v1310_v26  ;;  %v9323_v26 = vld [vmem:[%s14969_s1 + $0x400] ss:$8 sps:$4 sm:$0xff]  }
  0xc6   :  { %4446 = vmatprep.subr.bf16.mxu1 %v9243_v36  ;;  %v1389_v33 = vrot.slane %v1381_v27, %v11161_v29  ;;  %v9287_v36 = vld [vmem:[%s14969_s1 + $0x460] ss:$8 sps:$4 sm:$0xff]   ;;  %v9317_v21 = vld [vmem:[%s14969_s1 + $0x410] ss:$8 sps:$4 sm:$0xff]   ;;  %v9331_v27 = vld [vmem:[%s14969_s1 + $0x4f4] ss:$8 sps:$4 sm:$0xff]  }
  0xc8   :  { %4406 = vmatpush2.bf16.msra.mxu0 %v9238_v37  ;;  %v1396_v37 = vrot.slane %v1382_v32, %v11161_v29  ;;  %v9332_v32 = vld [vmem:[%s14969_s1 + $0x5f0] ss:$8 sps:$4 sm:$0xff]  }
  0xc9   :  { %4407 = vmatprep.subr.bf16.mxu0 %v9246_v39  ;;  %4447 = vmatpush2.bf16.msra.mxu1 %v9241_v40  ;;  %v9295_v40 = vld [vmem:[%s14969_s1 + $0x454] ss:$8 sps:$4 sm:$0xff]  }
  0xca   :  { %4448 = vmatprep.subr.bf16.mxu1 %v9249_v42  ;;  %v9290_v42 = vld [vmem:[%s14969_s1 + $0x560] ss:$8 sps:$4 sm:$0xff]  }
  0xcc   :  { %4408 = vmatpush2.bf16.msra.mxu0 %v9244_v43  ;;  %v1397_v43 = vcombine.low %v1389_v33, %v1396_v37  ;;  %v9337_v33 = vld [vmem:[%s14969_s1 + $0x4e4] ss:$8 sps:$4 sm:$0xff]  }
  0xcd   :  { %4409 = vmatprep.subr.bf16.mxu0 %v9252_v45  ;;  %4449 = vmatpush2.bf16.msra.mxu1 %v9247_v46  ;;  %v9340_v37 = vld [vmem:[%s14969_s1 + $0x5e4] ss:$8 sps:$4 sm:$0xff]  }
  0xce   :  { %4450 = vmatprep.subr.bf16.mxu1 %v9255_v47  ;;  %v9298_v47 = vld [vmem:[%s14969_s1 + $0x554] ss:$8 sps:$4 sm:$0xff]  }
  0xd0   :  { %4410 = vmatpush2.bf16.msra.mxu0 %v9250_v50  ;;  %v9293_v50 = vld [vmem:[%s14969_s1 + $0x450] ss:$8 sps:$4 sm:$0xff]  }
  0xd1   :  { %4411 = vmatprep.subr.bf16.mxu0 %v9258_v51  ;;  %4451 = vmatpush2.bf16.msra.mxu1 %v9253_v52  ;;  %v1457_v51 = vsub.f32 %v1139_v1, %v1397_v43  ;;  %v9335_v43 = vld [vmem:[%s14969_s1 + $0x4e0] ss:$8 sps:$4 sm:$0xff]  }
  0xd2   :  { %4452 = vmatprep.subr.bf16.mxu1 %v9261_v54 }
  0xd4   :  { %4412 = vmatpush2.bf16.msra.mxu0 %v9256_v55  ;;  %v9301_v55 = vld [vmem:[%s14969_s1 + $0x444] ss:$8 sps:$4 sm:$0xff]  }
  0xd5   :  { %4413 = vmatprep.subr.bf16.mxu0 %v9264_v56  ;;  %4453 = vmatpush2.bf16.msra.mxu1 %v9259_v57  ;;  %v9296_v56 = vld [vmem:[%s14969_s1 + $0x550] ss:$8 sps:$4 sm:$0xff]   ;;  %v11575_v57 = vrot.slane %v1457_v51, %v11161_v29 }
  0xd6   :  { %4454 = vmatprep.subr.bf16.mxu1 %v9267_v59  ;;  %v1501_v59 = vcombine.high %v1457_v51, %v1457_v51 }
  0xd8   :  { %4414 = vmatpush2.bf16.msra.mxu0 %v9262_v60  ;;  %v11586_v1 = vrot.slane %v1501_v59, %v11161_v29 }
  0xd9   :  { %4415 = vmatprep.subr.bf16.mxu0 %v9270_v61  ;;  %4455 = vmatpush2.bf16.msra.mxu1 %v9265_v63  ;;  %v9304_v61 = vld [vmem:[%s14969_s1 + $0x544] ss:$8 sps:$4 sm:$0xff]   ;;  %v9299_v63 = vld [vmem:[%s14969_s1 + $0x440] ss:$8 sps:$4 sm:$0xff]  }
  0xda   :  { %4456 = vmatprep.subr.bf16.mxu1 %v9273_v0  ;;  %v1516_v0 = vcombine.high %v11575_v57, %v11575_v57 }
  0xdc   :  { %4416 = vmatpush2.bf16.msra.mxu0 %v9268_v3  ;;  %v9307_v3 = vld [vmem:[%s14969_s1 + $0x434] ss:$8 sps:$4 sm:$0xff]   ;;  %v1602_v5 = vpack.c.bf16 %v1516_v0, %v1516_v0 }
  0xdd   :  { %4417 = vmatprep.subr.bf16.mxu0 %v9276_v6  ;;  %4457 = vmatpush2.bf16.msra.mxu1 %v9271_v7  ;;  %v1517_v6 = vcombine.high %v11586_v1, %v11586_v1  ;;  %v9310_v7 = vld [vmem:[%s14969_s1 + $0x534] ss:$8 sps:$4 sm:$0xff]  }
  0xde   :  { %4458 = vmatprep.subr.bf16.mxu1 %v9279_v11  ;;  %v9313_v11 = vld [vmem:[%s14969_s1 + $0x424] ss:$8 sps:$4 sm:$0xff]  }
  0xdf   :  { %v1604_v9 = vpack.c.bf16 %v1517_v6, %v1517_v6 }
  0xe0   :  { %4418 = vmatpush2.bf16.msra.mxu0 %v9274_v12  ;;  %v9308_v12 = vld [vmem:[%s14969_s1 + $0x530] ss:$8 sps:$4 sm:$0xff]  }
  0xe1   :  { %4469 = vmatprep.subr.bf16.mxu0 %v9283_v17  ;;  %4459 = vmatpush2.bf16.msra.mxu1 %v9277_v18  ;;  %v9319_v17 = vld [vmem:[%s14969_s1 + $0x414] ss:$8 sps:$4 sm:$0xff]   ;;  %v9314_v18 = vld [vmem:[%s14969_s1 + $0x520] ss:$8 sps:$4 sm:$0xff]  }
  0xe2   :  { %4510 = vmatprep.subr.bf16.mxu1 %v9286_v23  ;;  %v9320_v23 = vld [vmem:[%s14969_s1 + $0x510] ss:$8 sps:$4 sm:$0xff]  }
  0xe3   :  { %v11541_v35 = vpop.f32.mrf.mxu0  ;;  %4420 = vmatmul.mubr.bf16.vlgmr.msra.gmra.mxu0 %v1597_v22  ;;  %v9325_v22 = vld [vmem:[%s14969_s1 + $0x404] ss:$8 sps:$4 sm:$0xff]  }
  0xe4   :  { %4470 = vmatpush1.bf16.msra.mxu0 %v9281_v25  ;;  %v11550_v38 = vpop.f32.mrf.mxu1  ;;  %4461 = vmatmul.mubr.bf16.vlgmr.msra.gmra.mxu1 %v1599_v28  ;;  %v9328_v25 = vld [vmem:[%s14969_s1 + $0x504] ss:$8 sps:$4 sm:$0xff]   ;;  %v9326_v28 = vld [vmem:[%s14969_s1 + $0x500] ss:$8 sps:$4 sm:$0xff]  }
  0xe5   :  { %v11552_v39 = vpop.f32.mrf.mxu0  ;;  %4471 = vmatprep.subr.bf16.mxu0 %v9289_v24  ;;  %4511 = vmatpush1.bf16.msra.mxu1 %v9284_v31  ;;  %v9334_v24 = vld [vmem:[%s14969_s1 + $0x5f4] ss:$8 sps:$4 sm:$0xff]   ;;  %v9329_v31 = vld [vmem:[%s14969_s1 + $0x4f0] ss:$8 sps:$4 sm:$0xff]  }
  0xe6   :  { %v11560_v45 = vpop.f32.mrf.mxu1  ;;  %4512 = vmatprep.subr.bf16.mxu1 %v9292_v30  ;;  %4501 = vmatprep.mubr.bf16.mxu0 %v1602_v5  ;;  %v1140_v30 = vld [vmem:[%s14968_s0 + $0x18] sm:$0xff] }
  0xe7   :  { %v8861_v46 = vpop.f32.mrf.mxu0  ;;  %4542 = vmatprep.mubr.bf16.mxu1 %v1604_v9 }
  0xe8   :  { %4472 = vmatpush1.bf16.msra.mxu0 %v9287_v36  ;;  %v8883_v52 = vpop.f32.mrf.mxu1 }
  0xe9   :  { %v8862_v54 = vpop.f32.mrf.mxu0  ;;  %4473 = vmatprep.subr.bf16.mxu0 %v9295_v40  ;;  %4513 = vmatpush1.bf16.msra.mxu1 %v9290_v42  ;;  %v1200_v40 = vcombine.high %v1140_v30, %v1140_v30  ;;  %v1207_v42 = vrot.slane %v1140_v30, %v11161_v29 }
  0xea   :  { %v8884_v60 = vpop.f32.mrf.mxu1  ;;  %4514 = vmatprep.subr.bf16.mxu1 %v9298_v47 }
  0xeb   :  { %v1214_v51 = vrot.slane %v1200_v40, %v11161_v29  ;;  %v1215_v52 = vcombine.high %v1207_v42, %v1207_v42  ;;  %v11676_v54 = vpack.c.bf16 %v1207_v42, %v1207_v42  ;;  %v9346_v60 = vld [vmem:[%s14969_s1 + $0x5d4] ss:$8 sps:$4 sm:$0xff]   ;;  %v9359_v40 = vld [vmem:[%s14969_s1 + $0x4a0] ss:$8 sps:$4 sm:$0xff]  }
  0xec   :  { %4474 = vmatpush1.bf16.msra.mxu0 %v9293_v50  ;;  %v9343_v50 = vld [vmem:[%s14969_s1 + $0x4d4] ss:$8 sps:$4 sm:$0xff]  }
  0xed   :  { %4475 = vmatprep.subr.bf16.mxu0 %v9301_v55  ;;  %4515 = vmatpush1.bf16.msra.mxu1 %v9296_v56  ;;  %v9338_v55 = vld [vmem:[%s14969_s1 + $0x5e0] ss:$8 sps:$4 sm:$0xff]   ;;  %v11688_v0 = vpack.c.bf16 %v1214_v51, %v1214_v51  ;;  %v9367_v42 = vld [vmem:[%s14969_s1 + $0x494] ss:$8 sps:$4 sm:$0xff]  }
  0xee   :  { %4516 = vmatprep.subr.bf16.mxu1 %v9304_v61  ;;  %v1216_v61 = vcombine.high %v1214_v51, %v1214_v51  ;;  %v7976_v51 = vld [vmem:[%s14974_s6] ss:$0 sm:$0xff] }
  0xf0   :  { %4476 = vmatpush1.bf16.msra.mxu0 %v9299_v63  ;;  %v11686_v63 = vpack.c.bf16 %v1215_v52, %v1215_v52  ;;  %v8860_v52 = vadd.f32 %v11552_v39, %v11541_v35  ;;  %v9376_v39 = vld [vmem:[%s14969_s1 + $0x584] ss:$8 sps:$4 sm:$0xff]  }
  0xf1   :  { %4477 = vmatprep.subr.bf16.mxu0 %v9307_v3  ;;  %4517 = vmatpush1.bf16.msra.mxu1 %v9302_v4  ;;  %v1311_v3 = vunpack.c.l.bf16 %v11676_v54  ;;  %v9341_v4 = vld [vmem:[%s14969_s1 + $0x4d0] ss:$8 sps:$4 sm:$0xff]  }
  0xf2   :  { %4518 = vmatprep.subr.bf16.mxu1 %v9310_v7  ;;  %v9349_v7 = vld [vmem:[%s14969_s1 + $0x4c4] ss:$8 sps:$4 sm:$0xff]   ;;  %v1312_v9 = vunpack.c.l.bf16 %v11686_v63 }
  0xf4   :  { %4478 = vmatpush1.bf16.msra.mxu0 %v9305_v8  ;;  %v11697_v8 = vpack.c.bf16 %v1216_v61, %v1216_v61  ;;  %v9368_v61 = vld [vmem:[%s14969_s1 + $0x590] ss:$8 sps:$4 sm:$0xff]  }
  0xf5   :  { %4479 = vmatprep.subr.bf16.mxu0 %v9313_v11  ;;  %4519 = vmatpush1.bf16.msra.mxu1 %v9308_v12  ;;  %v1313_v11 = vunpack.c.l.bf16 %v11688_v0  ;;  %v9344_v12 = vld [vmem:[%s14969_s1 + $0x5d0] ss:$8 sps:$4 sm:$0xff]  }
  0xf6   :  { %4520 = vmatprep.subr.bf16.mxu1 %v9316_v13 }
  0xf8   :  { %4480 = vmatpush1.bf16.msra.mxu0 %v9311_v16  ;;  %v9352_v16 = vld [vmem:[%s14969_s1 + $0x5c4] ss:$8 sps:$4 sm:$0xff]  }
  0xf9   :  { %4481 = vmatprep.subr.bf16.mxu0 %v9319_v17  ;;  %4521 = vmatpush1.bf16.msra.mxu1 %v9314_v18  ;;  %v1314_v17 = vunpack.c.l.bf16 %v11697_v8  ;;  %v1398_v18 = vcombine.low %v1311_v3, %v1312_v9  ;;  %v931_v3 = vadd.f32 %v8860_v52, %v7976_v51 }
  0xfa   :  { %4522 = vmatprep.subr.bf16.mxu1 %v9322_v20  ;;  %v9347_v20 = vld [vmem:[%s14969_s1 + $0x4c0] ss:$8 sps:$4 sm:$0xff]  }
  0xfc   :  { %4482 = vmatpush1.bf16.msra.mxu0 %v9317_v21  ;;  %v9355_v21 = vld [vmem:[%s14969_s1 + $0x4b4] ss:$8 sps:$4 sm:$0xff]  }
  0xfd   :  { %4483 = vmatprep.subr.bf16.mxu0 %v9325_v22  ;;  %4523 = vmatpush1.bf16.msra.mxu1 %v9320_v23  ;;  %v1399_v22 = vcombine.low %v1313_v11, %v1314_v17  ;;  %v1406_v23 = vrot.slane %v1398_v18, %v11161_v29  ;;  %v1601_v11 = vpack.c.bf16 %v11575_v57, %v11575_v57  ;;  %v9386_v17 = vld [vmem:[%s14969_s1 + $0x664] ss:$8 sps:$4 sm:$0xff]  }
  0xfe   :  { %4524 = vmatprep.subr.bf16.mxu1 %v9328_v25  ;;  %v9350_v25 = vld [vmem:[%s14969_s1 + $0x5c0] ss:$8 sps:$4 sm:$0xff]  }
 0x100   :  { %4484 = vmatpush1.bf16.msra.mxu0 %v9323_v26  ;;  %v9358_v26 = vld [vmem:[%s14969_s1 + $0x5b4] ss:$8 sps:$4 sm:$0xff]  }
 0x101   :  { %4485 = vmatprep.subr.bf16.mxu0 %v9331_v27  ;;  %4525 = vmatpush1.bf16.msra.mxu1 %v9326_v28  ;;  %v1413_v27 = vrot.slane %v1399_v22, %v11161_v29  ;;  %v9353_v28 = vld [vmem:[%s14969_s1 + $0x4b0] ss:$8 sps:$4 sm:$0xff]  }
 0x102   :  { %4526 = vmatprep.subr.bf16.mxu1 %v9334_v24  ;;  %v9361_v24 = vld [vmem:[%s14969_s1 + $0x4a4] ss:$8 sps:$4 sm:$0xff]  }
 0x103   :  { %v11659_v36 = vpop.f32.mrf.mxu0 }
 0x104   :  { %4486 = vmatpush2.bf16.msra.mxu0 %v9329_v31  ;;  %v11668_v46 = vpop.f32.mrf.mxu1  ;;  %v1414_v31 = vcombine.low %v1406_v23, %v1413_v27  ;;  %v9384_v23 = vld [vmem:[%s14969_s1 + $0x660] ss:$8 sps:$4 sm:$0xff]  }
 0x105   :  { %v11670_v47 = vpop.f32.mrf.mxu0  ;;  %4487 = vmatprep.subr.bf16.mxu0 %v9337_v33  ;;  %4527 = vmatpush2.bf16.msra.mxu1 %v9332_v32  ;;  %v9356_v32 = vld [vmem:[%s14969_s1 + $0x5b0] ss:$8 sps:$4 sm:$0xff]   ;;  %v9364_v33 = vld [vmem:[%s14969_s1 + $0x5a4] ss:$8 sps:$4 sm:$0xff]  }
 0x106   :  { %v11681_v56 = vpop.f32.mrf.mxu1  ;;  %4528 = vmatprep.subr.bf16.mxu1 %v9340_v37  ;;  %v1458_v37 = vsub.f32 %v1140_v30, %v1414_v31  ;;  %v9370_v30 = vld [vmem:[%s14969_s1 + $0x594] ss:$8 sps:$4 sm:$0xff]   ;;  %v8904_v9 = vadd.f32 %v11670_v47, %v11659_v36  ;;  %v9378_v36 = vld [vmem:[%s14969_s1 + $0x670] ss:$8 sps:$4 sm:$0xff]  }
 0x107   :  { %v8905_v59 = vpop.f32.mrf.mxu0  ;;  %v8926_v18 = vadd.f32 %v11681_v56, %v11668_v46 }
 0x108   :  { %4488 = vmatpush2.bf16.msra.mxu0 %v9335_v43  ;;  %v8927_v5 = vpop.f32.mrf.mxu1  ;;  %v9362_v43 = vld [vmem:[%s14969_s1 + $0x5a0] ss:$8 sps:$4 sm:$0xff]   ;;  %v11755_v59 = vrot.slane %v1458_v37, %v11161_v29 }
 0x109   :  { %v8906_v6 = vpop.f32.mrf.mxu0  ;;  %4489 = vmatprep.subr.bf16.mxu0 %v9343_v50  ;;  %4529 = vmatpush2.bf16.msra.mxu1 %v9338_v55  ;;  %v1518_v50 = vcombine.high %v1458_v37, %v1458_v37  ;;  %v9365_v55 = vld [vmem:[%s14969_s1 + $0x490] ss:$8 sps:$4 sm:$0xff]   ;;  %v9371_v5 = vld [vmem:[%s14969_s1 + $0x480] ss:$8 sps:$4 sm:$0xff]  }
 0x10a   :  { %v8928_v13 = vpop.f32.mrf.mxu1  ;;  %4530 = vmatprep.subr.bf16.mxu1 %v9346_v60  ;;  %v9373_v60 = vld [vmem:[%s14969_s1 + $0x484] ss:$8 sps:$4 sm:$0xff]   ;;  %v1533_v6 = vcombine.high %v11755_v59, %v11755_v59 }
 0x10b   :  { %v11764_v35 = vrot.slane %v1518_v50, %v11161_v29  ;;  %v9398_v50 = vld [vmem:[%s14969_s1 + $0x644] ss:$8 sps:$4 sm:$0xff]  }
 0x10c   :  { %4490 = vmatpush2.bf16.msra.mxu0 %v9341_v4  ;;  %v8882_v4 = vadd.f32 %v11560_v45, %v11550_v38  ;;  %v9374_v38 = vld [vmem:[%s14969_s1 + $0x580] ss:$8 sps:$4 sm:$0xff]   ;;  %v1606_v47 = vpack.c.bf16 %v1533_v6, %v1533_v6  ;;  %v9410_v6 = vld [vmem:[%s14969_s1 + $0x624] ss:$8 sps:$4 sm:$0xff]  }
 0x10d   :  { %4491 = vmatprep.subr.bf16.mxu0 %v9349_v7  ;;  %4531 = vmatpush2.bf16.msra.mxu1 %v9344_v12  ;;  %v9380_v7 = vld [vmem:[%s14969_s1 + $0x674] ss:$8 sps:$4 sm:$0xff]   ;;  %v1534_v45 = vcombine.high %v11764_v35, %v11764_v35 }
 0x10e   :  { %4532 = vmatprep.subr.bf16.mxu1 %v9352_v16  ;;  %v9383_v12 = vld [vmem:[%s14969_s1 + $0x774] ss:$8 sps:$4 sm:$0xff]   ;;  %v971_v13 = vadd.f32 %v8882_v4, %v931_v3  ;;  %v1603_v16 = vpack.c.bf16 %v11586_v1, %v11586_v1  ;;  %v9389_v1 = vld [vmem:[%s14969_s1 + $0x764] ss:$8 sps:$4 sm:$0xff]  }
 0x10f   :  { %v9407_v3 = vld [vmem:[%s14969_s1 + $0x734] ss:$8 sps:$4 sm:$0xff]   ;;  %v11846_v4 = vld [vmem:[%s14968_s0 + $0x20] sm:$0xff] }
 0x110   :  { %4492 = vmatpush2.bf16.msra.mxu0 %v9347_v20  ;;  %v1011_v57 = vadd.f32 %v8904_v9, %v971_v13  ;;  %v9381_v20 = vld [vmem:[%s14969_s1 + $0x770] ss:$8 sps:$4 sm:$0xff]   ;;  %v1217_v9 = vcombine.high %v11846_v4, %v11846_v4  ;;  %v1224_v13 = vrot.slane %v11846_v4, %v11161_v29 }
 0x111   :  { %4493 = vmatprep.subr.bf16.mxu0 %v9355_v21  ;;  %4533 = vmatpush2.bf16.msra.mxu1 %v9350_v25  ;;  %v1608_v21 = vpack.c.bf16 %v1534_v45, %v1534_v45  ;;  %v9392_v25 = vld [vmem:[%s14969_s1 + $0x654] ss:$8 sps:$4 sm:$0xff]   ;;  %v9408_v45 = vld [vmem:[%s14969_s1 + $0x620] ss:$8 sps:$4 sm:$0xff]  }
 0x112   :  { %4534 = vmatprep.subr.bf16.mxu1 %v9358_v26  ;;  %v1051_v26 = vadd.f32 %v8926_v18, %v1011_v57  ;;  %v9417_v57 = vld [vmem:[%s14969_s1 + $0x710] ss:$8 sps:$4 sm:$0xff]   ;;  %v1232_v18 = vcombine.high %v1224_v13, %v1224_v13 }
 0x114   :  { %4494 = vmatpush2.bf16.msra.mxu0 %v9353_v28  ;;  %v9387_v28 = vld [vmem:[%s14969_s1 + $0x760] ss:$8 sps:$4 sm:$0xff]  }
 0x115   :  { %4495 = vmatprep.subr.bf16.mxu0 %v9361_v24  ;;  %4535 = vmatpush2.bf16.msra.mxu1 %v9356_v32  ;;  %v9395_v32 = vld [vmem:[%s14969_s1 + $0x754] ss:$8 sps:$4 sm:$0xff]  }
 0x116   :  { %4536 = vmatprep.subr.bf16.mxu1 %v9364_v33 }
 0x118   :  { %4496 = vmatpush2.bf16.msra.mxu0 %v9359_v40  ;;  %v9390_v40 = vld [vmem:[%s14969_s1 + $0x650] ss:$8 sps:$4 sm:$0xff]  }
 0x119   :  { %4497 = vmatprep.subr.bf16.mxu0 %v9367_v42  ;;  %4537 = vmatpush2.bf16.msra.mxu1 %v9362_v43 }
 0x11a   :  { %4538 = vmatprep.subr.bf16.mxu1 %v9370_v30  ;;  %v9393_v30 = vld [vmem:[%s14969_s1 + $0x750] ss:$8 sps:$4 sm:$0xff]  }
 0x11c   :  { %4498 = vmatpush2.bf16.msra.mxu0 %v9365_v55  ;;  %v9401_v55 = vld [vmem:[%s14969_s1 + $0x744] ss:$8 sps:$4 sm:$0xff]  }
 0x11d   :  { %4499 = vmatprep.subr.bf16.mxu0 %v9373_v60  ;;  %4539 = vmatpush2.bf16.msra.mxu1 %v9368_v61  ;;  %v9396_v60 = vld [vmem:[%s14969_s1 + $0x640] ss:$8 sps:$4 sm:$0xff]   ;;  %v9404_v61 = vld [vmem:[%s14969_s1 + $0x634] ss:$8 sps:$4 sm:$0xff]  }
 0x11e   :  { %4540 = vmatprep.subr.bf16.mxu1 %v9376_v39  ;;  %v9399_v39 = vld [vmem:[%s14969_s1 + $0x740] ss:$8 sps:$4 sm:$0xff]  }
 0x120   :  { %4500 = vmatpush2.bf16.msra.mxu0 %v9371_v5  ;;  %v9402_v5 = vld [vmem:[%s14969_s1 + $0x630] ss:$8 sps:$4 sm:$0xff]  }
 0x121   :  { %4551 = vmatprep.subr.bf16.mxu0 %v9380_v7  ;;  %4541 = vmatpush2.bf16.msra.mxu1 %v9374_v38  ;;  %v9405_v7 = vld [vmem:[%s14969_s1 + $0x730] ss:$8 sps:$4 sm:$0xff]   ;;  %v9413_v38 = vld [vmem:[%s14969_s1 + $0x724] ss:$8 sps:$4 sm:$0xff]  }
 0x122   :  { %4592 = vmatprep.subr.bf16.mxu1 %v9383_v12  ;;  %v9411_v12 = vld [vmem:[%s14969_s1 + $0x720] ss:$8 sps:$4 sm:$0xff]  }
 0x123   :  { %v8946_v22 = vpop.f32.mrf.mxu0  ;;  %4502 = vmatmul.mubr.bf16.vlgmr.msra.gmra.mxu0 %v1601_v11  ;;  %v9416_v11 = vld [vmem:[%s14969_s1 + $0x614] ss:$8 sps:$4 sm:$0xff]  }
 0x124   :  { %4552 = vmatpush1.bf16.msra.mxu0 %v9378_v36  ;;  %4583 = vmatprep.mubr.bf16.mxu0 %v1606_v47  ;;  %v8968_v46 = vpop.f32.mrf.mxu1  ;;  %v1231_v36 = vrot.slane %v1217_v9, %v11161_v29  ;;  %v9419_v47 = vld [vmem:[%s14969_s1 + $0x714] ss:$8 sps:$4 sm:$0xff]  }
 0x125   :  { %4543 = vmatmul.mubr.bf16.vlgmr.msra.gmra.mxu1 %v1603_v16  ;;  %v8947_v56 = vpop.f32.mrf.mxu0  ;;  %4553 = vmatprep.subr.bf16.mxu0 %v9386_v17  ;;  %v9414_v16 = vld [vmem:[%s14969_s1 + $0x610] ss:$8 sps:$4 sm:$0xff]   ;;  %v9422_v17 = vld [vmem:[%s14969_s1 + $0x604] ss:$8 sps:$4 sm:$0xff]   ;;  %v9452_v9 = vld [vmem:[%s14969_s1 + $0x6b4] ss:$8 sps:$4 sm:$0xff]  }
 0x126   :  { %4593 = vmatpush1.bf16.msra.mxu1 %v9381_v20  ;;  %v8948_v27 = vadd.f32 %v8947_v56, %v8946_v22  ;;  %4624 = vmatprep.mubr.bf16.mxu1 %v1608_v21  ;;  %v8969_v24 = vpop.f32.mrf.mxu1  ;;  %v1233_v20 = vcombine.high %v1231_v36, %v1231_v36  ;;  %v9425_v21 = vld [vmem:[%s14969_s1 + $0x704] ss:$8 sps:$4 sm:$0xff]   ;;  %v9420_v22 = vld [vmem:[%s14969_s1 + $0x600] ss:$8 sps:$4 sm:$0xff]   ;;  %v11900_v56 = vpack.c.bf16 %v1232_v18, %v1232_v18 }
 0x127   :  { %v8949_v31 = vpop.f32.mrf.mxu0  ;;  %4594 = vmatprep.subr.bf16.mxu1 %v9389_v1  ;;  %v8970_v37 = vadd.f32 %v8969_v24, %v8968_v46  ;;  %v9428_v1 = vld [vmem:[%s14969_s1 + $0x6f4] ss:$8 sps:$4 sm:$0xff]   ;;  %v11898_v46 = vpack.c.bf16 %v1224_v13, %v1224_v13  ;;  %v9434_v24 = vld [vmem:[%s14969_s1 + $0x6e4] ss:$8 sps:$4 sm:$0xff]   ;;  %v9459_v18 = vld [vmem:[%s14969_s1 + $0x7a0] ss:$8 sps:$4 sm:$0xff]  }
 0x128   :  { %v1091_v33 = vadd.f32 %v8948_v27, %v1051_v26  ;;  %4554 = vmatpush1.bf16.msra.mxu0 %v9384_v23  ;;  %v8971_v42 = vpop.f32.mrf.mxu1  ;;  %v9423_v23 = vld [vmem:[%s14969_s1 + $0x700] ss:$8 sps:$4 sm:$0xff]   ;;  %v11904_v26 = vpack.c.bf16 %v1233_v20, %v1233_v20  ;;  %v9431_v27 = vld [vmem:[%s14969_s1 + $0x7f4] ss:$8 sps:$4 sm:$0xff]   ;;  %v9429_v31 = vld [vmem:[%s14969_s1 + $0x7f0] ss:$8 sps:$4 sm:$0xff]  }
 0x129   :  { %v8950_v43 = vpop.f32.mrf.mxu0  ;;  %4555 = vmatprep.subr.bf16.mxu0 %v9392_v25  ;;  %v11902_v25 = vpack.c.bf16 %v1231_v36, %v1231_v36  ;;  %v9437_v42 = vld [vmem:[%s14969_s1 + $0x7e4] ss:$8 sps:$4 sm:$0xff]   ;;  %v9453_v36 = vld [vmem:[%s14969_s1 + $0x7b0] ss:$8 sps:$4 sm:$0xff]   ;;  %v9467_v20 = vld [vmem:[%s14969_s1 + $0x794] ss:$8 sps:$4 sm:$0xff]  }
 0x12a   :  { %4595 = vmatpush1.bf16.msra.mxu1 %v9387_v28  ;;  %v1131_v51 = vadd.f32 %v8970_v37, %v1091_v33  ;;  %v8972_v52 = vpop.f32.mrf.mxu1  ;;  %v9426_v28 = vld [vmem:[%s14969_s1 + $0x6f0] ss:$8 sps:$4 sm:$0xff]   ;;  %v1316_v33 = vunpack.c.l.bf16 %v11900_v56  ;;  %v9432_v43 = vld [vmem:[%s14969_s1 + $0x6e0] ss:$8 sps:$4 sm:$0xff]   ;;  %v9458_v13 = vld [vmem:[%s14969_s1 + $0x6a4] ss:$8 sps:$4 sm:$0xff]  }
 0x12b   :  { %4596 = vmatprep.subr.bf16.mxu1 %v9395_v32  ;;  %v1315_v32 = vunpack.c.l.bf16 %v11898_v46  ;;  %v1317_v37 = vunpack.c.l.bf16 %v11902_v25 }
 0x12c   :  { %4556 = vmatpush1.bf16.msra.mxu0 %v9390_v40  ;;  %1136 = vst [vmem:[#allocation6] sm:$0x3] %v1131_v51  ;;  %v1318_v40 = vunpack.c.l.bf16 %v11904_v26  ;;  %v9438_v51 = vld [vmem:[%s14969_s1 + $0x6d0] ss:$8 sps:$4 sm:$0xff]  }
 0x12d   :  { %4557 = vmatprep.subr.bf16.mxu0 %v9398_v50  ;;  %v9440_v50 = vld [vmem:[%s14969_s1 + $0x6d4] ss:$8 sps:$4 sm:$0xff]   ;;  %v1415_v52 = vcombine.low %v1315_v32, %v1316_v33  ;;  %v9471_v33 = vld [vmem:[%s14969_s1 + $0x780] ss:$8 sps:$4 sm:$0xff]  }
 0x12e   :  { %4597 = vmatpush1.bf16.msra.mxu1 %v9393_v30  ;;  %v9435_v30 = vld [vmem:[%s14969_s1 + $0x7e0] ss:$8 sps:$4 sm:$0xff]  }
 0x12f   :  { %4598 = vmatprep.subr.bf16.mxu1 %v9401_v55  ;;  %v1416_v55 = vcombine.low %v1317_v37, %v1318_v40  ;;  %v9475_v37 = vld [vmem:[%s14969_s1 + $0x870] ss:$8 sps:$4 sm:$0xff]   ;;  %v9480_v40 = vld [vmem:[%s14969_s1 + $0x974] ss:$8 sps:$4 sm:$0xff]  }
 0x130   :  { %4558 = vmatpush1.bf16.msra.mxu0 %v9396_v60  ;;  %v9443_v60 = vld [vmem:[%s14969_s1 + $0x7d4] ss:$8 sps:$4 sm:$0xff]  }
 0x131   :  { %4559 = vmatprep.subr.bf16.mxu0 %v9404_v61  ;;  %v9446_v61 = vld [vmem:[%s14969_s1 + $0x6c4] ss:$8 sps:$4 sm:$0xff]  }
 0x132   :  { %4599 = vmatpush1.bf16.msra.mxu1 %v9399_v39  ;;  %v9441_v39 = vld [vmem:[%s14969_s1 + $0x7d0] ss:$8 sps:$4 sm:$0xff]  }
 0x133   :  { %4600 = vmatprep.subr.bf16.mxu1 %v9407_v3  ;;  %v9444_v3 = vld [vmem:[%s14969_s1 + $0x6c0] ss:$8 sps:$4 sm:$0xff]  }
 0x134   :  { %4560 = vmatpush1.bf16.msra.mxu0 %v9402_v5  ;;  %v9449_v5 = vld [vmem:[%s14969_s1 + $0x7c4] ss:$8 sps:$4 sm:$0xff]  }
 0x135   :  { %4561 = vmatprep.subr.bf16.mxu0 %v9410_v6  ;;  %v1423_v6 = vrot.slane %v1415_v52, %v11161_v29  ;;  %v1607_v52 = vpack.c.bf16 %v11764_v35, %v11764_v35  ;;  %v9484_v35 = vld [vmem:[%s14969_s1 + $0x960] ss:$8 sps:$4 sm:$0xff]  }
 0x136   :  { %4601 = vmatpush1.bf16.msra.mxu1 %v9405_v7  ;;  %v1430_v7 = vrot.slane %v1416_v55, %v11161_v29  ;;  %v9486_v55 = vld [vmem:[%s14969_s1 + $0x964] ss:$8 sps:$4 sm:$0xff]  }
 0x137   :  { %4602 = vmatprep.subr.bf16.mxu1 %v9413_v38  ;;  %v9447_v38 = vld [vmem:[%s14969_s1 + $0x7c0] ss:$8 sps:$4 sm:$0xff]  }
 0x138   :  { %4562 = vmatpush1.bf16.msra.mxu0 %v9408_v45  ;;  %v9450_v45 = vld [vmem:[%s14969_s1 + $0x6b0] ss:$8 sps:$4 sm:$0xff]  }
 0x139   :  { %4563 = vmatprep.subr.bf16.mxu0 %v9416_v11  ;;  %v9455_v11 = vld [vmem:[%s14969_s1 + $0x7b4] ss:$8 sps:$4 sm:$0xff]  }
 0x13a   :  { %4603 = vmatpush1.bf16.msra.mxu1 %v9411_v12  ;;  %v1431_v12 = vcombine.low %v1423_v6, %v1430_v7  ;;  %v9492_v6 = vld [vmem:[%s14969_s1 + $0x954] ss:$8 sps:$4 sm:$0xff]  }
 0x13b   :  { %4604 = vmatprep.subr.bf16.mxu1 %v9419_v47  ;;  %v9456_v47 = vld [vmem:[%s14969_s1 + $0x6a0] ss:$8 sps:$4 sm:$0xff]  }
 0x13c   :  { %4564 = vmatpush1.bf16.msra.mxu0 %v9414_v16  ;;  %v1459_v16 = vsub.f32 %v11846_v4, %v1431_v12  ;;  %v9462_v4 = vld [vmem:[%s14969_s1 + $0x690] ss:$8 sps:$4 sm:$0xff]  }
 0x13d   :  { %4565 = vmatprep.subr.bf16.mxu0 %v9422_v17  ;;  %v9461_v17 = vld [vmem:[%s14969_s1 + $0x7a4] ss:$8 sps:$4 sm:$0xff]  }
 0x13e   :  { %4605 = vmatpush1.bf16.msra.mxu1 %v9417_v57  ;;  %v9464_v57 = vld [vmem:[%s14969_s1 + $0x694] ss:$8 sps:$4 sm:$0xff]  }
 0x13f   :  { %4606 = vmatprep.subr.bf16.mxu1 %v9425_v21  ;;  %v1535_v21 = vcombine.high %v1459_v16, %v1459_v16 }
 0x140   :  { %4566 = vmatpush1.bf16.msra.mxu0 %v9420_v22  ;;  %v9470_v22 = vld [vmem:[%s14969_s1 + $0x684] ss:$8 sps:$4 sm:$0xff]  }
 0x141   :  { %4567 = vmatprep.subr.bf16.mxu0 %v9428_v1  ;;  %v11995_v1 = vrot.slane %v1459_v16, %v11161_v29  ;;  %v9498_v16 = vld [vmem:[%s14969_s1 + $0x944] ss:$8 sps:$4 sm:$0xff]  }
 0x142   :  { %4607 = vmatpush1.bf16.msra.mxu1 %v9423_v23  ;;  %v9465_v23 = vld [vmem:[%s14969_s1 + $0x790] ss:$8 sps:$4 sm:$0xff]  }
 0x143   :  { %4608 = vmatprep.subr.bf16.mxu1 %v9431_v27  ;;  %v9468_v27 = vld [vmem:[%s14969_s1 + $0x680] ss:$8 sps:$4 sm:$0xff]   ;;  %v1550_v32 = vcombine.high %v11995_v1, %v11995_v1 }
 0x144   :  { %4568 = vmatpush2.bf16.msra.mxu0 %v9426_v28  ;;  %v9473_v28 = vld [vmem:[%s14969_s1 + $0x784] ss:$8 sps:$4 sm:$0xff]  }
 0x145   :  { %4569 = vmatprep.subr.bf16.mxu0 %v9434_v24  ;;  %v12007_v24 = vrot.slane %v1535_v21, %v11161_v29  ;;  %v12081_v21 = vld [vmem:[%s14968_s0 + $0x28] sm:$0xff] }
 0x146   :  { %4609 = vmatpush2.bf16.msra.mxu1 %v9429_v31  ;;  %v9477_v31 = vld [vmem:[%s14969_s1 + $0x874] ss:$8 sps:$4 sm:$0xff]  }
 0x147   :  { %4610 = vmatprep.subr.bf16.mxu1 %v9437_v42  ;;  %v1551_v42 = vcombine.high %v12007_v24, %v12007_v24 }
 0x148   :  { %4570 = vmatpush2.bf16.msra.mxu0 %v9432_v43  ;;  %v1605_v43 = vpack.c.bf16 %v11755_v59, %v11755_v59  ;;  %v9481_v59 = vld [vmem:[%s14969_s1 + $0x860] ss:$8 sps:$4 sm:$0xff]  }
 0x149   :  { %4571 = vmatprep.subr.bf16.mxu0 %v9440_v50  ;;  %v9483_v50 = vld [vmem:[%s14969_s1 + $0x864] ss:$8 sps:$4 sm:$0xff]  }
 0x14a   :  { %4611 = vmatpush2.bf16.msra.mxu1 %v9435_v30  ;;  %v9478_v30 = vld [vmem:[%s14969_s1 + $0x970] ss:$8 sps:$4 sm:$0xff]  }
 0x14b   :  { %4612 = vmatprep.subr.bf16.mxu1 %v9443_v60  ;;  %v1612_v60 = vpack.c.bf16 %v1551_v42, %v1551_v42  ;;  %v9511_v42 = vld [vmem:[%s14969_s1 + $0x810] ss:$8 sps:$4 sm:$0xff]  }
 0x14c   :  { %4572 = vmatpush2.bf16.msra.mxu0 %v9438_v51  ;;  %v1610_v51 = vpack.c.bf16 %v1550_v32, %v1550_v32  ;;  %v1234_v32 = vcombine.high %v12081_v21, %v12081_v21 }
 0x14d   :  { %4573 = vmatprep.subr.bf16.mxu0 %v9446_v61 }
 0x14e   :  { %4613 = vmatpush2.bf16.msra.mxu1 %v9441_v39  ;;  %v9489_v39 = vld [vmem:[%s14969_s1 + $0x854] ss:$8 sps:$4 sm:$0xff]  }
 0x14f   :  { %4614 = vmatprep.subr.bf16.mxu1 %v9449_v5 }
 0x150   :  { %4574 = vmatpush2.bf16.msra.mxu0 %v9444_v3 }
 0x151   :  { %4575 = vmatprep.subr.bf16.mxu0 %v9452_v9  ;;  %v9487_v9 = vld [vmem:[%s14969_s1 + $0x850] ss:$8 sps:$4 sm:$0xff]  }
 0x152   :  { %4615 = vmatpush2.bf16.msra.mxu1 %v9447_v38 }
 0x153   :  { %4616 = vmatprep.subr.bf16.mxu1 %v9455_v11  ;;  %v9495_v11 = vld [vmem:[%s14969_s1 + $0x844] ss:$8 sps:$4 sm:$0xff]  }
 0x154   :  { %4576 = vmatpush2.bf16.msra.mxu0 %v9450_v45 }
 0x155   :  { %4577 = vmatprep.subr.bf16.mxu0 %v9458_v13  ;;  %v9490_v13 = vld [vmem:[%s14969_s1 + $0x950] ss:$8 sps:$4 sm:$0xff]  }
 0x156   :  { %4617 = vmatpush2.bf16.msra.mxu1 %v9453_v36 }
 0x157   :  { %4618 = vmatprep.subr.bf16.mxu1 %v9461_v17  ;;  %v9493_v17 = vld [vmem:[%s14969_s1 + $0x840] ss:$8 sps:$4 sm:$0xff]  }
 0x158   :  { %4578 = vmatpush2.bf16.msra.mxu0 %v9456_v47 }
 0x159   :  { %4579 = vmatprep.subr.bf16.mxu0 %v9464_v57 }
 0x15a   :  { %4619 = vmatpush2.bf16.msra.mxu1 %v9459_v18  ;;  %v9501_v18 = vld [vmem:[%s14969_s1 + $0x834] ss:$8 sps:$4 sm:$0xff]  }
 0x15b   :  { %4620 = vmatprep.subr.bf16.mxu1 %v9467_v20  ;;  %v9504_v20 = vld [vmem:[%s14969_s1 + $0x934] ss:$8 sps:$4 sm:$0xff]  }
 0x15c   :  { %4580 = vmatpush2.bf16.msra.mxu0 %v9462_v4  ;;  %v9496_v4 = vld [vmem:[%s14969_s1 + $0x940] ss:$8 sps:$4 sm:$0xff]  }
 0x15d   :  { %4581 = vmatprep.subr.bf16.mxu0 %v9470_v22  ;;  %v9499_v22 = vld [vmem:[%s14969_s1 + $0x830] ss:$8 sps:$4 sm:$0xff]  }
 0x15e   :  { %4621 = vmatpush2.bf16.msra.mxu1 %v9465_v23  ;;  %v9507_v23 = vld [vmem:[%s14969_s1 + $0x824] ss:$8 sps:$4 sm:$0xff]  }
 0x15f   :  { %4622 = vmatprep.subr.bf16.mxu1 %v9473_v28  ;;  %v9510_v28 = vld [vmem:[%s14969_s1 + $0x924] ss:$8 sps:$4 sm:$0xff]  }
 0x160   :  { %4582 = vmatpush2.bf16.msra.mxu0 %v9468_v27  ;;  %v9502_v27 = vld [vmem:[%s14969_s1 + $0x930] ss:$8 sps:$4 sm:$0xff]  }
 0x161   :  { %4633 = vmatprep.subr.bf16.mxu0 %v9477_v31  ;;  %v9505_v31 = vld [vmem:[%s14969_s1 + $0x820] ss:$8 sps:$4 sm:$0xff]  }
 0x162   :  { %4623 = vmatpush2.bf16.msra.mxu1 %v9471_v33  ;;  %v9513_v33 = vld [vmem:[%s14969_s1 + $0x814] ss:$8 sps:$4 sm:$0xff]  }
 0x163   :  { %v4339_v61 = vpop.f32.mrf.mxu0  ;;  %4584 = vmatmul.mubr.bf16.vlgmr.msra.gmra.mxu0 %v1605_v43  ;;  %4674 = vmatprep.subr.bf16.mxu1 %v9480_v40  ;;  %v9516_v40 = vld [vmem:[%s14969_s1 + $0x914] ss:$8 sps:$4 sm:$0xff]   ;;  %v1241_v43 = vrot.slane %v12081_v21, %v11161_v29 }
 0x164   :  { %4634 = vmatpush1.bf16.msra.mxu0 %v9475_v37  ;;  %4665 = vmatprep.mubr.bf16.mxu0 %v1610_v51  ;;  %v4380_v3 = vpop.f32.mrf.mxu1  ;;  %v9508_v37 = vld [vmem:[%s14969_s1 + $0x920] ss:$8 sps:$4 sm:$0xff]   ;;  %v9514_v51 = vld [vmem:[%s14969_s1 + $0x910] ss:$8 sps:$4 sm:$0xff]  }
 0x165   :  { %4625 = vmatmul.mubr.bf16.vlgmr.msra.gmra.mxu1 %v1607_v52  ;;  %v4341_v5 = vpop.f32.mrf.mxu0  ;;  %4635 = vmatprep.subr.bf16.mxu0 %v9483_v50  ;;  %v12050_v7 = vadd.f32 %v4380_v3, %v4339_v61  ;;  %v1248_v50 = vrot.slane %v1234_v32, %v11161_v29  ;;  %v9522_v52 = vld [vmem:[%s14969_s1 + $0x904] ss:$8 sps:$4 sm:$0xff]   ;;  %v9525_v61 = vld [vmem:[%s14969_s1 + $0x8f4] ss:$8 sps:$4 sm:$0xff]   ;;  %v9523_v3 = vld [vmem:[%s14969_s1 + $0x8f0] ss:$8 sps:$4 sm:$0xff]  }
 0x166   :  { %4675 = vmatpush1.bf16.msra.mxu1 %v9478_v30  ;;  %4706 = vmatprep.mubr.bf16.mxu1 %v1612_v60  ;;  %v4382_v38 = vpop.f32.mrf.mxu1  ;;  %v9519_v30 = vld [vmem:[%s14969_s1 + $0x804] ss:$8 sps:$4 sm:$0xff]  }
 0x167   :  { %v4343_v45 = vpop.f32.mrf.mxu0  ;;  %4676 = vmatprep.subr.bf16.mxu1 %v9486_v55  ;;  %v12058_v12 = vadd.f32 %v4382_v38, %v4341_v5  ;;  %v9517_v55 = vld [vmem:[%s14969_s1 + $0x800] ss:$8 sps:$4 sm:$0xff]   ;;  %v1250_v60 = vcombine.high %v1248_v50, %v1248_v50  ;;  %v12139_v5 = vpack.c.bf16 %v1241_v43, %v1241_v43  ;;  %v9546_v32 = vld [vmem:[%s14969_s1 + $0x9c4] ss:$8 sps:$4 sm:$0xff]  }
 0x168   :  { %4636 = vmatpush1.bf16.msra.mxu0 %v9481_v59  ;;  %v4384_v36 = vpop.f32.mrf.mxu1  ;;  %v1249_v59 = vcombine.high %v1241_v43, %v1241_v43  ;;  %v9531_v45 = vld [vmem:[%s14969_s1 + $0x8e4] ss:$8 sps:$4 sm:$0xff]   ;;  %v9544_v43 = vld [vmem:[%s14969_s1 + $0x9c0] ss:$8 sps:$4 sm:$0xff]  }
 0x169   :  { %v4344_v47 = vpop.f32.mrf.mxu0  ;;  %4637 = vmatprep.subr.bf16.mxu0 %v9489_v39  ;;  %v9520_v39 = vld [vmem:[%s14969_s1 + $0x900] ss:$8 sps:$4 sm:$0xff]   ;;  %v12145_v38 = vpack.c.bf16 %v1250_v60, %v1250_v60 }
 0x16a   :  { %4677 = vmatpush1.bf16.msra.mxu1 %v9484_v35  ;;  %v4385_v57 = vpop.f32.mrf.mxu1  ;;  %v9528_v35 = vld [vmem:[%s14969_s1 + $0x9f4] ss:$8 sps:$4 sm:$0xff]   ;;  %v9529_v36 = vld [vmem:[%s14969_s1 + $0x8e0] ss:$8 sps:$4 sm:$0xff]   ;;  %v1319_v47 = vunpack.c.l.bf16 %v12139_v5 }
 0x16b   :  { %4678 = vmatprep.subr.bf16.mxu1 %v9492_v6  ;;  %v12141_v6 = vpack.c.bf16 %v1249_v59, %v1249_v59  ;;  %v1322_v57 = vunpack.c.l.bf16 %v12145_v38  ;;  %v9558_v59 = vld [vmem:[%s14969_s1 + $0x9a4] ss:$8 sps:$4 sm:$0xff]   ;;  %v9553_v60 = vld [vmem:[%s14969_s1 + $0x8a0] ss:$8 sps:$4 sm:$0xff]  }
 0x16c   :  { %4638 = vmatpush1.bf16.msra.mxu0 %v9487_v9  ;;  %v12143_v9 = vpack.c.bf16 %v1248_v50, %v1248_v50  ;;  %v9552_v50 = vld [vmem:[%s14969_s1 + $0x9b4] ss:$8 sps:$4 sm:$0xff]  }
 0x16d   :  { %4639 = vmatprep.subr.bf16.mxu0 %v9495_v11  ;;  %v9526_v11 = vld [vmem:[%s14969_s1 + $0x9f0] ss:$8 sps:$4 sm:$0xff]  }
 0x16e   :  { %4679 = vmatpush1.bf16.msra.mxu1 %v9490_v13  ;;  %v9534_v13 = vld [vmem:[%s14969_s1 + $0x9e4] ss:$8 sps:$4 sm:$0xff]  }
 0x16f   :  { %4680 = vmatprep.subr.bf16.mxu1 %v9498_v16  ;;  %v1320_v16 = vunpack.c.l.bf16 %v12141_v6 }
 0x170   :  { %4640 = vmatpush1.bf16.msra.mxu0 %v9493_v17  ;;  %v1321_v17 = vunpack.c.l.bf16 %v12143_v9 }
 0x171   :  { %4641 = vmatprep.subr.bf16.mxu0 %v9501_v18  ;;  %v9537_v18 = vld [vmem:[%s14969_s1 + $0x8d4] ss:$8 sps:$4 sm:$0xff]  }
 0x172   :  { %4681 = vmatpush1.bf16.msra.mxu1 %v9496_v4  ;;  %v9532_v4 = vld [vmem:[%s14969_s1 + $0x9e0] ss:$8 sps:$4 sm:$0xff]  }
 0x173   :  { %4682 = vmatprep.subr.bf16.mxu1 %v9504_v20  ;;  %v9540_v20 = vld [vmem:[%s14969_s1 + $0x9d4] ss:$8 sps:$4 sm:$0xff]  }
 0x174   :  { %4642 = vmatpush1.bf16.msra.mxu0 %v9499_v22  ;;  %v9535_v22 = vld [vmem:[%s14969_s1 + $0x8d0] ss:$8 sps:$4 sm:$0xff]  }
 0x175   :  { %4643 = vmatprep.subr.bf16.mxu0 %v9507_v23  ;;  %v1432_v23 = vcombine.low %v1319_v47, %v1320_v16  ;;  %v9570_v47 = vld [vmem:[%s14969_s1 + $0x984] ss:$8 sps:$4 sm:$0xff]   ;;  %v9565_v16 = vld [vmem:[%s14969_s1 + $0x880] ss:$8 sps:$4 sm:$0xff]  }
 0x176   :  { %4683 = vmatpush1.bf16.msra.mxu1 %v9502_v27  ;;  %v1433_v27 = vcombine.low %v1321_v17, %v1322_v57  ;;  %v9574_v57 = vld [vmem:[%s14969_s1 + $0xa74] ss:$8 sps:$4 sm:$0xff]  }
 0x177   :  { %4684 = vmatprep.subr.bf16.mxu1 %v9510_v28  ;;  %v9543_v28 = vld [vmem:[%s14969_s1 + $0x8c4] ss:$8 sps:$4 sm:$0xff]  }
 0x178   :  { %4644 = vmatpush1.bf16.msra.mxu0 %v9505_v31  ;;  %v9538_v31 = vld [vmem:[%s14969_s1 + $0x9d0] ss:$8 sps:$4 sm:$0xff]  }
 0x179   :  { %4645 = vmatprep.subr.bf16.mxu0 %v9513_v33  ;;  %v9541_v33 = vld [vmem:[%s14969_s1 + $0x8c0] ss:$8 sps:$4 sm:$0xff]  }
 0x17a   :  { %4685 = vmatpush1.bf16.msra.mxu1 %v9508_v37  ;;  %v1440_v37 = vrot.slane %v1432_v23, %v11161_v29 }
 0x17b   :  { %4686 = vmatprep.subr.bf16.mxu1 %v9516_v40  ;;  %v1447_v40 = vrot.slane %v1433_v27, %v11161_v29  ;;  %v1609_v27 = vpack.c.bf16 %v11995_v1, %v11995_v1  ;;  %v9578_v1 = vld [vmem:[%s14969_s1 + $0xa60] ss:$8 sps:$4 sm:$0xff]  }
 0x17c   :  { %4646 = vmatpush1.bf16.msra.mxu0 %v9511_v42  ;;  %v9549_v42 = vld [vmem:[%s14969_s1 + $0x8b4] ss:$8 sps:$4 sm:$0xff]  }
 0x17d   :  { %4647 = vmatprep.subr.bf16.mxu0 %v9519_v30  ;;  %v9547_v30 = vld [vmem:[%s14969_s1 + $0x8b0] ss:$8 sps:$4 sm:$0xff]  }
 0x17e   :  { %4687 = vmatpush1.bf16.msra.mxu1 %v9514_v51  ;;  %v1448_v51 = vcombine.low %v1440_v37, %v1447_v40  ;;  %v9583_v37 = vld [vmem:[%s14969_s1 + $0xb64] ss:$8 sps:$4 sm:$0xff]  }
 0x17f   :  { %4688 = vmatprep.subr.bf16.mxu1 %v9522_v52  ;;  %v9555_v52 = vld [vmem:[%s14969_s1 + $0x8a4] ss:$8 sps:$4 sm:$0xff]  }
 0x180   :  { %4648 = vmatpush1.bf16.msra.mxu0 %v9517_v55  ;;  %v9550_v55 = vld [vmem:[%s14969_s1 + $0x9b0] ss:$8 sps:$4 sm:$0xff]  }
 0x181   :  { %4649 = vmatprep.subr.bf16.mxu0 %v9525_v61  ;;  %v1460_v61 = vsub.f32 %v12081_v21, %v1448_v51  ;;  %v9559_v21 = vld [vmem:[%s14969_s1 + $0x890] ss:$8 sps:$4 sm:$0xff]  }
 0x182   :  { %4689 = vmatpush1.bf16.msra.mxu1 %v9520_v39  ;;  %v9561_v39 = vld [vmem:[%s14969_s1 + $0x894] ss:$8 sps:$4 sm:$0xff]  }
 0x183   :  { %4690 = vmatprep.subr.bf16.mxu1 %v9528_v35  ;;  %v9556_v35 = vld [vmem:[%s14969_s1 + $0x9a0] ss:$8 sps:$4 sm:$0xff]  }
 0x184   :  { %4650 = vmatpush2.bf16.msra.mxu0 %v9523_v3  ;;  %v9564_v3 = vld [vmem:[%s14969_s1 + $0x994] ss:$8 sps:$4 sm:$0xff]  }
 0x185   :  { %4651 = vmatprep.subr.bf16.mxu0 %v9531_v45  ;;  %v1552_v45 = vcombine.high %v1460_v61, %v1460_v61 }
 0x186   :  { %4691 = vmatpush2.bf16.msra.mxu1 %v9526_v11  ;;  %v9567_v11 = vld [vmem:[%s14969_s1 + $0x884] ss:$8 sps:$4 sm:$0xff]  }
 0x187   :  { %4692 = vmatprep.subr.bf16.mxu1 %v9534_v13  ;;  %v9562_v13 = vld [vmem:[%s14969_s1 + $0x990] ss:$8 sps:$4 sm:$0xff]   ;;  %v12242_v17 = vrot.slane %v1552_v45, %v11161_v29  ;;  %v9595_v45 = vld [vmem:[%s14969_s1 + $0xb44] ss:$8 sps:$4 sm:$0xff]  }
 0x188   :  { %4652 = vmatpush2.bf16.msra.mxu0 %v9529_v36  ;;  %v12233_v36 = vrot.slane %v1460_v61, %v11161_v29 }
 0x189   :  { %4653 = vmatprep.subr.bf16.mxu0 %v9537_v18  ;;  %v9568_v18 = vld [vmem:[%s14969_s1 + $0x980] ss:$8 sps:$4 sm:$0xff]   ;;  %v1568_v23 = vcombine.high %v12242_v17, %v12242_v17 }
 0x18a   :  { %4693 = vmatpush2.bf16.msra.mxu1 %v9532_v4  ;;  %v1567_v4 = vcombine.high %v12233_v36, %v12233_v36 }
 0x18b   :  { %4694 = vmatprep.subr.bf16.mxu1 %v9540_v20  ;;  %v9577_v20 = vld [vmem:[%s14969_s1 + $0xb74] ss:$8 sps:$4 sm:$0xff]   ;;  %v1616_v40 = vpack.c.bf16 %v1568_v23, %v1568_v23  ;;  %v9602_v23 = vld [vmem:[%s14969_s1 + $0xa20] ss:$8 sps:$4 sm:$0xff]  }
 0x18c   :  { %4654 = vmatpush2.bf16.msra.mxu0 %v9535_v22  ;;  %v9572_v22 = vld [vmem:[%s14969_s1 + $0xa70] ss:$8 sps:$4 sm:$0xff]  }
 0x18d   :  { %4655 = vmatprep.subr.bf16.mxu0 %v9543_v28  ;;  %v9580_v28 = vld [vmem:[%s14969_s1 + $0xa64] ss:$8 sps:$4 sm:$0xff]  }
 0x18e   :  { %4695 = vmatpush2.bf16.msra.mxu1 %v9538_v31  ;;  %v9575_v31 = vld [vmem:[%s14969_s1 + $0xb70] ss:$8 sps:$4 sm:$0xff]  }
 0x18f   :  { %4696 = vmatprep.subr.bf16.mxu1 %v9546_v32  ;;  %v1614_v32 = vpack.c.bf16 %v1567_v4, %v1567_v4  ;;  %v9604_v4 = vld [vmem:[%s14969_s1 + $0xa24] ss:$8 sps:$4 sm:$0xff]  }
 0x190   :  { %4656 = vmatpush2.bf16.msra.mxu0 %v9541_v33  ;;  %v1611_v33 = vpack.c.bf16 %v12007_v24, %v12007_v24 }
 0x191   :  { %4657 = vmatprep.subr.bf16.mxu0 %v9549_v42 }
 0x192   :  { %4697 = vmatpush2.bf16.msra.mxu1 %v9544_v43  ;;  %v9586_v43 = vld [vmem:[%s14969_s1 + $0xa54] ss:$8 sps:$4 sm:$0xff]  }
 0x193   :  { %4698 = vmatprep.subr.bf16.mxu1 %v9552_v50  ;;  %v9581_v50 = vld [vmem:[%s14969_s1 + $0xb60] ss:$8 sps:$4 sm:$0xff]  }
 0x194   :  { %4658 = vmatpush2.bf16.msra.mxu0 %v9547_v30 }
 0x195   :  { %4659 = vmatprep.subr.bf16.mxu0 %v9555_v52  ;;  %v9589_v52 = vld [vmem:[%s14969_s1 + $0xb54] ss:$8 sps:$4 sm:$0xff]  }
 0x196   :  { %4699 = vmatpush2.bf16.msra.mxu1 %v9550_v55 }
 0x197   :  { %4700 = vmatprep.subr.bf16.mxu1 %v9558_v59 }
 0x198   :  { %4660 = vmatpush2.bf16.msra.mxu0 %v9553_v60 }
 0x199   :  { %4661 = vmatprep.subr.bf16.mxu0 %v9561_v39  ;;  %v9592_v39 = vld [vmem:[%s14969_s1 + $0xa44] ss:$8 sps:$4 sm:$0xff]  }
 0x19a   :  { %4701 = vmatpush2.bf16.msra.mxu1 %v9556_v35 }
 0x19b   :  { %4702 = vmatprep.subr.bf16.mxu1 %v9564_v3  ;;  %v9587_v3 = vld [vmem:[%s14969_s1 + $0xb50] ss:$8 sps:$4 sm:$0xff]  }
 0x19c   :  { %4662 = vmatpush2.bf16.msra.mxu0 %v9559_v21 }
 0x19d   :  { %4663 = vmatprep.subr.bf16.mxu0 %v9567_v11  ;;  %v9590_v11 = vld [vmem:[%s14969_s1 + $0xa40] ss:$8 sps:$4 sm:$0xff]  }
 0x19e   :  { %4703 = vmatpush2.bf16.msra.mxu1 %v9562_v13 }
 0x19f   :  { %4704 = vmatprep.subr.bf16.mxu1 %v9570_v47  ;;  %v9598_v47 = vld [vmem:[%s14969_s1 + $0xa34] ss:$8 sps:$4 sm:$0xff]  }
 0x1a0   :  { %4664 = vmatpush2.bf16.msra.mxu0 %v9565_v16  ;;  %v9593_v16 = vld [vmem:[%s14969_s1 + $0xb40] ss:$8 sps:$4 sm:$0xff]  }
 0x1a1   :  { %4715 = vmatprep.subr.bf16.mxu0 %v9574_v57  ;;  %v9601_v57 = vld [vmem:[%s14969_s1 + $0xb34] ss:$8 sps:$4 sm:$0xff]  }
 0x1a2   :  { %4705 = vmatpush2.bf16.msra.mxu1 %v9568_v18  ;;  %v9596_v18 = vld [vmem:[%s14969_s1 + $0xa30] ss:$8 sps:$4 sm:$0xff]  }
 0x1a3   :  { %v4421_v42 = vpop.f32.mrf.mxu0  ;;  %4666 = vmatmul.mubr.bf16.vlgmr.msra.gmra.mxu0 %v1609_v27  ;;  %4756 = vmatprep.subr.bf16.mxu1 %v9577_v20  ;;  %v9599_v20 = vld [vmem:[%s14969_s1 + $0xb30] ss:$8 sps:$4 sm:$0xff]   ;;  %v9610_v27 = vld [vmem:[%s14969_s1 + $0xa14] ss:$8 sps:$4 sm:$0xff]  }
 0x1a4   :  { %v4422_v24 = vadd.f32 %v4421_v42, %v12050_v7  ;;  %4716 = vmatpush1.bf16.msra.mxu0 %v9572_v22  ;;  %4747 = vmatprep.mubr.bf16.mxu0 %v1614_v32  ;;  %v4462_v30 = vpop.f32.mrf.mxu1  ;;  %v9584_v7 = vld [vmem:[%s14969_s1 + $0xa50] ss:$8 sps:$4 sm:$0xff]   ;;  %v9607_v22 = vld [vmem:[%s14969_s1 + $0xb24] ss:$8 sps:$4 sm:$0xff]   ;;  %v9622_v42 = vld [vmem:[%s14969_s1 + $0xaf4] ss:$8 sps:$4 sm:$0xff]  }
 0x1a5   :  { %4707 = vmatmul.mubr.bf16.vlgmr.msra.gmra.mxu1 %v1611_v33  ;;  %v4423_v51 = vpop.f32.mrf.mxu0  ;;  %4717 = vmatprep.subr.bf16.mxu0 %v9580_v28  ;;  %v9605_v28 = vld [vmem:[%s14969_s1 + $0xb20] ss:$8 sps:$4 sm:$0xff]   ;;  %v9608_v32 = vld [vmem:[%s14969_s1 + $0xa10] ss:$8 sps:$4 sm:$0xff]   ;;  %v9616_v33 = vld [vmem:[%s14969_s1 + $0xa04] ss:$8 sps:$4 sm:$0xff]  }
 0x1a6   :  { %v12286_v55 = vadd.f32 %v4462_v30, %v4422_v24  ;;  %4757 = vmatpush1.bf16.msra.mxu1 %v9575_v31  ;;  %v4424_v59 = vadd.f32 %v4423_v51, %v12058_v12  ;;  %4788 = vmatprep.mubr.bf16.mxu1 %v1616_v40  ;;  %v4464_v60 = vpop.f32.mrf.mxu1  ;;  %v9613_v31 = vld [vmem:[%s14969_s1 + $0xb14] ss:$8 sps:$4 sm:$0xff]   ;;  %v9614_v40 = vld [vmem:[%s14969_s1 + $0xa00] ss:$8 sps:$4 sm:$0xff]   ;;  %v9628_v30 = vld [vmem:[%s14969_s1 + $0xae4] ss:$8 sps:$4 sm:$0xff]  }
 0x1a7   :  { %v4425_v61 = vpop.f32.mrf.mxu0  ;;  %4758 = vmatprep.subr.bf16.mxu1 %v9583_v37  ;;  %v9611_v37 = vld [vmem:[%s14969_s1 + $0xb10] ss:$8 sps:$4 sm:$0xff]   ;;  %v9625_v24 = vld [vmem:[%s14969_s1 + $0xbf4] ss:$8 sps:$4 sm:$0xff]  }
 0x1a8   :  { %v12295_v35 = vadd.f32 %v4464_v60, %v4424_v59  ;;  %4718 = vmatpush1.bf16.msra.mxu0 %v9578_v1  ;;  %v4466_v12 = vpop.f32.mrf.mxu1  ;;  %v9619_v1 = vld [vmem:[%s14969_s1 + $0xb04] ss:$8 sps:$4 sm:$0xff]   ;;  %v9623_v51 = vld [vmem:[%s14969_s1 + $0xbf0] ss:$8 sps:$4 sm:$0xff]   ;;  %v9626_v59 = vld [vmem:[%s14969_s1 + $0xae0] ss:$8 sps:$4 sm:$0xff]  }
 0x1a9   :  { %v4426_v21 = vpop.f32.mrf.mxu0  ;;  %4719 = vmatprep.subr.bf16.mxu0 %v9586_v43  ;;  %v9617_v43 = vld [vmem:[%s14969_s1 + $0xb00] ss:$8 sps:$4 sm:$0xff]   ;;  %v9637_v61 = vld [vmem:[%s14969_s1 + $0xbd4] ss:$8 sps:$4 sm:$0xff]   ;;  %v9635_v12 = vld [vmem:[%s14969_s1 + $0xbd0] ss:$8 sps:$4 sm:$0xff]  }
 0x1aa   :  { %4759 = vmatpush1.bf16.msra.mxu1 %v9581_v50  ;;  %v4467_v13 = vpop.f32.mrf.mxu1  ;;  %v9620_v50 = vld [vmem:[%s14969_s1 + $0xaf0] ss:$8 sps:$4 sm:$0xff]   ;;  %v9629_v60 = vld [vmem:[%s14969_s1 + $0xbe0] ss:$8 sps:$4 sm:$0xff]   ;;  %v9643_v21 = vld [vmem:[%s14969_s1 + $0xbc4] ss:$8 sps:$4 sm:$0xff]  }
 0x1ab   :  { %4760 = vmatprep.subr.bf16.mxu1 %v9589_v52  ;;  %v9631_v52 = vld [vmem:[%s14969_s1 + $0xbe4] ss:$8 sps:$4 sm:$0xff]   ;;  %v9641_v13 = vld [vmem:[%s14969_s1 + $0xbc0] ss:$8 sps:$4 sm:$0xff]  }
 0x1ac   :  { %4720 = vmatpush1.bf16.msra.mxu0 %v9584_v7  ;;  %v9634_v7 = vld [vmem:[%s14969_s1 + $0xad4] ss:$8 sps:$4 sm:$0xff]  }
 0x1ad   :  { %4721 = vmatprep.subr.bf16.mxu0 %v9592_v39  ;;  %v9632_v39 = vld [vmem:[%s14969_s1 + $0xad0] ss:$8 sps:$4 sm:$0xff]  }
 0x1ae   :  { %4761 = vmatpush1.bf16.msra.mxu1 %v9587_v3  ;;  %v9640_v3 = vld [vmem:[%s14969_s1 + $0xac4] ss:$8 sps:$4 sm:$0xff]  }
 0x1af   :  { %4762 = vmatprep.subr.bf16.mxu1 %v9595_v45  ;;  %v9638_v45 = vld [vmem:[%s14969_s1 + $0xac0] ss:$8 sps:$4 sm:$0xff]  }
 0x1b0   :  { %4722 = vmatpush1.bf16.msra.mxu0 %v9590_v11  ;;  %v9646_v11 = vld [vmem:[%s14969_s1 + $0xab4] ss:$8 sps:$4 sm:$0xff]  }
 0x1b1   :  { %4723 = vmatprep.subr.bf16.mxu0 %v9598_v47  ;;  %v9649_v47 = vld [vmem:[%s14969_s1 + $0xbb4] ss:$8 sps:$4 sm:$0xff]  }
 0x1b2   :  { %4763 = vmatpush1.bf16.msra.mxu1 %v9593_v16  ;;  %v9644_v16 = vld [vmem:[%s14969_s1 + $0xab0] ss:$8 sps:$4 sm:$0xff]  }
 0x1b3   :  { %4764 = vmatprep.subr.bf16.mxu1 %v9601_v57  ;;  %v9652_v57 = vld [vmem:[%s14969_s1 + $0xaa4] ss:$8 sps:$4 sm:$0xff]  }
 0x1b4   :  { %4724 = vmatpush1.bf16.msra.mxu0 %v9596_v18  ;;  %v9647_v18 = vld [vmem:[%s14969_s1 + $0xbb0] ss:$8 sps:$4 sm:$0xff]  }
 0x1b5   :  { %4725 = vmatprep.subr.bf16.mxu0 %v9604_v4  ;;  %v9655_v4 = vld [vmem:[%s14969_s1 + $0xba4] ss:$8 sps:$4 sm:$0xff]  }
 0x1b6   :  { %4765 = vmatpush1.bf16.msra.mxu1 %v9599_v20  ;;  %v9650_v20 = vld [vmem:[%s14969_s1 + $0xaa0] ss:$8 sps:$4 sm:$0xff]  }
 0x1b7   :  { %4766 = vmatprep.subr.bf16.mxu1 %v9607_v22  ;;  %v9658_v22 = vld [vmem:[%s14969_s1 + $0xa94] ss:$8 sps:$4 sm:$0xff]  }
 0x1b8   :  { %4726 = vmatpush1.bf16.msra.mxu0 %v9602_v23  ;;  %v12432_v23 = vld [vmem:[%s14969_s1 + $0xba0] ss:$8 sps:$4 sm:$0xff]  }
 0x1b9   :  { %4727 = vmatprep.subr.bf16.mxu0 %v9610_v27  ;;  %v12437_v27 = vld [vmem:[%s14969_s1 + $0xb94] ss:$8 sps:$4 sm:$0xff]  }
 0x1ba   :  { %4767 = vmatpush1.bf16.msra.mxu1 %v9605_v28  ;;  %v12442_v28 = vld [vmem:[%s14969_s1 + $0xa90] ss:$8 sps:$4 sm:$0xff]  }
 0x1bb   :  { %4768 = vmatprep.subr.bf16.mxu1 %v9613_v31 }
 0x1bc   :  { %4728 = vmatpush1.bf16.msra.mxu0 %v9608_v32 }
 0x1bd   :  { %4729 = vmatprep.subr.bf16.mxu0 %v9616_v33 }
 0x1be   :  { %4769 = vmatpush1.bf16.msra.mxu1 %v9611_v37 }
 0x1bf   :  { %4770 = vmatprep.subr.bf16.mxu1 %v9619_v1 }
 0x1c0   :  { %4730 = vmatpush1.bf16.msra.mxu0 %v9614_v40 }
 0x1c1   :  { %4731 = vmatprep.subr.bf16.mxu0 %v9622_v42 }
 0x1c2   :  { %4771 = vmatpush1.bf16.msra.mxu1 %v9617_v43 }
 0x1c3   :  { %4772 = vmatprep.subr.bf16.mxu1 %v9625_v24 }
 0x1c4   :  { %4732 = vmatpush2.bf16.msra.mxu0 %v9620_v50 }
 0x1c5   :  { %4733 = vmatprep.subr.bf16.mxu0 %v9628_v30 }
 0x1c6   :  { %4773 = vmatpush2.bf16.msra.mxu1 %v9623_v51 }
 0x1c7   :  { %4774 = vmatprep.subr.bf16.mxu1 %v9631_v52 }
 0x1c8   :  { %4734 = vmatpush2.bf16.msra.mxu0 %v9626_v59 }
 0x1c9   :  { %4735 = vmatprep.subr.bf16.mxu0 %v9634_v7 }
 0x1ca   :  { %4775 = vmatpush2.bf16.msra.mxu1 %v9629_v60 }
 0x1cb   :  { %4776 = vmatprep.subr.bf16.mxu1 %v9637_v61 }
 0x1cc   :  { %4736 = vmatpush2.bf16.msra.mxu0 %v9632_v39 }
 0x1cd   :  { %4737 = vmatprep.subr.bf16.mxu0 %v9640_v3 }
 0x1ce   :  { %4777 = vmatpush2.bf16.msra.mxu1 %v9635_v12 }
 0x1cf   :  { %4778 = vmatprep.subr.bf16.mxu1 %v9643_v21 }
 0x1d0   :  { %4738 = vmatpush2.bf16.msra.mxu0 %v9638_v45 }
 0x1d1   :  { %4739 = vmatprep.subr.bf16.mxu0 %v9646_v11 }
 0x1d2   :  { %4779 = vmatpush2.bf16.msra.mxu1 %v9641_v13 }
 0x1d3   :  { %4780 = vmatprep.subr.bf16.mxu1 %v9649_v47 }
 0x1d4   :  { %4740 = vmatpush2.bf16.msra.mxu0 %v9644_v16 }
 0x1d5   :  { %4741 = vmatprep.subr.bf16.mxu0 %v9652_v57 }
 0x1d6   :  { %4781 = vmatpush2.bf16.msra.mxu1 %v9647_v18 }
 0x1d7   :  { %4782 = vmatprep.subr.bf16.mxu1 %v9655_v4 }
 0x1d8   :  { %4742 = vmatpush2.bf16.msra.mxu0 %v9650_v20 }
 0x1d9   :  { %16 = vsyncpa [#allocation5], 0  ;;  %4743 = vmatprep.subr.bf16.mxu0 %v9658_v22  ;;  %v12447_v31 = vld [vmem:[%s14969_s1 + $0xa84] ss:$8 sps:$4 sm:$0xff]   ;;  %v12453_v32 = vld [vmem:[%s14969_s1 + $0xb90] ss:$8 sps:$4 sm:$0xff]   ;;  %v1613_v40 = vpack.c.bf16 %v12233_v36, %v12233_v36  ;;  %v1615_v42 = vpack.c.bf16 %v12242_v17, %v12242_v17 }
 0x1da   :  { %4783 = vmatpush2.bf16.msra.mxu1 %v12432_v23  ;;  %v12459_v33 = vld [vmem:[%s14969_s1 + $0xb84] ss:$8 sps:$4 sm:$0xff]   ;;  %v12465_v37 = vld [vmem:[%s14969_s1 + $0xa80] ss:$8 sps:$4 sm:$0xff]   ;;  %v10249_v43 = vld [vmem:[%s14969_s1 + $0x74] ss:$8 sps:$4 sm:$0xff]  }
 0x1db   :  { %4784 = vmatprep.subr.bf16.mxu1 %v12437_v27  ;;  %v12472_v1 = vld [vmem:[%s14969_s1 + $0xb80] ss:$8 sps:$4 sm:$0xff]   ;;  %v10250_v50 = vld [vmem:[%s14969_s1 + $0x174] ss:$8 sps:$4 sm:$0xff]   ;;  %v10251_v17 = vld [vmem:[%s14969_s1 + $0x70] ss:$8 sps:$4 sm:$0xff]  }
 0x1dc   :  { %4744 = vmatpush2.bf16.msra.mxu0 %v12442_v28  ;;  %v10252_v52 = vld [vmem:[%s14969_s1 + $0x64] ss:$8 sps:$4 sm:$0xff]   ;;  %v10255_v12 = vld [vmem:[%s14969_s1 + $0x60] ss:$8 sps:$4 sm:$0xff]   ;;  %v10258_v47 = vld [vmem:[%s14969_s1 + $0x154] ss:$8 sps:$4 sm:$0xff]  }
 0x1dd   :  { %4745 = vmatprep.subr.bf16.mxu0 %v12447_v31  ;;  %v10254_v39 = vld [vmem:[%s14969_s1 + $0x164] ss:$8 sps:$4 sm:$0xff]   ;;  %v10257_v11 = vld [vmem:[%s14969_s1 + $0x160] ss:$8 sps:$4 sm:$0xff]   ;;  %v10259_v16 = vld [vmem:[%s14969_s1 + $0x50] ss:$8 sps:$4 sm:$0xff]  }
 0x1de   :  { %4785 = vmatpush2.bf16.msra.mxu1 %v12453_v32  ;;  %v10260_v57 = vld [vmem:[%s14969_s1 + $0x44] ss:$8 sps:$4 sm:$0xff]   ;;  %v10261_v18 = vld [vmem:[%s14969_s1 + $0x150] ss:$8 sps:$4 sm:$0xff]   ;;  %v10263_v20 = vld [vmem:[%s14969_s1 + $0x40] ss:$8 sps:$4 sm:$0xff]  }
 0x1df   :  { %4786 = vmatprep.subr.bf16.mxu1 %v12459_v33  ;;  %v10262_v4 = vld [vmem:[%s14969_s1 + $0x144] ss:$8 sps:$4 sm:$0xff]   ;;  %v10264_v22 = vld [vmem:[%s14969_s1 + $0x34] ss:$8 sps:$4 sm:$0xff]   ;;  %vm7728_vm0 = vcmask 1041408   ;;  %vm7729_vm1 = vcmask 125954  }
 0x1e0   :  { %4746 = vmatpush2.bf16.msra.mxu0 %v12465_v37  ;;  %vm7730_vm2 = vmor %vm7729_vm1, %vm7728_vm0  ;;  %s10692_s26 = smov 32   ;;  %s10693_s27 = smov 104   ;;  %vm7766_vm3 = vcmask 850944   ;;  %vm7817_vm4 = vcmask 261120   ;;  %vm7863_vm5 = vcmask 64512  }
 0x1e1   :  { %4797 = vmatprep.subr.bf16.mxu0 %v10249_v43  ;;  %v10267_v43 = vld [vmem:[%s14969_s1 + $0x30] ss:$8 sps:$4 sm:$0xff]   ;;  %s10694_s28 = smov 48   ;;  %s10695_s4 = smov 96  }
 0x1e2   :  { %4787 = vmatpush2.bf16.msra.mxu1 %v12472_v1  ;;  %s10696_s29 = smov 72   ;;  %s10697_s30 = smov 120  }
 0x1e3   :  { %v4503_v24 = vpop.f32.mrf.mxu0  ;;  %4748 = vmatmul.mubr.bf16.vlgmr.msra.gmra.mxu0 %v1613_v40  ;;  %4838 = vmatprep.subr.bf16.mxu1 %v10250_v50  ;;  %v10265_v40 = vld [vmem:[%s14969_s1 + $0x140] ss:$8 sps:$4 sm:$0xff]   ;;  %v10269_v50 = vld [vmem:[%s14969_s1 + $0x130] ss:$8 sps:$4 sm:$0xff]   ;;  %s10698_s10 = smov 24   ;;  %s10699_s11 = smov 8  }
 0x1e4   :  { %v4504_v36 = vadd.f32 %v4503_v24, %v12286_v55  ;;  %4798 = vmatpush1.bf16.msra.mxu0 %v10251_v17  ;;  %4829 = vmatprep.mubr.bf16.mxu0 %v11197_v48  ;;  %v10253_v55 = vld [vmem:[%s14969_s1 + $0x170] ss:$8 sps:$4 sm:$0xff]   ;;  %v10268_v24 = vld [vmem:[%s14969_s1 + $0x24] ss:$8 sps:$4 sm:$0xff]   ;;  %v10271_v17 = vld [vmem:[%s14969_s1 + $0x20] ss:$8 sps:$4 sm:$0xff]  }
 0x1e5   :  { %v4544_v30 = vpop.f32.mrf.mxu1  ;;  %4789 = vmatmul.mubr.bf16.vlgmr.msra.gmra.mxu1 %v1615_v42  ;;  %v4505_v51 = vpop.f32.mrf.mxu0  ;;  %4799 = vmatprep.subr.bf16.mxu0 %v10252_v52  ;;  %v10266_v42 = vld [vmem:[%s14969_s1 + $0x134] ss:$8 sps:$4 sm:$0xff]   ;;  %s10700_s6 = smov 56   ;;  %s10701_s12 = smov [#allocation2]  }
 0x1e6   :  { %v12495_v59 = vadd.f32 %v4544_v30, %v4504_v36  ;;  %4839 = vmatpush1.bf16.msra.mxu1 %v10253_v55  ;;  %v4506_v7 = vadd.f32 %v4505_v51, %v12295_v35  ;;  %4870 = vmatprep.mubr.bf16.mxu1 %v11208_v53  ;;  %v10256_v35 = vld [vmem:[%s14969_s1 + $0x54] ss:$8 sps:$4 sm:$0xff]   ;;  %v10270_v36 = vld [vmem:[%s14969_s1 + $0x124] ss:$8 sps:$4 sm:$0xff]   ;;  %v10273_v51 = vld [vmem:[%s14969_s1 + $0x120] ss:$8 sps:$4 sm:$0xff]  }
 0x1e7   :  { %v4546_v60 = vpop.f32.mrf.mxu1  ;;  %v4507_v61 = vpop.f32.mrf.mxu0  ;;  %4840 = vmatprep.subr.bf16.mxu1 %v10254_v39  ;;  %v10272_v30 = vld [vmem:[%s14969_s1 + $0x14] ss:$8 sps:$4 sm:$0xff]   ;;  %v10275_v55 = vld [vmem:[%s14969_s1 + $0x10] ss:$8 sps:$4 sm:$0xff]   ;;  %v10279_v39 = vld [vmem:[%s14969_s1] ss:$8 sps:$4 sm:$0xff]  }
 0x1e8   :  { %v12505_v3 = vadd.f32 %v4546_v60, %v4506_v7  ;;  %4800 = vmatpush1.bf16.msra.mxu0 %v10255_v12  ;;  %v10274_v52 = vld [vmem:[%s14969_s1 + $0x114] ss:$8 sps:$4 sm:$0xff]   ;;  %v10276_v7 = vld [vmem:[%s14969_s1 + $0x4] ss:$8 sps:$4 sm:$0xff]   ;;  %v10277_v60 = vld [vmem:[%s14969_s1 + $0x110] ss:$8 sps:$4 sm:$0xff]  }
 0x1e9   :  { %v4548_v21 = vpop.f32.mrf.mxu1  ;;  %v4508_v45 = vpop.f32.mrf.mxu0  ;;  %4801 = vmatprep.subr.bf16.mxu0 %v10256_v35  ;;  %v10278_v61 = vld [vmem:[%s14969_s1 + $0x104] ss:$8 sps:$4 sm:$0xff]   ;;  %v10280_v12 = vld [vmem:[%s14969_s1 + $0xf4] ss:$8 sps:$4 sm:$0xff]   ;;  %v10283_v35 = vld [vmem:[%s14969_s1 + $0xf0] ss:$8 sps:$4 sm:$0xff]  }
 0x1ea   :  { %4841 = vmatpush1.bf16.msra.mxu1 %v10257_v11  ;;  %v10281_v21 = vld [vmem:[%s14969_s1 + $0x100] ss:$8 sps:$4 sm:$0xff]   ;;  %v10282_v45 = vld [vmem:[%s14969_s1 + $0x1f4] ss:$8 sps:$4 sm:$0xff]   ;;  %v10284_v11 = vld [vmem:[%s14969_s1 + $0xe4] ss:$8 sps:$4 sm:$0xff]  }
 0x1eb   :  { %v4549_v13 = vpop.f32.mrf.mxu1  ;;  %4842 = vmatprep.subr.bf16.mxu1 %v10258_v47  ;;  %v10286_v47 = vld [vmem:[%s14969_s1 + $0x1e4] ss:$8 sps:$4 sm:$0xff]   ;;  %s7941_s13 = sshll.u32 %s10701_s12, 4  ;;  %s7942_s13 = int_to_ptr.vmem [resolvable:$true] %s7941_s13 }
 0x1ec   :  { %4802 = vmatpush1.bf16.msra.mxu0 %v10259_v16  ;;  %v10285_v13 = vld [vmem:[%s14969_s1 + $0x1f0] ss:$8 sps:$4 sm:$0xff]   ;;  %v10287_v16 = vld [vmem:[%s14969_s1 + $0xe0] ss:$8 sps:$4 sm:$0xff]   ;;  %s10625_s14 = scalar_lea.vmem %s7942_s13, 64  ;;  %p10630_p1 = scmp.lt.s32.totalorder %s7942_s13, %s7942_s13 }
 0x1ed   :  { %4803 = vmatprep.subr.bf16.mxu0 %v10260_v57  ;;  %v10288_v57 = vld [vmem:[%s14969_s1 + $0xd4] ss:$8 sps:$4 sm:$0xff]   ;;  %p10626_p0 = scmp.ne.s32.totalorder %s7942_s13, %s10625_s14  ;;  %p10631_p2 = scmp.lt.s32.totalorder %s10625_s14, %s10625_s14 }
 0x1ee   :  { %4843 = vmatpush1.bf16.msra.mxu1 %v10261_v18  ;;  %v10289_v18 = vld [vmem:[%s14969_s1 + $0x1e0] ss:$8 sps:$4 sm:$0xff]  }
 0x1ef   :  { %4844 = vmatprep.subr.bf16.mxu1 %v10262_v4  ;;  %v10290_v4 = vld [vmem:[%s14969_s1 + $0x1d4] ss:$8 sps:$4 sm:$0xff]   ;;  %p10632_p3 = por %p10631_p2, %p10630_p1 }
 0x1f0   :  { %4804 = vmatpush1.bf16.msra.mxu0 %v10263_v20  ;;  %v10291_v20 = vld [vmem:[%s14969_s1 + $0xd0] ss:$8 sps:$4 sm:$0xff]  }
 0x1f1   :  { %4805 = vmatprep.subr.bf16.mxu0 %v10264_v22  ;;  %v10292_v22 = vld [vmem:[%s14969_s1 + $0xc4] ss:$8 sps:$4 sm:$0xff]   ;;  %p10633_p4 = pnand %p10632_p3, %p10626_p0 }
 0x1f2   :  { %4845 = vmatpush1.bf16.msra.mxu1 %v10265_v40  ;;  %v10293_v40 = vld [vmem:[%s14969_s1 + $0x1d0] ss:$8 sps:$4 sm:$0xff]  }
 0x1f3   :  { %4846 = vmatprep.subr.bf16.mxu1 %v10266_v42  ;;  %v10294_v42 = vld [vmem:[%s14969_s1 + $0x1c4] ss:$8 sps:$4 sm:$0xff]  }
 0x1f4   :  { %4806 = vmatpush1.bf16.msra.mxu0 %v10267_v43  ;;  %v10295_v43 = vld [vmem:[%s14969_s1 + $0xc0] ss:$8 sps:$4 sm:$0xff]  }
 0x1f5   :  { %4807 = vmatprep.subr.bf16.mxu0 %v10268_v24  ;;  %v10296_v24 = vld [vmem:[%s14969_s1 + $0xb4] ss:$8 sps:$4 sm:$0xff]  }
 0x1f6   :  { %4847 = vmatpush1.bf16.msra.mxu1 %v10269_v50  ;;  %v10297_v50 = vld [vmem:[%s14969_s1 + $0x1c0] ss:$8 sps:$4 sm:$0xff]  }
 0x1f7   :  { %4848 = vmatprep.subr.bf16.mxu1 %v10270_v36  ;;  %v10298_v36 = vld [vmem:[%s14969_s1 + $0x1b4] ss:$8 sps:$4 sm:$0xff]  }
 0x1f8   :  { %4808 = vmatpush1.bf16.msra.mxu0 %v10271_v17  ;;  %v10299_v17 = vld [vmem:[%s14969_s1 + $0xb0] ss:$8 sps:$4 sm:$0xff]  }
 0x1f9   :  { %4809 = vmatprep.subr.bf16.mxu0 %v10272_v30  ;;  %v10300_v30 = vld [vmem:[%s14969_s1 + $0xa4] ss:$8 sps:$4 sm:$0xff]  }
 0x1fa   :  { %4849 = vmatpush1.bf16.msra.mxu1 %v10273_v51  ;;  %v10301_v51 = vld [vmem:[%s14969_s1 + $0x1b0] ss:$8 sps:$4 sm:$0xff]  }
 0x1fb   :  { %4850 = vmatprep.subr.bf16.mxu1 %v10274_v52  ;;  %v10302_v52 = vld [vmem:[%s14969_s1 + $0x1a4] ss:$8 sps:$4 sm:$0xff]  }
 0x1fc   :  { %4810 = vmatpush1.bf16.msra.mxu0 %v10275_v55  ;;  %v10303_v55 = vld [vmem:[%s14969_s1 + $0xa0] ss:$8 sps:$4 sm:$0xff]  }
 0x1fd   :  { %4811 = vmatprep.subr.bf16.mxu0 %v10276_v7  ;;  %v10304_v7 = vld [vmem:[%s14969_s1 + $0x94] ss:$8 sps:$4 sm:$0xff]  }
 0x1fe   :  { %4851 = vmatpush1.bf16.msra.mxu1 %v10277_v60  ;;  %v10305_v60 = vld [vmem:[%s14969_s1 + $0x1a0] ss:$8 sps:$4 sm:$0xff]  }
 0x1ff   :  { %4852 = vmatprep.subr.bf16.mxu1 %v10278_v61  ;;  %v10306_v61 = vld [vmem:[%s14969_s1 + $0x194] ss:$8 sps:$4 sm:$0xff]  }
 0x200   :  { %4812 = vmatpush1.bf16.msra.mxu0 %v10279_v39  ;;  %v10307_v39 = vld [vmem:[%s14969_s1 + $0x90] ss:$8 sps:$4 sm:$0xff]  }
 0x201   :  { %4813 = vmatprep.subr.bf16.mxu0 %v10280_v12  ;;  %v10308_v12 = vld [vmem:[%s14969_s1 + $0x84] ss:$8 sps:$4 sm:$0xff]  }
 0x202   :  { %4853 = vmatpush1.bf16.msra.mxu1 %v10281_v21  ;;  %v10309_v21 = vld [vmem:[%s14969_s1 + $0x190] ss:$8 sps:$4 sm:$0xff]  }
 0x203   :  { %4854 = vmatprep.subr.bf16.mxu1 %v10282_v45  ;;  %v10310_v45 = vld [vmem:[%s14969_s1 + $0x184] ss:$8 sps:$4 sm:$0xff]  }
 0x204   :  { %4814 = vmatpush2.bf16.msra.mxu0 %v10283_v35  ;;  %v10311_v35 = vld [vmem:[%s14969_s1 + $0x80] ss:$8 sps:$4 sm:$0xff]  }
 0x205   :  { %4815 = vmatprep.subr.bf16.mxu0 %v10284_v11  ;;  %v10312_v11 = vld [vmem:[%s14969_s1 + $0x274] ss:$8 sps:$4 sm:$0xff]  }
 0x206   :  { %4855 = vmatpush2.bf16.msra.mxu1 %v10285_v13  ;;  %v10313_v13 = vld [vmem:[%s14969_s1 + $0x180] ss:$8 sps:$4 sm:$0xff]  }
 0x207   :  { %4856 = vmatprep.subr.bf16.mxu1 %v10286_v47 }
 0x208   :  { %4816 = vmatpush2.bf16.msra.mxu0 %v10287_v16  ;;  %v10314_v16 = vld [vmem:[%s14969_s1 + $0x374] ss:$8 sps:$4 sm:$0xff]  }
 0x209   :  { %4817 = vmatprep.subr.bf16.mxu0 %v10288_v57 }
 0x20a   :  { %4857 = vmatpush2.bf16.msra.mxu1 %v10289_v18  ;;  %v10315_v18 = vld [vmem:[%s14969_s1 + $0x270] ss:$8 sps:$4 sm:$0xff]  }
 0x20b   :  { %4858 = vmatprep.subr.bf16.mxu1 %v10290_v4 }
 0x20c   :  { %4818 = vmatpush2.bf16.msra.mxu0 %v10291_v20 }
 0x20d   :  { %4819 = vmatprep.subr.bf16.mxu0 %v10292_v22  ;;  %v10316_v22 = vld [vmem:[%s14969_s1 + $0x264] ss:$8 sps:$4 sm:$0xff]  }
 0x20e   :  { %4859 = vmatpush2.bf16.msra.mxu1 %v10293_v40 }
 0x20f   :  { %4860 = vmatprep.subr.bf16.mxu1 %v10294_v42 }
 0x210   :  { %4820 = vmatpush2.bf16.msra.mxu0 %v10295_v43 }
 0x211   :  { %4821 = vmatprep.subr.bf16.mxu0 %v10296_v24 }
 0x212   :  { %4861 = vmatpush2.bf16.msra.mxu1 %v10297_v50  ;;  %v10318_v50 = vld [vmem:[%s14969_s1 + $0x364] ss:$8 sps:$4 sm:$0xff]  }
 0x213   :  { %4862 = vmatprep.subr.bf16.mxu1 %v10298_v36 }
 0x214   :  { %4822 = vmatpush2.bf16.msra.mxu0 %v10299_v17  ;;  %v10319_v17 = vld [vmem:[%s14969_s1 + $0x260] ss:$8 sps:$4 sm:$0xff]  }
 0x215   :  { %4823 = vmatprep.subr.bf16.mxu0 %v10300_v30 }
 0x216   :  { %4863 = vmatpush2.bf16.msra.mxu1 %v10301_v51 }
 0x217   :  { %4864 = vmatprep.subr.bf16.mxu1 %v10302_v52  ;;  %v10321_v52 = vld [vmem:[%s14969_s1 + $0x360] ss:$8 sps:$4 sm:$0xff]  }
 0x218   :  { %4824 = vmatpush2.bf16.msra.mxu0 %v10303_v55 }
 0x219   :  { %4825 = vmatprep.subr.bf16.mxu0 %v10304_v7  ;;  %v10322_v7 = vld [vmem:[%s14969_s1 + $0x354] ss:$8 sps:$4 sm:$0xff]  }
 0x21a   :  { %4865 = vmatpush2.bf16.msra.mxu1 %v10305_v60  ;;  %v10323_v60 = vld [vmem:[%s14969_s1 + $0x250] ss:$8 sps:$4 sm:$0xff]  }
 0x21b   :  { %4866 = vmatprep.subr.bf16.mxu1 %v10306_v61  ;;  %v10324_v61 = vld [vmem:[%s14969_s1 + $0x244] ss:$8 sps:$4 sm:$0xff]  }
 0x21c   :  { %4826 = vmatpush2.bf16.msra.mxu0 %v10307_v39  ;;  %v10325_v39 = vld [vmem:[%s14969_s1 + $0x350] ss:$8 sps:$4 sm:$0xff]  }
 0x21d   :  { %4827 = vmatprep.subr.bf16.mxu0 %v10308_v12  ;;  %v10326_v12 = vld [vmem:[%s14969_s1 + $0x344] ss:$8 sps:$4 sm:$0xff]  }
 0x21e   :  { %4867 = vmatpush2.bf16.msra.mxu1 %v10309_v21  ;;  %v10327_v21 = vld [vmem:[%s14969_s1 + $0x240] ss:$8 sps:$4 sm:$0xff]  }
 0x21f   :  { %4868 = vmatprep.subr.bf16.mxu1 %v10310_v45  ;;  %v10328_v45 = vld [vmem:[%s14969_s1 + $0x234] ss:$8 sps:$4 sm:$0xff]  }
 0x220   :  { %4828 = vmatpush2.bf16.msra.mxu0 %v10311_v35  ;;  %v10329_v35 = vld [vmem:[%s14969_s1 + $0x340] ss:$8 sps:$4 sm:$0xff]  }
 0x221   :  { %4879 = vmatprep.subr.bf16.mxu0 %v10312_v11  ;;  %v10330_v11 = vld [vmem:[%s14969_s1 + $0x334] ss:$8 sps:$4 sm:$0xff]  }
 0x222   :  { %4869 = vmatpush2.bf16.msra.mxu1 %v10313_v13  ;;  %v10331_v13 = vld [vmem:[%s14969_s1 + $0x230] ss:$8 sps:$4 sm:$0xff]  }
 0x223   :  { %v4585_v47 = vpop.f32.mrf.mxu0  ;;  %4830 = vmatmul.mubr.bf16.vlgmr.msra.gmra.mxu0 %v11189_v44  ;;  %4920 = vmatprep.subr.bf16.mxu1 %v10314_v16  ;;  %v10333_v16 = vld [vmem:[%s14969_s1 + $0x330] ss:$8 sps:$4 sm:$0xff]  }
 0x224   :  { %v4586_v57 = vadd.f32 %v4585_v47, %v12495_v59  ;;  %4880 = vmatpush1.bf16.msra.mxu0 %v10315_v18  ;;  %4911 = vmatprep.mubr.bf16.mxu0 %v11347_v41  ;;  %v10317_v59 = vld [vmem:[%s14969_s1 + $0x370] ss:$8 sps:$4 sm:$0xff]   ;;  %v10332_v47 = vld [vmem:[%s14969_s1 + $0x224] ss:$8 sps:$4 sm:$0xff]   ;;  %v10335_v18 = vld [vmem:[%s14969_s1 + $0x220] ss:$8 sps:$4 sm:$0xff]  }
 0x225   :  { %v4626_v4 = vpop.f32.mrf.mxu1  ;;  %4871 = vmatmul.mubr.bf16.vlgmr.msra.gmra.mxu1 %v11199_v49  ;;  %v4587_v20 = vpop.f32.mrf.mxu0  ;;  %4881 = vmatprep.subr.bf16.mxu0 %v10316_v22  ;;  %v10338_v22 = vld [vmem:[%s14969_s1 + $0x314] ss:$8 sps:$4 sm:$0xff]  }
 0x226   :  { %v12697_v40 = vadd.f32 %v4626_v4, %v4586_v57  ;;  %4921 = vmatpush1.bf16.msra.mxu1 %v10317_v59  ;;  %v4588_v42 = vadd.f32 %v4587_v20, %v12505_v3  ;;  %4952 = vmatprep.mubr.bf16.mxu1 %v11358_v2  ;;  %v10320_v3 = vld [vmem:[%s14969_s1 + $0x254] ss:$8 sps:$4 sm:$0xff]   ;;  %v10334_v57 = vld [vmem:[%s14969_s1 + $0x324] ss:$8 sps:$4 sm:$0xff]   ;;  %v10337_v20 = vld [vmem:[%s14969_s1 + $0x320] ss:$8 sps:$4 sm:$0xff]  }
 0x227   :  { %v4628_v43 = vpop.f32.mrf.mxu1  ;;  %v4589_v24 = vpop.f32.mrf.mxu0  ;;  %4922 = vmatprep.subr.bf16.mxu1 %v10318_v50  ;;  %v10336_v4 = vld [vmem:[%s14969_s1 + $0x214] ss:$8 sps:$4 sm:$0xff]   ;;  %v10339_v59 = vld [vmem:[%s14969_s1 + $0x210] ss:$8 sps:$4 sm:$0xff]   ;;  %v10343_v50 = vld [vmem:[%s14969_s1 + $0x200] ss:$8 sps:$4 sm:$0xff]  }
 0x228   :  { %v12707_v36 = vadd.f32 %v4628_v43, %v4588_v42  ;;  %4882 = vmatpush1.bf16.msra.mxu0 %v10319_v17  ;;  %v10340_v42 = vld [vmem:[%s14969_s1 + $0x204] ss:$8 sps:$4 sm:$0xff]   ;;  %v10341_v43 = vld [vmem:[%s14969_s1 + $0x310] ss:$8 sps:$4 sm:$0xff]   ;;  %v10344_v17 = vld [vmem:[%s14969_s1 + $0x2f4] ss:$8 sps:$4 sm:$0xff]  }
 0x229   :  { %v4630_v30 = vpop.f32.mrf.mxu1  ;;  %v4590_v51 = vpop.f32.mrf.mxu0  ;;  %4883 = vmatprep.subr.bf16.mxu0 %v10320_v3  ;;  %v10342_v24 = vld [vmem:[%s14969_s1 + $0x304] ss:$8 sps:$4 sm:$0xff]   ;;  %v10347_v3 = vld [vmem:[%s14969_s1 + $0x2f0] ss:$8 sps:$4 sm:$0xff]  }
 0x22a   :  { %4923 = vmatpush1.bf16.msra.mxu1 %v10321_v52  ;;  %v10345_v30 = vld [vmem:[%s14969_s1 + $0x300] ss:$8 sps:$4 sm:$0xff]   ;;  %v10346_v51 = vld [vmem:[%s14969_s1 + $0x3f4] ss:$8 sps:$4 sm:$0xff]   ;;  %v10348_v52 = vld [vmem:[%s14969_s1 + $0x2e4] ss:$8 sps:$4 sm:$0xff]  }
 0x22b   :  { %v4631_v55 = vpop.f32.mrf.mxu1  ;;  %4924 = vmatprep.subr.bf16.mxu1 %v10322_v7  ;;  %v10350_v7 = vld [vmem:[%s14969_s1 + $0x3e4] ss:$8 sps:$4 sm:$0xff]  }
 0x22c   :  { %4884 = vmatpush1.bf16.msra.mxu0 %v10323_v60  ;;  %v10349_v55 = vld [vmem:[%s14969_s1 + $0x3f0] ss:$8 sps:$4 sm:$0xff]   ;;  %v10351_v60 = vld [vmem:[%s14969_s1 + $0x2e0] ss:$8 sps:$4 sm:$0xff]  }
 0x22d   :  { %4885 = vmatprep.subr.bf16.mxu0 %v10324_v61  ;;  %v10352_v61 = vld [vmem:[%s14969_s1 + $0x2d4] ss:$8 sps:$4 sm:$0xff]  }
 0x22e   :  { %4925 = vmatpush1.bf16.msra.mxu1 %v10325_v39  ;;  %v10353_v39 = vld [vmem:[%s14969_s1 + $0x3e0] ss:$8 sps:$4 sm:$0xff]  }
 0x22f   :  { %4926 = vmatprep.subr.bf16.mxu1 %v10326_v12  ;;  %v10354_v12 = vld [vmem:[%s14969_s1 + $0x3d4] ss:$8 sps:$4 sm:$0xff]  }
 0x230   :  { %4886 = vmatpush1.bf16.msra.mxu0 %v10327_v21  ;;  %v10355_v21 = vld [vmem:[%s14969_s1 + $0x2d0] ss:$8 sps:$4 sm:$0xff]  }
 0x231   :  { %4887 = vmatprep.subr.bf16.mxu0 %v10328_v45  ;;  %v10356_v45 = vld [vmem:[%s14969_s1 + $0x2c4] ss:$8 sps:$4 sm:$0xff]  }
 0x232   :  { %4927 = vmatpush1.bf16.msra.mxu1 %v10329_v35  ;;  %v10357_v35 = vld [vmem:[%s14969_s1 + $0x3d0] ss:$8 sps:$4 sm:$0xff]  }
 0x233   :  { %4928 = vmatprep.subr.bf16.mxu1 %v10330_v11  ;;  %v10358_v11 = vld [vmem:[%s14969_s1 + $0x3c4] ss:$8 sps:$4 sm:$0xff]  }
 0x234   :  { %4888 = vmatpush1.bf16.msra.mxu0 %v10331_v13  ;;  %v10359_v13 = vld [vmem:[%s14969_s1 + $0x2c0] ss:$8 sps:$4 sm:$0xff]  }
 0x235   :  { %4889 = vmatprep.subr.bf16.mxu0 %v10332_v47  ;;  %v10360_v47 = vld [vmem:[%s14969_s1 + $0x2b4] ss:$8 sps:$4 sm:$0xff]  }
 0x236   :  { %4929 = vmatpush1.bf16.msra.mxu1 %v10333_v16  ;;  %v10361_v16 = vld [vmem:[%s14969_s1 + $0x3c0] ss:$8 sps:$4 sm:$0xff]  }
 0x237   :  { %4930 = vmatprep.subr.bf16.mxu1 %v10334_v57  ;;  %v10362_v57 = vld [vmem:[%s14969_s1 + $0x3b4] ss:$8 sps:$4 sm:$0xff]  }
 0x238   :  { %4890 = vmatpush1.bf16.msra.mxu0 %v10335_v18  ;;  %v10363_v18 = vld [vmem:[%s14969_s1 + $0x2b0] ss:$8 sps:$4 sm:$0xff]  }
 0x239   :  { %4891 = vmatprep.subr.bf16.mxu0 %v10336_v4  ;;  %v10364_v4 = vld [vmem:[%s14969_s1 + $0x2a4] ss:$8 sps:$4 sm:$0xff]  }
 0x23a   :  { %4931 = vmatpush1.bf16.msra.mxu1 %v10337_v20  ;;  %v10365_v20 = vld [vmem:[%s14969_s1 + $0x3b0] ss:$8 sps:$4 sm:$0xff]  }
 0x23b   :  { %4932 = vmatprep.subr.bf16.mxu1 %v10338_v22  ;;  %v10366_v22 = vld [vmem:[%s14969_s1 + $0x3a4] ss:$8 sps:$4 sm:$0xff]  }
 0x23c   :  { %4892 = vmatpush1.bf16.msra.mxu0 %v10339_v59  ;;  %v10367_v59 = vld [vmem:[%s14969_s1 + $0x2a0] ss:$8 sps:$4 sm:$0xff]  }
 0x23d   :  { %4893 = vmatprep.subr.bf16.mxu0 %v10340_v42  ;;  %v10368_v42 = vld [vmem:[%s14969_s1 + $0x294] ss:$8 sps:$4 sm:$0xff]  }
 0x23e   :  { %4933 = vmatpush1.bf16.msra.mxu1 %v10341_v43  ;;  %v10369_v43 = vld [vmem:[%s14969_s1 + $0x3a0] ss:$8 sps:$4 sm:$0xff]  }
 0x23f   :  { %4934 = vmatprep.subr.bf16.mxu1 %v10342_v24  ;;  %v10370_v24 = vld [vmem:[%s14969_s1 + $0x394] ss:$8 sps:$4 sm:$0xff]  }
 0x240   :  { %4894 = vmatpush1.bf16.msra.mxu0 %v10343_v50  ;;  %v10371_v50 = vld [vmem:[%s14969_s1 + $0x290] ss:$8 sps:$4 sm:$0xff]  }
 0x241   :  { %4895 = vmatprep.subr.bf16.mxu0 %v10344_v17  ;;  %v10372_v17 = vld [vmem:[%s14969_s1 + $0x284] ss:$8 sps:$4 sm:$0xff]  }
 0x242   :  { %4935 = vmatpush1.bf16.msra.mxu1 %v10345_v30  ;;  %v10373_v30 = vld [vmem:[%s14969_s1 + $0x390] ss:$8 sps:$4 sm:$0xff]  }
 0x243   :  { %4936 = vmatprep.subr.bf16.mxu1 %v10346_v51  ;;  %v10374_v51 = vld [vmem:[%s14969_s1 + $0x384] ss:$8 sps:$4 sm:$0xff]  }
 0x244   :  { %4896 = vmatpush2.bf16.msra.mxu0 %v10347_v3  ;;  %v10375_v3 = vld [vmem:[%s14969_s1 + $0x280] ss:$8 sps:$4 sm:$0xff]  }
 0x245   :  { %4897 = vmatprep.subr.bf16.mxu0 %v10348_v52  ;;  %v10376_v52 = vld [vmem:[%s14969_s1 + $0x474] ss:$8 sps:$4 sm:$0xff]  }
 0x246   :  { %4937 = vmatpush2.bf16.msra.mxu1 %v10349_v55  ;;  %v10377_v55 = vld [vmem:[%s14969_s1 + $0x380] ss:$8 sps:$4 sm:$0xff]  }
 0x247   :  { %4938 = vmatprep.subr.bf16.mxu1 %v10350_v7 }
 0x248   :  { %4898 = vmatpush2.bf16.msra.mxu0 %v10351_v60  ;;  %v10378_v60 = vld [vmem:[%s14969_s1 + $0x574] ss:$8 sps:$4 sm:$0xff]  }
 0x249   :  { %4899 = vmatprep.subr.bf16.mxu0 %v10352_v61 }
 0x24a   :  { %4939 = vmatpush2.bf16.msra.mxu1 %v10353_v39  ;;  %v10379_v39 = vld [vmem:[%s14969_s1 + $0x470] ss:$8 sps:$4 sm:$0xff]  }
 0x24b   :  { %4940 = vmatprep.subr.bf16.mxu1 %v10354_v12 }
 0x24c   :  { %4900 = vmatpush2.bf16.msra.mxu0 %v10355_v21 }
 0x24d   :  { %4901 = vmatprep.subr.bf16.mxu0 %v10356_v45  ;;  %v10380_v45 = vld [vmem:[%s14969_s1 + $0x464] ss:$8 sps:$4 sm:$0xff]  }
 0x24e   :  { %4941 = vmatpush2.bf16.msra.mxu1 %v10357_v35 }
 0x24f   :  { %4942 = vmatprep.subr.bf16.mxu1 %v10358_v11 }
 0x250   :  { %4902 = vmatpush2.bf16.msra.mxu0 %v10359_v13 }
 0x251   :  { %4903 = vmatprep.subr.bf16.mxu0 %v10360_v47 }
 0x252   :  { %4943 = vmatpush2.bf16.msra.mxu1 %v10361_v16  ;;  %v10382_v16 = vld [vmem:[%s14969_s1 + $0x564] ss:$8 sps:$4 sm:$0xff]  }
 0x253   :  { %4944 = vmatprep.subr.bf16.mxu1 %v10362_v57 }
 0x254   :  { %4904 = vmatpush2.bf16.msra.mxu0 %v10363_v18  ;;  %v10383_v18 = vld [vmem:[%s14969_s1 + $0x460] ss:$8 sps:$4 sm:$0xff]  }
 0x255   :  { %4905 = vmatprep.subr.bf16.mxu0 %v10364_v4 }
 0x256   :  { %4945 = vmatpush2.bf16.msra.mxu1 %v10365_v20 }
 0x257   :  { %4946 = vmatprep.subr.bf16.mxu1 %v10366_v22  ;;  %v10385_v22 = vld [vmem:[%s14969_s1 + $0x560] ss:$8 sps:$4 sm:$0xff]  }
 0x258   :  { %4906 = vmatpush2.bf16.msra.mxu0 %v10367_v59 }
 0x259   :  { %4907 = vmatprep.subr.bf16.mxu0 %v10368_v42  ;;  %v10386_v42 = vld [vmem:[%s14969_s1 + $0x554] ss:$8 sps:$4 sm:$0xff]  }
 0x25a   :  { %4947 = vmatpush2.bf16.msra.mxu1 %v10369_v43  ;;  %v10387_v43 = vld [vmem:[%s14969_s1 + $0x450] ss:$8 sps:$4 sm:$0xff]  }
 0x25b   :  { %4948 = vmatprep.subr.bf16.mxu1 %v10370_v24  ;;  %v10388_v24 = vld [vmem:[%s14969_s1 + $0x444] ss:$8 sps:$4 sm:$0xff]  }
 0x25c   :  { %4908 = vmatpush2.bf16.msra.mxu0 %v10371_v50  ;;  %v10389_v50 = vld [vmem:[%s14969_s1 + $0x550] ss:$8 sps:$4 sm:$0xff]  }
 0x25d   :  { %4909 = vmatprep.subr.bf16.mxu0 %v10372_v17  ;;  %v10390_v17 = vld [vmem:[%s14969_s1 + $0x544] ss:$8 sps:$4 sm:$0xff]  }
 0x25e   :  { %4949 = vmatpush2.bf16.msra.mxu1 %v10373_v30  ;;  %v10391_v30 = vld [vmem:[%s14969_s1 + $0x440] ss:$8 sps:$4 sm:$0xff]  }
 0x25f   :  { %4950 = vmatprep.subr.bf16.mxu1 %v10374_v51  ;;  %v10392_v51 = vld [vmem:[%s14969_s1 + $0x434] ss:$8 sps:$4 sm:$0xff]  }
 0x260   :  { %4910 = vmatpush2.bf16.msra.mxu0 %v10375_v3  ;;  %v10393_v3 = vld [vmem:[%s14969_s1 + $0x540] ss:$8 sps:$4 sm:$0xff]  }
 0x261   :  { %4961 = vmatprep.subr.bf16.mxu0 %v10376_v52  ;;  %v10394_v52 = vld [vmem:[%s14969_s1 + $0x534] ss:$8 sps:$4 sm:$0xff]  }
 0x262   :  { %4951 = vmatpush2.bf16.msra.mxu1 %v10377_v55  ;;  %v10395_v55 = vld [vmem:[%s14969_s1 + $0x430] ss:$8 sps:$4 sm:$0xff]  }
 0x263   :  { %v4667_v7 = vpop.f32.mrf.mxu0  ;;  %4912 = vmatmul.mubr.bf16.vlgmr.msra.gmra.mxu0 %v11339_v58  ;;  %5002 = vmatprep.subr.bf16.mxu1 %v10378_v60  ;;  %v10397_v60 = vld [vmem:[%s14969_s1 + $0x530] ss:$8 sps:$4 sm:$0xff]  }
 0x264   :  { %v4668_v61 = vadd.f32 %v4667_v7, %v12697_v40  ;;  %4962 = vmatpush1.bf16.msra.mxu0 %v10379_v39  ;;  %4993 = vmatprep.mubr.bf16.mxu0 %v11508_v14  ;;  %v10381_v40 = vld [vmem:[%s14969_s1 + $0x570] ss:$8 sps:$4 sm:$0xff]   ;;  %v10396_v7 = vld [vmem:[%s14969_s1 + $0x424] ss:$8 sps:$4 sm:$0xff]   ;;  %v10399_v39 = vld [vmem:[%s14969_s1 + $0x420] ss:$8 sps:$4 sm:$0xff]  }
 0x265   :  { %v4708_v12 = vpop.f32.mrf.mxu1  ;;  %4953 = vmatmul.mubr.bf16.vlgmr.msra.gmra.mxu1 %v11349_v62  ;;  %v4669_v21 = vpop.f32.mrf.mxu0  ;;  %4963 = vmatprep.subr.bf16.mxu0 %v10380_v45  ;;  %v10402_v45 = vld [vmem:[%s14969_s1 + $0x514] ss:$8 sps:$4 sm:$0xff]  }
 0x266   :  { %v12899_v35 = vadd.f32 %v4708_v12, %v4668_v61  ;;  %5003 = vmatpush1.bf16.msra.mxu1 %v10381_v40  ;;  %v4670_v11 = vadd.f32 %v4669_v21, %v12707_v36  ;;  %5034 = vmatprep.mubr.bf16.mxu1 %v11519_v19  ;;  %v10384_v36 = vld [vmem:[%s14969_s1 + $0x454] ss:$8 sps:$4 sm:$0xff]   ;;  %v10398_v61 = vld [vmem:[%s14969_s1 + $0x524] ss:$8 sps:$4 sm:$0xff]   ;;  %v10401_v21 = vld [vmem:[%s14969_s1 + $0x520] ss:$8 sps:$4 sm:$0xff]  }
 0x267   :  { %v4710_v13 = vpop.f32.mrf.mxu1  ;;  %v4671_v47 = vpop.f32.mrf.mxu0  ;;  %5004 = vmatprep.subr.bf16.mxu1 %v10382_v16  ;;  %v10400_v12 = vld [vmem:[%s14969_s1 + $0x414] ss:$8 sps:$4 sm:$0xff]   ;;  %v10403_v40 = vld [vmem:[%s14969_s1 + $0x410] ss:$8 sps:$4 sm:$0xff]   ;;  %v10407_v16 = vld [vmem:[%s14969_s1 + $0x400] ss:$8 sps:$4 sm:$0xff]  }
 0x268   :  { %v12909_v57 = vadd.f32 %v4710_v13, %v4670_v11  ;;  %4964 = vmatpush1.bf16.msra.mxu0 %v10383_v18  ;;  %v10404_v11 = vld [vmem:[%s14969_s1 + $0x404] ss:$8 sps:$4 sm:$0xff]   ;;  %v10405_v13 = vld [vmem:[%s14969_s1 + $0x510] ss:$8 sps:$4 sm:$0xff]   ;;  %v10408_v18 = vld [vmem:[%s14969_s1 + $0x4f4] ss:$8 sps:$4 sm:$0xff]  }
 0x269   :  { %v4712_v4 = vpop.f32.mrf.mxu1  ;;  %v4672_v20 = vpop.f32.mrf.mxu0  ;;  %4965 = vmatprep.subr.bf16.mxu0 %v10384_v36  ;;  %v10406_v47 = vld [vmem:[%s14969_s1 + $0x504] ss:$8 sps:$4 sm:$0xff]   ;;  %v10411_v36 = vld [vmem:[%s14969_s1 + $0x4f0] ss:$8 sps:$4 sm:$0xff]  }
 0x26a   :  { %5005 = vmatpush1.bf16.msra.mxu1 %v10385_v22  ;;  %v10409_v4 = vld [vmem:[%s14969_s1 + $0x500] ss:$8 sps:$4 sm:$0xff]   ;;  %v10410_v20 = vld [vmem:[%s14969_s1 + $0x5f4] ss:$8 sps:$4 sm:$0xff]   ;;  %v10412_v22 = vld [vmem:[%s14969_s1 + $0x4e4] ss:$8 sps:$4 sm:$0xff]  }
 0x26b   :  { %v4713_v59 = vpop.f32.mrf.mxu1  ;;  %5006 = vmatprep.subr.bf16.mxu1 %v10386_v42  ;;  %v10414_v42 = vld [vmem:[%s14969_s1 + $0x5e4] ss:$8 sps:$4 sm:$0xff]  }
 0x26c   :  { %4966 = vmatpush1.bf16.msra.mxu0 %v10387_v43  ;;  %v10413_v59 = vld [vmem:[%s14969_s1 + $0x5f0] ss:$8 sps:$4 sm:$0xff]   ;;  %v10415_v43 = vld [vmem:[%s14969_s1 + $0x4e0] ss:$8 sps:$4 sm:$0xff]  }
 0x26d   :  { %4967 = vmatprep.subr.bf16.mxu0 %v10388_v24  ;;  %v10416_v24 = vld [vmem:[%s14969_s1 + $0x4d4] ss:$8 sps:$4 sm:$0xff]  }
 0x26e   :  { %5007 = vmatpush1.bf16.msra.mxu1 %v10389_v50  ;;  %v10417_v50 = vld [vmem:[%s14969_s1 + $0x5e0] ss:$8 sps:$4 sm:$0xff]  }
 0x26f   :  { %5008 = vmatprep.subr.bf16.mxu1 %v10390_v17  ;;  %v10418_v17 = vld [vmem:[%s14969_s1 + $0x5d4] ss:$8 sps:$4 sm:$0xff]  }
 0x270   :  { %4968 = vmatpush1.bf16.msra.mxu0 %v10391_v30  ;;  %v10419_v30 = vld [vmem:[%s14969_s1 + $0x4d0] ss:$8 sps:$4 sm:$0xff]  }
 0x271   :  { %4969 = vmatprep.subr.bf16.mxu0 %v10392_v51  ;;  %v10420_v51 = vld [vmem:[%s14969_s1 + $0x4c4] ss:$8 sps:$4 sm:$0xff]  }
 0x272   :  { %5009 = vmatpush1.bf16.msra.mxu1 %v10393_v3  ;;  %v10421_v3 = vld [vmem:[%s14969_s1 + $0x5d0] ss:$8 sps:$4 sm:$0xff]  }
 0x273   :  { %5010 = vmatprep.subr.bf16.mxu1 %v10394_v52  ;;  %v10422_v52 = vld [vmem:[%s14969_s1 + $0x5c4] ss:$8 sps:$4 sm:$0xff]  }
 0x274   :  { %4970 = vmatpush1.bf16.msra.mxu0 %v10395_v55  ;;  %v10423_v55 = vld [vmem:[%s14969_s1 + $0x4c0] ss:$8 sps:$4 sm:$0xff]  }
 0x275   :  { %4971 = vmatprep.subr.bf16.mxu0 %v10396_v7  ;;  %v10424_v7 = vld [vmem:[%s14969_s1 + $0x4b4] ss:$8 sps:$4 sm:$0xff]  }
 0x276   :  { %5011 = vmatpush1.bf16.msra.mxu1 %v10397_v60  ;;  %v10425_v60 = vld [vmem:[%s14969_s1 + $0x5c0] ss:$8 sps:$4 sm:$0xff]  }
 0x277   :  { %5012 = vmatprep.subr.bf16.mxu1 %v10398_v61  ;;  %v10426_v61 = vld [vmem:[%s14969_s1 + $0x5b4] ss:$8 sps:$4 sm:$0xff]  }
 0x278   :  { %4972 = vmatpush1.bf16.msra.mxu0 %v10399_v39  ;;  %v10427_v39 = vld [vmem:[%s14969_s1 + $0x4b0] ss:$8 sps:$4 sm:$0xff]  }
 0x279   :  { %4973 = vmatprep.subr.bf16.mxu0 %v10400_v12  ;;  %v10428_v12 = vld [vmem:[%s14969_s1 + $0x4a4] ss:$8 sps:$4 sm:$0xff]  }
 0x27a   :  { %5013 = vmatpush1.bf16.msra.mxu1 %v10401_v21  ;;  %v10429_v21 = vld [vmem:[%s14969_s1 + $0x5b0] ss:$8 sps:$4 sm:$0xff]  }
 0x27b   :  { %5014 = vmatprep.subr.bf16.mxu1 %v10402_v45  ;;  %v10430_v45 = vld [vmem:[%s14969_s1 + $0x5a4] ss:$8 sps:$4 sm:$0xff]  }
 0x27c   :  { %4974 = vmatpush1.bf16.msra.mxu0 %v10403_v40  ;;  %v10431_v40 = vld [vmem:[%s14969_s1 + $0x4a0] ss:$8 sps:$4 sm:$0xff]  }
 0x27d   :  { %4975 = vmatprep.subr.bf16.mxu0 %v10404_v11  ;;  %v10432_v11 = vld [vmem:[%s14969_s1 + $0x494] ss:$8 sps:$4 sm:$0xff]  }
 0x27e   :  { %5015 = vmatpush1.bf16.msra.mxu1 %v10405_v13  ;;  %v10433_v13 = vld [vmem:[%s14969_s1 + $0x5a0] ss:$8 sps:$4 sm:$0xff]  }
 0x27f   :  { %5016 = vmatprep.subr.bf16.mxu1 %v10406_v47  ;;  %v10434_v47 = vld [vmem:[%s14969_s1 + $0x594] ss:$8 sps:$4 sm:$0xff]  }
 0x280   :  { %4976 = vmatpush1.bf16.msra.mxu0 %v10407_v16  ;;  %v10435_v16 = vld [vmem:[%s14969_s1 + $0x490] ss:$8 sps:$4 sm:$0xff]  }
 0x281   :  { %4977 = vmatprep.subr.bf16.mxu0 %v10408_v18  ;;  %v10436_v18 = vld [vmem:[%s14969_s1 + $0x484] ss:$8 sps:$4 sm:$0xff]  }
 0x282   :  { %5017 = vmatpush1.bf16.msra.mxu1 %v10409_v4  ;;  %v10437_v4 = vld [vmem:[%s14969_s1 + $0x590] ss:$8 sps:$4 sm:$0xff]  }
 0x283   :  { %5018 = vmatprep.subr.bf16.mxu1 %v10410_v20  ;;  %v10438_v20 = vld [vmem:[%s14969_s1 + $0x584] ss:$8 sps:$4 sm:$0xff]  }
 0x284   :  { %4978 = vmatpush2.bf16.msra.mxu0 %v10411_v36  ;;  %v10439_v36 = vld [vmem:[%s14969_s1 + $0x480] ss:$8 sps:$4 sm:$0xff]  }
 0x285   :  { %4979 = vmatprep.subr.bf16.mxu0 %v10412_v22  ;;  %v10440_v22 = vld [vmem:[%s14969_s1 + $0x674] ss:$8 sps:$4 sm:$0xff]  }
 0x286   :  { %5019 = vmatpush2.bf16.msra.mxu1 %v10413_v59  ;;  %v10441_v59 = vld [vmem:[%s14969_s1 + $0x580] ss:$8 sps:$4 sm:$0xff]  }
 0x287   :  { %5020 = vmatprep.subr.bf16.mxu1 %v10414_v42 }
 0x288   :  { %4980 = vmatpush2.bf16.msra.mxu0 %v10415_v43  ;;  %v10442_v43 = vld [vmem:[%s14969_s1 + $0x774] ss:$8 sps:$4 sm:$0xff]  }
 0x289   :  { %4981 = vmatprep.subr.bf16.mxu0 %v10416_v24 }
 0x28a   :  { %5021 = vmatpush2.bf16.msra.mxu1 %v10417_v50  ;;  %v10443_v50 = vld [vmem:[%s14969_s1 + $0x670] ss:$8 sps:$4 sm:$0xff]  }
 0x28b   :  { %5022 = vmatprep.subr.bf16.mxu1 %v10418_v17 }
 0x28c   :  { %4982 = vmatpush2.bf16.msra.mxu0 %v10419_v30 }
 0x28d   :  { %4983 = vmatprep.subr.bf16.mxu0 %v10420_v51  ;;  %v10444_v51 = vld [vmem:[%s14969_s1 + $0x664] ss:$8 sps:$4 sm:$0xff]  }
 0x28e   :  { %5023 = vmatpush2.bf16.msra.mxu1 %v10421_v3 }
 0x28f   :  { %5024 = vmatprep.subr.bf16.mxu1 %v10422_v52 }
 0x290   :  { %4984 = vmatpush2.bf16.msra.mxu0 %v10423_v55 }
 0x291   :  { %4985 = vmatprep.subr.bf16.mxu0 %v10424_v7 }
 0x292   :  { %5025 = vmatpush2.bf16.msra.mxu1 %v10425_v60  ;;  %v10446_v60 = vld [vmem:[%s14969_s1 + $0x764] ss:$8 sps:$4 sm:$0xff]  }
 0x293   :  { %5026 = vmatprep.subr.bf16.mxu1 %v10426_v61 }
 0x294   :  { %4986 = vmatpush2.bf16.msra.mxu0 %v10427_v39  ;;  %v10447_v39 = vld [vmem:[%s14969_s1 + $0x660] ss:$8 sps:$4 sm:$0xff]  }
 0x295   :  { %4987 = vmatprep.subr.bf16.mxu0 %v10428_v12 }
 0x296   :  { %5027 = vmatpush2.bf16.msra.mxu1 %v10429_v21 }
 0x297   :  { %5028 = vmatprep.subr.bf16.mxu1 %v10430_v45  ;;  %v10449_v45 = vld [vmem:[%s14969_s1 + $0x760] ss:$8 sps:$4 sm:$0xff]  }
 0x298   :  { %4988 = vmatpush2.bf16.msra.mxu0 %v10431_v40 }
 0x299   :  { %4989 = vmatprep.subr.bf16.mxu0 %v10432_v11  ;;  %v10450_v11 = vld [vmem:[%s14969_s1 + $0x754] ss:$8 sps:$4 sm:$0xff]  }
 0x29a   :  { %5029 = vmatpush2.bf16.msra.mxu1 %v10433_v13  ;;  %v10451_v13 = vld [vmem:[%s14969_s1 + $0x650] ss:$8 sps:$4 sm:$0xff]  }
 0x29b   :  { %5030 = vmatprep.subr.bf16.mxu1 %v10434_v47  ;;  %v10452_v47 = vld [vmem:[%s14969_s1 + $0x644] ss:$8 sps:$4 sm:$0xff]  }
 0x29c   :  { %4990 = vmatpush2.bf16.msra.mxu0 %v10435_v16  ;;  %v10453_v16 = vld [vmem:[%s14969_s1 + $0x750] ss:$8 sps:$4 sm:$0xff]  }
 0x29d   :  { %4991 = vmatprep.subr.bf16.mxu0 %v10436_v18  ;;  %v10454_v18 = vld [vmem:[%s14969_s1 + $0x744] ss:$8 sps:$4 sm:$0xff]  }
 0x29e   :  { %5031 = vmatpush2.bf16.msra.mxu1 %v10437_v4  ;;  %v10455_v4 = vld [vmem:[%s14969_s1 + $0x640] ss:$8 sps:$4 sm:$0xff]  }
 0x29f   :  { %5032 = vmatprep.subr.bf16.mxu1 %v10438_v20  ;;  %v10456_v20 = vld [vmem:[%s14969_s1 + $0x634] ss:$8 sps:$4 sm:$0xff]  }
 0x2a0   :  { %4992 = vmatpush2.bf16.msra.mxu0 %v10439_v36  ;;  %v10457_v36 = vld [vmem:[%s14969_s1 + $0x740] ss:$8 sps:$4 sm:$0xff]  }
 0x2a1   :  { %5043 = vmatprep.subr.bf16.mxu0 %v10440_v22  ;;  %v10458_v22 = vld [vmem:[%s14969_s1 + $0x734] ss:$8 sps:$4 sm:$0xff]  }
 0x2a2   :  { %5033 = vmatpush2.bf16.msra.mxu1 %v10441_v59  ;;  %v10459_v59 = vld [vmem:[%s14969_s1 + $0x630] ss:$8 sps:$4 sm:$0xff]  }
 0x2a3   :  { %v4749_v42 = vpop.f32.mrf.mxu0  ;;  %4994 = vmatmul.mubr.bf16.vlgmr.msra.gmra.mxu0 %v11500_v10  ;;  %5084 = vmatprep.subr.bf16.mxu1 %v10442_v43  ;;  %v10461_v43 = vld [vmem:[%s14969_s1 + $0x730] ss:$8 sps:$4 sm:$0xff]  }
 0x2a4   :  { %v4750_v24 = vadd.f32 %v4749_v42, %v12899_v35  ;;  %5044 = vmatpush1.bf16.msra.mxu0 %v10443_v50  ;;  %5075 = vmatprep.mubr.bf16.mxu0 %v11686_v63  ;;  %v10445_v35 = vld [vmem:[%s14969_s1 + $0x770] ss:$8 sps:$4 sm:$0xff]   ;;  %v10460_v42 = vld [vmem:[%s14969_s1 + $0x624] ss:$8 sps:$4 sm:$0xff]   ;;  %v10463_v50 = vld [vmem:[%s14969_s1 + $0x620] ss:$8 sps:$4 sm:$0xff]  }
 0x2a5   :  { %v4790_v17 = vpop.f32.mrf.mxu1  ;;  %5035 = vmatmul.mubr.bf16.vlgmr.msra.gmra.mxu1 %v11510_v15  ;;  %v4751_v30 = vpop.f32.mrf.mxu0  ;;  %5045 = vmatprep.subr.bf16.mxu0 %v10444_v51  ;;  %v10466_v51 = vld [vmem:[%s14969_s1 + $0x714] ss:$8 sps:$4 sm:$0xff]  }
 0x2a6   :  { %v13101_v3 = vadd.f32 %v4790_v17, %v4750_v24  ;;  %5085 = vmatpush1.bf16.msra.mxu1 %v10445_v35  ;;  %v4752_v52 = vadd.f32 %v4751_v30, %v12909_v57  ;;  %5116 = vmatprep.mubr.bf16.mxu1 %v11697_v8  ;;  %v10448_v57 = vld [vmem:[%s14969_s1 + $0x654] ss:$8 sps:$4 sm:$0xff]   ;;  %v10462_v24 = vld [vmem:[%s14969_s1 + $0x724] ss:$8 sps:$4 sm:$0xff]   ;;  %v10465_v30 = vld [vmem:[%s14969_s1 + $0x720] ss:$8 sps:$4 sm:$0xff]  }
 0x2a7   :  { %v4792_v55 = vpop.f32.mrf.mxu1  ;;  %v4753_v7 = vpop.f32.mrf.mxu0  ;;  %5086 = vmatprep.subr.bf16.mxu1 %v10446_v60  ;;  %v10464_v17 = vld [vmem:[%s14969_s1 + $0x614] ss:$8 sps:$4 sm:$0xff]   ;;  %v10467_v35 = vld [vmem:[%s14969_s1 + $0x610] ss:$8 sps:$4 sm:$0xff]   ;;  %v10471_v60 = vld [vmem:[%s14969_s1 + $0x600] ss:$8 sps:$4 sm:$0xff]  }
 0x2a8   :  { %v13111_v61 = vadd.f32 %v4792_v55, %v4752_v52  ;;  %5046 = vmatpush1.bf16.msra.mxu0 %v10447_v39  ;;  %v10468_v52 = vld [vmem:[%s14969_s1 + $0x604] ss:$8 sps:$4 sm:$0xff]   ;;  %v10469_v55 = vld [vmem:[%s14969_s1 + $0x710] ss:$8 sps:$4 sm:$0xff]   ;;  %v10472_v39 = vld [vmem:[%s14969_s1 + $0x6f4] ss:$8 sps:$4 sm:$0xff]  }
 0x2a9   :  { %v4794_v12 = vpop.f32.mrf.mxu1  ;;  %v4754_v21 = vpop.f32.mrf.mxu0  ;;  %5047 = vmatprep.subr.bf16.mxu0 %v10448_v57  ;;  %v10470_v7 = vld [vmem:[%s14969_s1 + $0x704] ss:$8 sps:$4 sm:$0xff]   ;;  %v10475_v57 = vld [vmem:[%s14969_s1 + $0x6f0] ss:$8 sps:$4 sm:$0xff]  }
 0x2aa   :  { %5087 = vmatpush1.bf16.msra.mxu1 %v10449_v45  ;;  %v10473_v12 = vld [vmem:[%s14969_s1 + $0x700] ss:$8 sps:$4 sm:$0xff]   ;;  %v10474_v21 = vld [vmem:[%s14969_s1 + $0x7f4] ss:$8 sps:$4 sm:$0xff]   ;;  %v10476_v45 = vld [vmem:[%s14969_s1 + $0x6e4] ss:$8 sps:$4 sm:$0xff]  }
 0x2ab   :  { %v4795_v40 = vpop.f32.mrf.mxu1  ;;  %5088 = vmatprep.subr.bf16.mxu1 %v10450_v11  ;;  %v10478_v11 = vld [vmem:[%s14969_s1 + $0x7e4] ss:$8 sps:$4 sm:$0xff]  }
 0x2ac   :  { %5048 = vmatpush1.bf16.msra.mxu0 %v10451_v13  ;;  %v10477_v40 = vld [vmem:[%s14969_s1 + $0x7f0] ss:$8 sps:$4 sm:$0xff]   ;;  %v10479_v13 = vld [vmem:[%s14969_s1 + $0x6e0] ss:$8 sps:$4 sm:$0xff]  }
 0x2ad   :  { %5049 = vmatprep.subr.bf16.mxu0 %v10452_v47  ;;  %v10480_v47 = vld [vmem:[%s14969_s1 + $0x6d4] ss:$8 sps:$4 sm:$0xff]  }
 0x2ae   :  { %5089 = vmatpush1.bf16.msra.mxu1 %v10453_v16  ;;  %v10481_v16 = vld [vmem:[%s14969_s1 + $0x7e0] ss:$8 sps:$4 sm:$0xff]  }
 0x2af   :  { %5090 = vmatprep.subr.bf16.mxu1 %v10454_v18  ;;  %v10482_v18 = vld [vmem:[%s14969_s1 + $0x7d4] ss:$8 sps:$4 sm:$0xff]  }
 0x2b0   :  { %5050 = vmatpush1.bf16.msra.mxu0 %v10455_v4  ;;  %v10483_v4 = vld [vmem:[%s14969_s1 + $0x6d0] ss:$8 sps:$4 sm:$0xff]  }
 0x2b1   :  { %5051 = vmatprep.subr.bf16.mxu0 %v10456_v20  ;;  %v10484_v20 = vld [vmem:[%s14969_s1 + $0x6c4] ss:$8 sps:$4 sm:$0xff]  }
 0x2b2   :  { %5091 = vmatpush1.bf16.msra.mxu1 %v10457_v36  ;;  %v10485_v36 = vld [vmem:[%s14969_s1 + $0x7d0] ss:$8 sps:$4 sm:$0xff]  }
 0x2b3   :  { %5092 = vmatprep.subr.bf16.mxu1 %v10458_v22  ;;  %v10486_v22 = vld [vmem:[%s14969_s1 + $0x7c4] ss:$8 sps:$4 sm:$0xff]  }
 0x2b4   :  { %5052 = vmatpush1.bf16.msra.mxu0 %v10459_v59  ;;  %v10487_v59 = vld [vmem:[%s14969_s1 + $0x6c0] ss:$8 sps:$4 sm:$0xff]  }
 0x2b5   :  { %5053 = vmatprep.subr.bf16.mxu0 %v10460_v42  ;;  %v10488_v42 = vld [vmem:[%s14969_s1 + $0x6b4] ss:$8 sps:$4 sm:$0xff]  }
 0x2b6   :  { %5093 = vmatpush1.bf16.msra.mxu1 %v10461_v43  ;;  %v10489_v43 = vld [vmem:[%s14969_s1 + $0x7c0] ss:$8 sps:$4 sm:$0xff]  }
 0x2b7   :  { %5094 = vmatprep.subr.bf16.mxu1 %v10462_v24  ;;  %v10490_v24 = vld [vmem:[%s14969_s1 + $0x7b4] ss:$8 sps:$4 sm:$0xff]  }
 0x2b8   :  { %5054 = vmatpush1.bf16.msra.mxu0 %v10463_v50  ;;  %v10491_v50 = vld [vmem:[%s14969_s1 + $0x6b0] ss:$8 sps:$4 sm:$0xff]  }
 0x2b9   :  { %5055 = vmatprep.subr.bf16.mxu0 %v10464_v17  ;;  %v10492_v17 = vld [vmem:[%s14969_s1 + $0x6a4] ss:$8 sps:$4 sm:$0xff]  }
 0x2ba   :  { %5095 = vmatpush1.bf16.msra.mxu1 %v10465_v30  ;;  %v10493_v30 = vld [vmem:[%s14969_s1 + $0x7b0] ss:$8 sps:$4 sm:$0xff]  }
 0x2bb   :  { %5096 = vmatprep.subr.bf16.mxu1 %v10466_v51  ;;  %v10494_v51 = vld [vmem:[%s14969_s1 + $0x7a4] ss:$8 sps:$4 sm:$0xff]  }
 0x2bc   :  { %5056 = vmatpush1.bf16.msra.mxu0 %v10467_v35  ;;  %v10495_v35 = vld [vmem:[%s14969_s1 + $0x6a0] ss:$8 sps:$4 sm:$0xff]  }
 0x2bd   :  { %5057 = vmatprep.subr.bf16.mxu0 %v10468_v52  ;;  %v10496_v52 = vld [vmem:[%s14969_s1 + $0x694] ss:$8 sps:$4 sm:$0xff]  }
 0x2be   :  { %5097 = vmatpush1.bf16.msra.mxu1 %v10469_v55  ;;  %v10497_v55 = vld [vmem:[%s14969_s1 + $0x7a0] ss:$8 sps:$4 sm:$0xff]  }
 0x2bf   :  { %5098 = vmatprep.subr.bf16.mxu1 %v10470_v7  ;;  %v10498_v7 = vld [vmem:[%s14969_s1 + $0x794] ss:$8 sps:$4 sm:$0xff]  }
 0x2c0   :  { %5058 = vmatpush1.bf16.msra.mxu0 %v10471_v60  ;;  %v10499_v60 = vld [vmem:[%s14969_s1 + $0x690] ss:$8 sps:$4 sm:$0xff]  }
 0x2c1   :  { %5059 = vmatprep.subr.bf16.mxu0 %v10472_v39  ;;  %v10500_v39 = vld [vmem:[%s14969_s1 + $0x684] ss:$8 sps:$4 sm:$0xff]  }
 0x2c2   :  { %5099 = vmatpush1.bf16.msra.mxu1 %v10473_v12  ;;  %v10501_v12 = vld [vmem:[%s14969_s1 + $0x790] ss:$8 sps:$4 sm:$0xff]  }
 0x2c3   :  { %5100 = vmatprep.subr.bf16.mxu1 %v10474_v21  ;;  %v10502_v21 = vld [vmem:[%s14969_s1 + $0x784] ss:$8 sps:$4 sm:$0xff]  }
 0x2c4   :  { %5060 = vmatpush2.bf16.msra.mxu0 %v10475_v57  ;;  %v10503_v57 = vld [vmem:[%s14969_s1 + $0x680] ss:$8 sps:$4 sm:$0xff]  }
 0x2c5   :  { %5061 = vmatprep.subr.bf16.mxu0 %v10476_v45  ;;  %v10504_v45 = vld [vmem:[%s14969_s1 + $0x874] ss:$8 sps:$4 sm:$0xff]  }
 0x2c6   :  { %5101 = vmatpush2.bf16.msra.mxu1 %v10477_v40  ;;  %v10505_v40 = vld [vmem:[%s14969_s1 + $0x780] ss:$8 sps:$4 sm:$0xff]  }
 0x2c7   :  { %5102 = vmatprep.subr.bf16.mxu1 %v10478_v11 }
 0x2c8   :  { %5062 = vmatpush2.bf16.msra.mxu0 %v10479_v13  ;;  %v10506_v13 = vld [vmem:[%s14969_s1 + $0x974] ss:$8 sps:$4 sm:$0xff]  }
 0x2c9   :  { %5063 = vmatprep.subr.bf16.mxu0 %v10480_v47 }
 0x2ca   :  { %5103 = vmatpush2.bf16.msra.mxu1 %v10481_v16  ;;  %v10507_v16 = vld [vmem:[%s14969_s1 + $0x870] ss:$8 sps:$4 sm:$0xff]  }
 0x2cb   :  { %5104 = vmatprep.subr.bf16.mxu1 %v10482_v18 }
 0x2cc   :  { %5064 = vmatpush2.bf16.msra.mxu0 %v10483_v4 }
 0x2cd   :  { %5065 = vmatprep.subr.bf16.mxu0 %v10484_v20  ;;  %v10508_v20 = vld [vmem:[%s14969_s1 + $0x864] ss:$8 sps:$4 sm:$0xff]  }
 0x2ce   :  { %5105 = vmatpush2.bf16.msra.mxu1 %v10485_v36 }
 0x2cf   :  { %5106 = vmatprep.subr.bf16.mxu1 %v10486_v22 }
 0x2d0   :  { %5066 = vmatpush2.bf16.msra.mxu0 %v10487_v59 }
 0x2d1   :  { %5067 = vmatprep.subr.bf16.mxu0 %v10488_v42 }
 0x2d2   :  { %5107 = vmatpush2.bf16.msra.mxu1 %v10489_v43  ;;  %v10510_v43 = vld [vmem:[%s14969_s1 + $0x964] ss:$8 sps:$4 sm:$0xff]  }
 0x2d3   :  { %5108 = vmatprep.subr.bf16.mxu1 %v10490_v24 }
 0x2d4   :  { %5068 = vmatpush2.bf16.msra.mxu0 %v10491_v50  ;;  %v10511_v50 = vld [vmem:[%s14969_s1 + $0x860] ss:$8 sps:$4 sm:$0xff]  }
 0x2d5   :  { %5069 = vmatprep.subr.bf16.mxu0 %v10492_v17 }
 0x2d6   :  { %5109 = vmatpush2.bf16.msra.mxu1 %v10493_v30 }
 0x2d7   :  { %5110 = vmatprep.subr.bf16.mxu1 %v10494_v51  ;;  %v10513_v51 = vld [vmem:[%s14969_s1 + $0x960] ss:$8 sps:$4 sm:$0xff]  }
 0x2d8   :  { %5070 = vmatpush2.bf16.msra.mxu0 %v10495_v35 }
 0x2d9   :  { %5071 = vmatprep.subr.bf16.mxu0 %v10496_v52  ;;  %v10514_v52 = vld [vmem:[%s14969_s1 + $0x954] ss:$8 sps:$4 sm:$0xff]  }
 0x2da   :  { %5111 = vmatpush2.bf16.msra.mxu1 %v10497_v55  ;;  %v10515_v55 = vld [vmem:[%s14969_s1 + $0x850] ss:$8 sps:$4 sm:$0xff]  }
 0x2db   :  { %5112 = vmatprep.subr.bf16.mxu1 %v10498_v7  ;;  %v10516_v7 = vld [vmem:[%s14969_s1 + $0x844] ss:$8 sps:$4 sm:$0xff]  }
 0x2dc   :  { %5072 = vmatpush2.bf16.msra.mxu0 %v10499_v60  ;;  %v10517_v60 = vld [vmem:[%s14969_s1 + $0x950] ss:$8 sps:$4 sm:$0xff]  }
 0x2dd   :  { %5073 = vmatprep.subr.bf16.mxu0 %v10500_v39  ;;  %v10518_v39 = vld [vmem:[%s14969_s1 + $0x944] ss:$8 sps:$4 sm:$0xff]  }
 0x2de   :  { %5113 = vmatpush2.bf16.msra.mxu1 %v10501_v12  ;;  %v10519_v12 = vld [vmem:[%s14969_s1 + $0x840] ss:$8 sps:$4 sm:$0xff]  }
 0x2df   :  { %5114 = vmatprep.subr.bf16.mxu1 %v10502_v21  ;;  %v10520_v21 = vld [vmem:[%s14969_s1 + $0x834] ss:$8 sps:$4 sm:$0xff]  }
 0x2e0   :  { %5074 = vmatpush2.bf16.msra.mxu0 %v10503_v57  ;;  %v10521_v57 = vld [vmem:[%s14969_s1 + $0x940] ss:$8 sps:$4 sm:$0xff]  }
 0x2e1   :  { %5125 = vmatprep.subr.bf16.mxu0 %v10504_v45  ;;  %v10522_v45 = vld [vmem:[%s14969_s1 + $0x934] ss:$8 sps:$4 sm:$0xff]  }
 0x2e2   :  { %5115 = vmatpush2.bf16.msra.mxu1 %v10505_v40  ;;  %v10523_v40 = vld [vmem:[%s14969_s1 + $0x830] ss:$8 sps:$4 sm:$0xff]  }
 0x2e3   :  { %v4831_v11 = vpop.f32.mrf.mxu0  ;;  %5076 = vmatmul.mubr.bf16.vlgmr.msra.gmra.mxu0 %v11676_v54  ;;  %5166 = vmatprep.subr.bf16.mxu1 %v10506_v13  ;;  %v10525_v13 = vld [vmem:[%s14969_s1 + $0x930] ss:$8 sps:$4 sm:$0xff]  }
 0x2e4   :  { %v4832_v47 = vadd.f32 %v4831_v11, %v13101_v3  ;;  %5126 = vmatpush1.bf16.msra.mxu0 %v10507_v16  ;;  %5157 = vmatprep.mubr.bf16.mxu0 %v11900_v56  ;;  %v10509_v3 = vld [vmem:[%s14969_s1 + $0x970] ss:$8 sps:$4 sm:$0xff]   ;;  %v10524_v11 = vld [vmem:[%s14969_s1 + $0x824] ss:$8 sps:$4 sm:$0xff]   ;;  %v10527_v16 = vld [vmem:[%s14969_s1 + $0x820] ss:$8 sps:$4 sm:$0xff]  }
 0x2e5   :  { %v4872_v18 = vpop.f32.mrf.mxu1  ;;  %5117 = vmatmul.mubr.bf16.vlgmr.msra.gmra.mxu1 %v11688_v0  ;;  %v4833_v4 = vpop.f32.mrf.mxu0  ;;  %5127 = vmatprep.subr.bf16.mxu0 %v10508_v20  ;;  %v10530_v20 = vld [vmem:[%s14969_s1 + $0x914] ss:$8 sps:$4 sm:$0xff]  }
 0x2e6   :  { %v13303_v36 = vadd.f32 %v4872_v18, %v4832_v47  ;;  %5167 = vmatpush1.bf16.msra.mxu1 %v10509_v3  ;;  %v4834_v22 = vadd.f32 %v4833_v4, %v13111_v61  ;;  %5198 = vmatprep.mubr.bf16.mxu1 %v11904_v26  ;;  %v10512_v61 = vld [vmem:[%s14969_s1 + $0x854] ss:$8 sps:$4 sm:$0xff]   ;;  %v10526_v47 = vld [vmem:[%s14969_s1 + $0x924] ss:$8 sps:$4 sm:$0xff]   ;;  %v10529_v4 = vld [vmem:[%s14969_s1 + $0x920] ss:$8 sps:$4 sm:$0xff]  }
 0x2e7   :  { %v4874_v59 = vpop.f32.mrf.mxu1  ;;  %v4835_v42 = vpop.f32.mrf.mxu0  ;;  %5168 = vmatprep.subr.bf16.mxu1 %v10510_v43  ;;  %v10528_v18 = vld [vmem:[%s14969_s1 + $0x814] ss:$8 sps:$4 sm:$0xff]   ;;  %v10531_v3 = vld [vmem:[%s14969_s1 + $0x810] ss:$8 sps:$4 sm:$0xff]   ;;  %v10535_v43 = vld [vmem:[%s14969_s1 + $0x800] ss:$8 sps:$4 sm:$0xff]  }
 0x2e8   :  { %v13313_v24 = vadd.f32 %v4874_v59, %v4834_v22  ;;  %5128 = vmatpush1.bf16.msra.mxu0 %v10511_v50  ;;  %v10532_v22 = vld [vmem:[%s14969_s1 + $0x804] ss:$8 sps:$4 sm:$0xff]   ;;  %v10533_v59 = vld [vmem:[%s14969_s1 + $0x910] ss:$8 sps:$4 sm:$0xff]   ;;  %v10536_v50 = vld [vmem:[%s14969_s1 + $0x8f4] ss:$8 sps:$4 sm:$0xff]  }
 0x2e9   :  { %v4876_v17 = vpop.f32.mrf.mxu1  ;;  %v4836_v30 = vpop.f32.mrf.mxu0  ;;  %5129 = vmatprep.subr.bf16.mxu0 %v10512_v61  ;;  %v10534_v42 = vld [vmem:[%s14969_s1 + $0x904] ss:$8 sps:$4 sm:$0xff]   ;;  %v10539_v61 = vld [vmem:[%s14969_s1 + $0x8f0] ss:$8 sps:$4 sm:$0xff]  }
 0x2ea   :  { %5169 = vmatpush1.bf16.msra.mxu1 %v10513_v51  ;;  %v10537_v17 = vld [vmem:[%s14969_s1 + $0x900] ss:$8 sps:$4 sm:$0xff]   ;;  %v10538_v30 = vld [vmem:[%s14969_s1 + $0x9f4] ss:$8 sps:$4 sm:$0xff]   ;;  %v10540_v51 = vld [vmem:[%s14969_s1 + $0x8e4] ss:$8 sps:$4 sm:$0xff]  }
 0x2eb   :  { %v4877_v35 = vpop.f32.mrf.mxu1  ;;  %5170 = vmatprep.subr.bf16.mxu1 %v10514_v52  ;;  %v10542_v52 = vld [vmem:[%s14969_s1 + $0x9e4] ss:$8 sps:$4 sm:$0xff]  }
 0x2ec   :  { %5130 = vmatpush1.bf16.msra.mxu0 %v10515_v55  ;;  %v10541_v35 = vld [vmem:[%s14969_s1 + $0x9f0] ss:$8 sps:$4 sm:$0xff]   ;;  %v10543_v55 = vld [vmem:[%s14969_s1 + $0x8e0] ss:$8 sps:$4 sm:$0xff]  }
 0x2ed   :  { %5131 = vmatprep.subr.bf16.mxu0 %v10516_v7  ;;  %v10544_v7 = vld [vmem:[%s14969_s1 + $0x8d4] ss:$8 sps:$4 sm:$0xff]  }
 0x2ee   :  { %5171 = vmatpush1.bf16.msra.mxu1 %v10517_v60  ;;  %v10545_v60 = vld [vmem:[%s14969_s1 + $0x9e0] ss:$8 sps:$4 sm:$0xff]  }
 0x2ef   :  { %5172 = vmatprep.subr.bf16.mxu1 %v10518_v39  ;;  %v10546_v39 = vld [vmem:[%s14969_s1 + $0x9d4] ss:$8 sps:$4 sm:$0xff]  }
 0x2f0   :  { %5132 = vmatpush1.bf16.msra.mxu0 %v10519_v12  ;;  %v10547_v12 = vld [vmem:[%s14969_s1 + $0x8d0] ss:$8 sps:$4 sm:$0xff]  }
 0x2f1   :  { %5133 = vmatprep.subr.bf16.mxu0 %v10520_v21  ;;  %v10548_v21 = vld [vmem:[%s14969_s1 + $0x8c4] ss:$8 sps:$4 sm:$0xff]  }
 0x2f2   :  { %5173 = vmatpush1.bf16.msra.mxu1 %v10521_v57  ;;  %v10549_v57 = vld [vmem:[%s14969_s1 + $0x9d0] ss:$8 sps:$4 sm:$0xff]  }
 0x2f3   :  { %5174 = vmatprep.subr.bf16.mxu1 %v10522_v45  ;;  %v10550_v45 = vld [vmem:[%s14969_s1 + $0x9c4] ss:$8 sps:$4 sm:$0xff]  }
 0x2f4   :  { %5134 = vmatpush1.bf16.msra.mxu0 %v10523_v40  ;;  %v10551_v40 = vld [vmem:[%s14969_s1 + $0x8c0] ss:$8 sps:$4 sm:$0xff]  }
 0x2f5   :  { %5135 = vmatprep.subr.bf16.mxu0 %v10524_v11  ;;  %v10552_v11 = vld [vmem:[%s14969_s1 + $0x8b4] ss:$8 sps:$4 sm:$0xff]  }
 0x2f6   :  { %5175 = vmatpush1.bf16.msra.mxu1 %v10525_v13  ;;  %v10553_v13 = vld [vmem:[%s14969_s1 + $0x9c0] ss:$8 sps:$4 sm:$0xff]  }
 0x2f7   :  { %5176 = vmatprep.subr.bf16.mxu1 %v10526_v47  ;;  %v10554_v47 = vld [vmem:[%s14969_s1 + $0x9b4] ss:$8 sps:$4 sm:$0xff]  }
 0x2f8   :  { %5136 = vmatpush1.bf16.msra.mxu0 %v10527_v16  ;;  %v10555_v16 = vld [vmem:[%s14969_s1 + $0x8b0] ss:$8 sps:$4 sm:$0xff]  }
 0x2f9   :  { %5137 = vmatprep.subr.bf16.mxu0 %v10528_v18  ;;  %v10556_v18 = vld [vmem:[%s14969_s1 + $0x8a4] ss:$8 sps:$4 sm:$0xff]  }
 0x2fa   :  { %5177 = vmatpush1.bf16.msra.mxu1 %v10529_v4  ;;  %v10557_v4 = vld [vmem:[%s14969_s1 + $0x9b0] ss:$8 sps:$4 sm:$0xff]  }
 0x2fb   :  { %5178 = vmatprep.subr.bf16.mxu1 %v10530_v20  ;;  %v10558_v20 = vld [vmem:[%s14969_s1 + $0x9a4] ss:$8 sps:$4 sm:$0xff]  }
 0x2fc   :  { %5138 = vmatpush1.bf16.msra.mxu0 %v10531_v3  ;;  %v10559_v3 = vld [vmem:[%s14969_s1 + $0x8a0] ss:$8 sps:$4 sm:$0xff]  }
 0x2fd   :  { %5139 = vmatprep.subr.bf16.mxu0 %v10532_v22  ;;  %v10560_v22 = vld [vmem:[%s14969_s1 + $0x894] ss:$8 sps:$4 sm:$0xff]  }
 0x2fe   :  { %5179 = vmatpush1.bf16.msra.mxu1 %v10533_v59  ;;  %v10561_v59 = vld [vmem:[%s14969_s1 + $0x9a0] ss:$8 sps:$4 sm:$0xff]  }
 0x2ff   :  { %5180 = vmatprep.subr.bf16.mxu1 %v10534_v42  ;;  %v10562_v42 = vld [vmem:[%s14969_s1 + $0x994] ss:$8 sps:$4 sm:$0xff]  }
 0x300   :  { %5140 = vmatpush1.bf16.msra.mxu0 %v10535_v43  ;;  %v10563_v43 = vld [vmem:[%s14969_s1 + $0x890] ss:$8 sps:$4 sm:$0xff]  }
 0x301   :  { %5141 = vmatprep.subr.bf16.mxu0 %v10536_v50  ;;  %v10564_v50 = vld [vmem:[%s14969_s1 + $0x884] ss:$8 sps:$4 sm:$0xff]  }
 0x302   :  { %5181 = vmatpush1.bf16.msra.mxu1 %v10537_v17  ;;  %v10565_v17 = vld [vmem:[%s14969_s1 + $0x990] ss:$8 sps:$4 sm:$0xff]  }
 0x303   :  { %5182 = vmatprep.subr.bf16.mxu1 %v10538_v30  ;;  %v10566_v30 = vld [vmem:[%s14969_s1 + $0x984] ss:$8 sps:$4 sm:$0xff]  }
 0x304   :  { %5142 = vmatpush2.bf16.msra.mxu0 %v10539_v61  ;;  %v10567_v61 = vld [vmem:[%s14969_s1 + $0x880] ss:$8 sps:$4 sm:$0xff]  }
 0x305   :  { %5143 = vmatprep.subr.bf16.mxu0 %v10540_v51  ;;  %v10568_v51 = vld [vmem:[%s14969_s1 + $0xa74] ss:$8 sps:$4 sm:$0xff]  }
 0x306   :  { %5183 = vmatpush2.bf16.msra.mxu1 %v10541_v35  ;;  %v10569_v35 = vld [vmem:[%s14969_s1 + $0x980] ss:$8 sps:$4 sm:$0xff]  }
 0x307   :  { %5184 = vmatprep.subr.bf16.mxu1 %v10542_v52 }
 0x308   :  { %5144 = vmatpush2.bf16.msra.mxu0 %v10543_v55  ;;  %v10570_v55 = vld [vmem:[%s14969_s1 + $0xb74] ss:$8 sps:$4 sm:$0xff]  }
 0x309   :  { %5145 = vmatprep.subr.bf16.mxu0 %v10544_v7 }
 0x30a   :  { %5185 = vmatpush2.bf16.msra.mxu1 %v10545_v60  ;;  %v10571_v60 = vld [vmem:[%s14969_s1 + $0xa70] ss:$8 sps:$4 sm:$0xff]  }
 0x30b   :  { %5186 = vmatprep.subr.bf16.mxu1 %v10546_v39 }
 0x30c   :  { %5146 = vmatpush2.bf16.msra.mxu0 %v10547_v12 }
 0x30d   :  { %5147 = vmatprep.subr.bf16.mxu0 %v10548_v21  ;;  %v10572_v21 = vld [vmem:[%s14969_s1 + $0xa64] ss:$8 sps:$4 sm:$0xff]  }
 0x30e   :  { %5187 = vmatpush2.bf16.msra.mxu1 %v10549_v57 }
 0x30f   :  { %5188 = vmatprep.subr.bf16.mxu1 %v10550_v45 }
 0x310   :  { %5148 = vmatpush2.bf16.msra.mxu0 %v10551_v40 }
 0x311   :  { %5149 = vmatprep.subr.bf16.mxu0 %v10552_v11 }
 0x312   :  { %5189 = vmatpush2.bf16.msra.mxu1 %v10553_v13  ;;  %v10574_v13 = vld [vmem:[%s14969_s1 + $0xb64] ss:$8 sps:$4 sm:$0xff]  }
 0x313   :  { %5190 = vmatprep.subr.bf16.mxu1 %v10554_v47 }
 0x314   :  { %5150 = vmatpush2.bf16.msra.mxu0 %v10555_v16  ;;  %v10575_v16 = vld [vmem:[%s14969_s1 + $0xa60] ss:$8 sps:$4 sm:$0xff]  }
 0x315   :  { %5151 = vmatprep.subr.bf16.mxu0 %v10556_v18 }
 0x316   :  { %5191 = vmatpush2.bf16.msra.mxu1 %v10557_v4 }
 0x317   :  { %5192 = vmatprep.subr.bf16.mxu1 %v10558_v20  ;;  %v10577_v20 = vld [vmem:[%s14969_s1 + $0xb60] ss:$8 sps:$4 sm:$0xff]  }
 0x318   :  { %5152 = vmatpush2.bf16.msra.mxu0 %v10559_v3 }
 0x319   :  { %5153 = vmatprep.subr.bf16.mxu0 %v10560_v22  ;;  %v10578_v22 = vld [vmem:[%s14969_s1 + $0xb54] ss:$8 sps:$4 sm:$0xff]  }
 0x31a   :  { %5193 = vmatpush2.bf16.msra.mxu1 %v10561_v59  ;;  %v10579_v59 = vld [vmem:[%s14969_s1 + $0xa50] ss:$8 sps:$4 sm:$0xff]  }
 0x31b   :  { %5194 = vmatprep.subr.bf16.mxu1 %v10562_v42  ;;  %v10580_v42 = vld [vmem:[%s14969_s1 + $0xa44] ss:$8 sps:$4 sm:$0xff]  }
 0x31c   :  { %5154 = vmatpush2.bf16.msra.mxu0 %v10563_v43  ;;  %v10581_v43 = vld [vmem:[%s14969_s1 + $0xb50] ss:$8 sps:$4 sm:$0xff]  }
 0x31d   :  { %5155 = vmatprep.subr.bf16.mxu0 %v10564_v50  ;;  %v10582_v50 = vld [vmem:[%s14969_s1 + $0xb44] ss:$8 sps:$4 sm:$0xff]  }
 0x31e   :  { %5195 = vmatpush2.bf16.msra.mxu1 %v10565_v17  ;;  %v10583_v17 = vld [vmem:[%s14969_s1 + $0xa40] ss:$8 sps:$4 sm:$0xff]  }
 0x31f   :  { %5196 = vmatprep.subr.bf16.mxu1 %v10566_v30  ;;  %v10584_v30 = vld [vmem:[%s14969_s1 + $0xa34] ss:$8 sps:$4 sm:$0xff]  }
 0x320   :  { %5156 = vmatpush2.bf16.msra.mxu0 %v10567_v61  ;;  %v10585_v61 = vld [vmem:[%s14969_s1 + $0xb40] ss:$8 sps:$4 sm:$0xff]  }
 0x321   :  { %5207 = vmatprep.subr.bf16.mxu0 %v10568_v51  ;;  %v10586_v51 = vld [vmem:[%s14969_s1 + $0xb34] ss:$8 sps:$4 sm:$0xff]  }
 0x322   :  { %5197 = vmatpush2.bf16.msra.mxu1 %v10569_v35  ;;  %v10587_v35 = vld [vmem:[%s14969_s1 + $0xa30] ss:$8 sps:$4 sm:$0xff]  }
 0x323   :  { %v4913_v52 = vpop.f32.mrf.mxu0  ;;  %5158 = vmatmul.mubr.bf16.vlgmr.msra.gmra.mxu0 %v11898_v46  ;;  %5248 = vmatprep.subr.bf16.mxu1 %v10570_v55  ;;  %v10589_v55 = vld [vmem:[%s14969_s1 + $0xb30] ss:$8 sps:$4 sm:$0xff]  }
 0x324   :  { %v4914_v7 = vadd.f32 %v4913_v52, %v13303_v36  ;;  %5208 = vmatpush1.bf16.msra.mxu0 %v10571_v60  ;;  %5239 = vmatprep.mubr.bf16.mxu0 %v12141_v6  ;;  %v10573_v36 = vld [vmem:[%s14969_s1 + $0xb70] ss:$8 sps:$4 sm:$0xff]   ;;  %v10588_v52 = vld [vmem:[%s14969_s1 + $0xa24] ss:$8 sps:$4 sm:$0xff]   ;;  %v10591_v60 = vld [vmem:[%s14969_s1 + $0xa20] ss:$8 sps:$4 sm:$0xff]  }
 0x325   :  { %v4954_v39 = vpop.f32.mrf.mxu1  ;;  %5199 = vmatmul.mubr.bf16.vlgmr.msra.gmra.mxu1 %v11902_v25  ;;  %v4915_v12 = vpop.f32.mrf.mxu0  ;;  %5209 = vmatprep.subr.bf16.mxu0 %v10572_v21  ;;  %v10594_v21 = vld [vmem:[%s14969_s1 + $0xb14] ss:$8 sps:$4 sm:$0xff]  }
 0x326   :  { %v13505_v57 = vadd.f32 %v4954_v39, %v4914_v7  ;;  %5249 = vmatpush1.bf16.msra.mxu1 %v10573_v36  ;;  %v4916_v45 = vadd.f32 %v4915_v12, %v13313_v24  ;;  %5280 = vmatprep.mubr.bf16.mxu1 %v12145_v38  ;;  %v10576_v24 = vld [vmem:[%s14969_s1 + $0xa54] ss:$8 sps:$4 sm:$0xff]   ;;  %v10590_v7 = vld [vmem:[%s14969_s1 + $0xb24] ss:$8 sps:$4 sm:$0xff]   ;;  %v10593_v12 = vld [vmem:[%s14969_s1 + $0xb20] ss:$8 sps:$4 sm:$0xff]  }
 0x327   :  { %v4956_v40 = vpop.f32.mrf.mxu1  ;;  %v4917_v11 = vpop.f32.mrf.mxu0  ;;  %5250 = vmatprep.subr.bf16.mxu1 %v10574_v13  ;;  %v10592_v39 = vld [vmem:[%s14969_s1 + $0xa14] ss:$8 sps:$4 sm:$0xff]   ;;  %v10595_v36 = vld [vmem:[%s14969_s1 + $0xa10] ss:$8 sps:$4 sm:$0xff]   ;;  %v10599_v13 = vld [vmem:[%s14969_s1 + $0xa00] ss:$8 sps:$4 sm:$0xff]  }
 0x328   :  { %v13515_v47 = vadd.f32 %v4956_v40, %v4916_v45  ;;  %5210 = vmatpush1.bf16.msra.mxu0 %v10575_v16  ;;  %v10596_v45 = vld [vmem:[%s14969_s1 + $0xa04] ss:$8 sps:$4 sm:$0xff]   ;;  %v10597_v40 = vld [vmem:[%s14969_s1 + $0xb10] ss:$8 sps:$4 sm:$0xff]   ;;  %v10600_v16 = vld [vmem:[%s14969_s1 + $0xaf4] ss:$8 sps:$4 sm:$0xff]  }
 0x329   :  { %v4958_v18 = vpop.f32.mrf.mxu1  ;;  %v4918_v4 = vpop.f32.mrf.mxu0  ;;  %5211 = vmatprep.subr.bf16.mxu0 %v10576_v24  ;;  %v10598_v11 = vld [vmem:[%s14969_s1 + $0xb04] ss:$8 sps:$4 sm:$0xff]   ;;  %v10603_v24 = vld [vmem:[%s14969_s1 + $0xaf0] ss:$8 sps:$4 sm:$0xff]  }
 0x32a   :  { %5251 = vmatpush1.bf16.msra.mxu1 %v10577_v20  ;;  %v10601_v18 = vld [vmem:[%s14969_s1 + $0xb00] ss:$8 sps:$4 sm:$0xff]   ;;  %v10602_v4 = vld [vmem:[%s14969_s1 + $0xbf4] ss:$8 sps:$4 sm:$0xff]   ;;  %v10604_v20 = vld [vmem:[%s14969_s1 + $0xae4] ss:$8 sps:$4 sm:$0xff]  }
 0x32b   :  { %v4959_v3 = vpop.f32.mrf.mxu1  ;;  %5252 = vmatprep.subr.bf16.mxu1 %v10578_v22  ;;  %v10606_v22 = vld [vmem:[%s14969_s1 + $0xbe4] ss:$8 sps:$4 sm:$0xff]  }
 0x32c   :  { %5212 = vmatpush1.bf16.msra.mxu0 %v10579_v59  ;;  %v10605_v3 = vld [vmem:[%s14969_s1 + $0xbf0] ss:$8 sps:$4 sm:$0xff]   ;;  %v10607_v59 = vld [vmem:[%s14969_s1 + $0xae0] ss:$8 sps:$4 sm:$0xff]  }
 0x32d   :  { %5213 = vmatprep.subr.bf16.mxu0 %v10580_v42  ;;  %v10608_v42 = vld [vmem:[%s14969_s1 + $0xad4] ss:$8 sps:$4 sm:$0xff]  }
 0x32e   :  { %5253 = vmatpush1.bf16.msra.mxu1 %v10581_v43  ;;  %v10609_v43 = vld [vmem:[%s14969_s1 + $0xbe0] ss:$8 sps:$4 sm:$0xff]  }
 0x32f   :  { %5254 = vmatprep.subr.bf16.mxu1 %v10582_v50  ;;  %v10610_v50 = vld [vmem:[%s14969_s1 + $0xbd4] ss:$8 sps:$4 sm:$0xff]  }
 0x330   :  { %5214 = vmatpush1.bf16.msra.mxu0 %v10583_v17  ;;  %v10611_v17 = vld [vmem:[%s14969_s1 + $0xad0] ss:$8 sps:$4 sm:$0xff]  }
 0x331   :  { %5215 = vmatprep.subr.bf16.mxu0 %v10584_v30  ;;  %v10612_v30 = vld [vmem:[%s14969_s1 + $0xac4] ss:$8 sps:$4 sm:$0xff]  }
 0x332   :  { %5255 = vmatpush1.bf16.msra.mxu1 %v10585_v61  ;;  %v10613_v61 = vld [vmem:[%s14969_s1 + $0xbd0] ss:$8 sps:$4 sm:$0xff]  }
 0x333   :  { %5256 = vmatprep.subr.bf16.mxu1 %v10586_v51  ;;  %v10614_v51 = vld [vmem:[%s14969_s1 + $0xbc4] ss:$8 sps:$4 sm:$0xff]  }
 0x334   :  { %5216 = vmatpush1.bf16.msra.mxu0 %v10587_v35  ;;  %v10615_v35 = vld [vmem:[%s14969_s1 + $0xac0] ss:$8 sps:$4 sm:$0xff]  }
 0x335   :  { %5217 = vmatprep.subr.bf16.mxu0 %v10588_v52  ;;  %v10616_v52 = vld [vmem:[%s14969_s1 + $0xab4] ss:$8 sps:$4 sm:$0xff]  }
 0x336   :  { %5257 = vmatpush1.bf16.msra.mxu1 %v10589_v55  ;;  %v10617_v55 = vld [vmem:[%s14969_s1 + $0xbc0] ss:$8 sps:$4 sm:$0xff]  }
 0x337   :  { %5258 = vmatprep.subr.bf16.mxu1 %v10590_v7  ;;  %v10618_v7 = vld [vmem:[%s14969_s1 + $0xbb4] ss:$8 sps:$4 sm:$0xff]  }
 0x338   :  { %5218 = vmatpush1.bf16.msra.mxu0 %v10591_v60  ;;  %v10619_v60 = vld [vmem:[%s14969_s1 + $0xab0] ss:$8 sps:$4 sm:$0xff]  }
 0x339   :  { %5219 = vmatprep.subr.bf16.mxu0 %v10592_v39  ;;  %v10620_v39 = vld [vmem:[%s14969_s1 + $0xaa4] ss:$8 sps:$4 sm:$0xff]  }
 0x33a   :  { %5259 = vmatpush1.bf16.msra.mxu1 %v10593_v12  ;;  %v10621_v12 = vld [vmem:[%s14969_s1 + $0xbb0] ss:$8 sps:$4 sm:$0xff]  }
 0x33b   :  { %5260 = vmatprep.subr.bf16.mxu1 %v10594_v21  ;;  %v10622_v21 = vld [vmem:[%s14969_s1 + $0xba4] ss:$8 sps:$4 sm:$0xff]  }
 0x33c   :  { %5220 = vmatpush1.bf16.msra.mxu0 %v10595_v36  ;;  %v10623_v36 = vld [vmem:[%s14969_s1 + $0xaa0] ss:$8 sps:$4 sm:$0xff]  }
 0x33d   :  { %5221 = vmatprep.subr.bf16.mxu0 %v10596_v45  ;;  %v10624_v45 = vld [vmem:[%s14969_s1 + $0xa94] ss:$8 sps:$4 sm:$0xff]  }
 0x33e   :  { %5261 = vmatpush1.bf16.msra.mxu1 %v10597_v40  ;;  %v9671_v40 = vld [vmem:[%s14970_s2 + $0x74] ss:$8 sps:$4 sm:$0xff]  }
 0x33f   :  { %5262 = vmatprep.subr.bf16.mxu1 %v10598_v11  ;;  %v9674_v11 = vld [vmem:[%s14970_s2 + $0x174] ss:$8 sps:$4 sm:$0xff]  }
 0x340   :  { %5222 = vmatpush1.bf16.msra.mxu0 %v10599_v13 }
 0x341   :  { %5223 = vmatprep.subr.bf16.mxu0 %v10600_v16  ;;  %v9683_v16 = vld [vmem:[%s14970_s2 + $0x54] ss:$8 sps:$4 sm:$0xff]  }
 0x342   :  { %5263 = vmatpush1.bf16.msra.mxu1 %v10601_v18 }
 0x343   :  { %5264 = vmatprep.subr.bf16.mxu1 %v10602_v4  ;;  %v9678_v4 = vld [vmem:[%s14970_s2 + $0x160] ss:$8 sps:$4 sm:$0xff]  }
 0x344   :  { %5224 = vmatpush2.bf16.msra.mxu0 %v10603_v24 }
 0x345   :  { %5225 = vmatprep.subr.bf16.mxu0 %v10604_v20  ;;  %v9686_v20 = vld [vmem:[%s14970_s2 + $0x154] ss:$8 sps:$4 sm:$0xff]  }
 0x346   :  { %5265 = vmatpush2.bf16.msra.mxu1 %v10605_v3 }
 0x347   :  { %5266 = vmatprep.subr.bf16.mxu1 %v10606_v22 }
 0x348   :  { %5226 = vmatpush2.bf16.msra.mxu0 %v10607_v59 }
 0x349   :  { %5227 = vmatprep.subr.bf16.mxu0 %v10608_v42  ;;  %v9684_v42 = vld [vmem:[%s14970_s2 + $0x150] ss:$8 sps:$4 sm:$0xff]  }
 0x34a   :  { %5267 = vmatpush2.bf16.msra.mxu1 %v10609_v43 }
 0x34b   :  { %5268 = vmatprep.subr.bf16.mxu1 %v10610_v50  ;;  %v9692_v50 = vld [vmem:[%s14970_s2 + $0x144] ss:$8 sps:$4 sm:$0xff]  }
 0x34c   :  { %5228 = vmatpush2.bf16.msra.mxu0 %v10611_v17  ;;  %v9687_v17 = vld [vmem:[%s14970_s2 + $0x40] ss:$8 sps:$4 sm:$0xff]  }
 0x34d   :  { %5229 = vmatprep.subr.bf16.mxu0 %v10612_v30  ;;  %v9695_v30 = vld [vmem:[%s14970_s2 + $0x34] ss:$8 sps:$4 sm:$0xff]  }
 0x34e   :  { %5269 = vmatpush2.bf16.msra.mxu1 %v10613_v61  ;;  %v9690_v61 = vld [vmem:[%s14970_s2 + $0x140] ss:$8 sps:$4 sm:$0xff]  }
 0x34f   :  { %5270 = vmatprep.subr.bf16.mxu1 %v10614_v51  ;;  %v9698_v51 = vld [vmem:[%s14970_s2 + $0x134] ss:$8 sps:$4 sm:$0xff]  }
 0x350   :  { %5230 = vmatpush2.bf16.msra.mxu0 %v10615_v35  ;;  %v9693_v35 = vld [vmem:[%s14970_s2 + $0x30] ss:$8 sps:$4 sm:$0xff]  }
 0x351   :  { %5231 = vmatprep.subr.bf16.mxu0 %v10616_v52  ;;  %v9701_v52 = vld [vmem:[%s14970_s2 + $0x24] ss:$8 sps:$4 sm:$0xff]  }
 0x352   :  { %5271 = vmatpush2.bf16.msra.mxu1 %v10617_v55  ;;  %v9696_v55 = vld [vmem:[%s14970_s2 + $0x130] ss:$8 sps:$4 sm:$0xff]  }
 0x353   :  { %5272 = vmatprep.subr.bf16.mxu1 %v10618_v7  ;;  %v9704_v7 = vld [vmem:[%s14970_s2 + $0x124] ss:$8 sps:$4 sm:$0xff]  }
 0x354   :  { %5232 = vmatpush2.bf16.msra.mxu0 %v10619_v60  ;;  %v9699_v60 = vld [vmem:[%s14970_s2 + $0x20] ss:$8 sps:$4 sm:$0xff]  }
 0x355   :  { %5233 = vmatprep.subr.bf16.mxu0 %v10620_v39  ;;  %v9707_v39 = vld [vmem:[%s14970_s2 + $0x14] ss:$8 sps:$4 sm:$0xff]  }
 0x356   :  { %5273 = vmatpush2.bf16.msra.mxu1 %v10621_v12  ;;  %v9702_v12 = vld [vmem:[%s14970_s2 + $0x120] ss:$8 sps:$4 sm:$0xff]  }
 0x357   :  { %5274 = vmatprep.subr.bf16.mxu1 %v10622_v21  ;;  %v9710_v21 = vld [vmem:[%s14970_s2 + $0x114] ss:$8 sps:$4 sm:$0xff]  }
 0x358   :  { %5234 = vmatpush2.bf16.msra.mxu0 %v10623_v36  ;;  %v9705_v36 = vld [vmem:[%s14970_s2 + $0x10] ss:$8 sps:$4 sm:$0xff]  }
 0x359   :  { %5235 = vmatprep.subr.bf16.mxu0 %v10624_v45  ;;  %v9713_v45 = vld [vmem:[%s14970_s2 + $0x4] ss:$8 sps:$4 sm:$0xff]  }
 0x35a   :  { %5275 = vmatpush2.bf16.msra.mxu1 %v12432_v23  ;;  %v9669_v23 = vld [vmem:[%s14970_s2 + $0x70] ss:$8 sps:$4 sm:$0xff]  }
 0x35b   :  { %5276 = vmatprep.subr.bf16.mxu1 %v12437_v27  ;;  %v9677_v27 = vld [vmem:[%s14970_s2 + $0x64] ss:$8 sps:$4 sm:$0xff]  }
 0x35c   :  { %5236 = vmatpush2.bf16.msra.mxu0 %v12442_v28  ;;  %v9672_v28 = vld [vmem:[%s14970_s2 + $0x170] ss:$8 sps:$4 sm:$0xff]  }
 0x35d   :  { %5237 = vmatprep.subr.bf16.mxu0 %v12447_v31 }
 0x35e   :  { %5277 = vmatpush2.bf16.msra.mxu1 %v12453_v32  ;;  %v9680_v32 = vld [vmem:[%s14970_s2 + $0x164] ss:$8 sps:$4 sm:$0xff]  }
 0x35f   :  { %5278 = vmatprep.subr.bf16.mxu1 %v12459_v33 }
 0x360   :  { %5238 = vmatpush2.bf16.msra.mxu0 %v12465_v37  ;;  %v9675_v37 = vld [vmem:[%s14970_s2 + $0x60] ss:$8 sps:$4 sm:$0xff]  }
 0x361   :  { %7209 = vmatprep.subr.bf16.mxu0 %v9671_v40  ;;  %v9708_v40 = vld [vmem:[%s14970_s2 + $0x110] ss:$8 sps:$4 sm:$0xff]  }
 0x362   :  { %5279 = vmatpush2.bf16.msra.mxu1 %v12472_v1 }
 0x363   :  { %v4995_v31 = vpop.f32.mrf.mxu0  ;;  %5240 = vmatmul.mubr.bf16.vlgmr.msra.gmra.mxu0 %v12139_v5  ;;  %7250 = vmatprep.subr.bf16.mxu1 %v9674_v11  ;;  %v9716_v11 = vld [vmem:[%s14970_s2 + $0x104] ss:$8 sps:$4 sm:$0xff]  }
 0x364   :  { %v4996_v33 = vadd.f32 %v4995_v31, %v13505_v57  ;;  %7210 = vmatpush1.bf16.msra.mxu0 %v9669_v23  ;;  %7241 = vmatprep.mubr.bf16.mxu0 %v11197_v48  ;;  %v9711_v23 = vld [vmem:[%s14970_s2] ss:$8 sps:$4 sm:$0xff]   ;;  %v9722_v31 = vld [vmem:[%s14970_s2 + $0x1f4] ss:$8 sps:$4 sm:$0xff]  }
 0x365   :  { %v5036_v1 = vpop.f32.mrf.mxu1  ;;  %5281 = vmatmul.mubr.bf16.vlgmr.msra.gmra.mxu1 %v12143_v9  ;;  %v4997_v13 = vpop.f32.mrf.mxu0  ;;  %7211 = vmatprep.subr.bf16.mxu0 %v9677_v27  ;;  %v9719_v27 = vld [vmem:[%s14970_s2 + $0xf4] ss:$8 sps:$4 sm:$0xff]  }
 0x366   :  { %v13703_v18 = vadd.f32 %v5036_v1, %v4996_v33  ;;  %7251 = vmatpush1.bf16.msra.mxu1 %v9672_v28  ;;  %v4998_v57 = vadd.f32 %v4997_v13, %v13515_v47  ;;  %7282 = vmatprep.mubr.bf16.mxu1 %v11208_v53  ;;  %v9681_v47 = vld [vmem:[%s14970_s2 + $0x50] ss:$8 sps:$4 sm:$0xff]   ;;  %v9689_v53 = vld [vmem:[%s14970_s2 + $0x44] ss:$8 sps:$4 sm:$0xff]   ;;  %v9714_v28 = vld [vmem:[%s14970_s2 + $0x100] ss:$8 sps:$4 sm:$0xff]  }
 0x367   :  { %v5038_v48 = vpop.f32.mrf.mxu1  ;;  %v4999_v24 = vpop.f32.mrf.mxu0  ;;  %7252 = vmatprep.subr.bf16.mxu1 %v9680_v32  ;;  %v9717_v32 = vld [vmem:[%s14970_s2 + $0xf0] ss:$8 sps:$4 sm:$0xff]   ;;  %v9725_v33 = vld [vmem:[%s14970_s2 + $0xe4] ss:$8 sps:$4 sm:$0xff]   ;;  %v9723_v13 = vld [vmem:[%s14970_s2 + $0xe0] ss:$8 sps:$4 sm:$0xff]  }
 0x368   :  { %v13713_v3 = vadd.f32 %v5038_v48, %v4998_v57  ;;  %7212 = vmatpush1.bf16.msra.mxu0 %v9675_v37  ;;  %v9720_v37 = vld [vmem:[%s14970_s2 + $0x1f0] ss:$8 sps:$4 sm:$0xff]   ;;  %v9728_v1 = vld [vmem:[%s14970_s2 + $0x1e4] ss:$8 sps:$4 sm:$0xff]   ;;  %v9726_v57 = vld [vmem:[%s14970_s2 + $0x1e0] ss:$8 sps:$4 sm:$0xff]  }
 0x369   :  { %v5040_v22 = vpop.f32.mrf.mxu1  ;;  %v5000_v59 = vpop.f32.mrf.mxu0  ;;  %7213 = vmatprep.subr.bf16.mxu0 %v9683_v16  ;;  %v9731_v16 = vld [vmem:[%s14970_s2 + $0xd4] ss:$8 sps:$4 sm:$0xff]   ;;  %v9729_v48 = vld [vmem:[%s14970_s2 + $0xd0] ss:$8 sps:$4 sm:$0xff]   ;;  %v9737_v24 = vld [vmem:[%s14970_s2 + $0xc4] ss:$8 sps:$4 sm:$0xff]  }
 0x36a   :  { %7253 = vmatpush1.bf16.msra.mxu1 %v9678_v4  ;;  %v9734_v4 = vld [vmem:[%s14970_s2 + $0x1d4] ss:$8 sps:$4 sm:$0xff]   ;;  %v9735_v22 = vld [vmem:[%s14970_s2 + $0xc0] ss:$8 sps:$4 sm:$0xff]  }
 0x36b   :  { %v5041_v43 = vpop.f32.mrf.mxu1  ;;  %7254 = vmatprep.subr.bf16.mxu1 %v9686_v20  ;;  %v9732_v20 = vld [vmem:[%s14970_s2 + $0x1d0] ss:$8 sps:$4 sm:$0xff]   ;;  %v9743_v59 = vld [vmem:[%s14970_s2 + $0xb4] ss:$8 sps:$4 sm:$0xff]  }
 0x36c   :  { %7214 = vmatpush1.bf16.msra.mxu0 %v9681_v47  ;;  %v9740_v47 = vld [vmem:[%s14970_s2 + $0x1c4] ss:$8 sps:$4 sm:$0xff]   ;;  %v9741_v43 = vld [vmem:[%s14970_s2 + $0xb0] ss:$8 sps:$4 sm:$0xff]  }
 0x36d   :  { %7215 = vmatprep.subr.bf16.mxu0 %v9689_v53  ;;  %v9738_v53 = vld [vmem:[%s14970_s2 + $0x1c0] ss:$8 sps:$4 sm:$0xff]  }
 0x36e   :  { %7255 = vmatpush1.bf16.msra.mxu1 %v9684_v42  ;;  %v9746_v42 = vld [vmem:[%s14970_s2 + $0x1b4] ss:$8 sps:$4 sm:$0xff]  }
 0x36f   :  { %7256 = vmatprep.subr.bf16.mxu1 %v9692_v50  ;;  %v9749_v50 = vld [vmem:[%s14970_s2 + $0xa4] ss:$8 sps:$4 sm:$0xff]  }
 0x370   :  { %7216 = vmatpush1.bf16.msra.mxu0 %v9687_v17  ;;  %v9744_v17 = vld [vmem:[%s14970_s2 + $0x1b0] ss:$8 sps:$4 sm:$0xff]  }
 0x371   :  { %7217 = vmatprep.subr.bf16.mxu0 %v9695_v30  ;;  %v9752_v30 = vld [vmem:[%s14970_s2 + $0x1a4] ss:$8 sps:$4 sm:$0xff]  }
 0x372   :  { %7257 = vmatpush1.bf16.msra.mxu1 %v9690_v61  ;;  %v9747_v61 = vld [vmem:[%s14970_s2 + $0xa0] ss:$8 sps:$4 sm:$0xff]  }
 0x373   :  { %7258 = vmatprep.subr.bf16.mxu1 %v9698_v51  ;;  %v9755_v51 = vld [vmem:[%s14970_s2 + $0x94] ss:$8 sps:$4 sm:$0xff]  }
 0x374   :  { %7218 = vmatpush1.bf16.msra.mxu0 %v9693_v35  ;;  %v9750_v35 = vld [vmem:[%s14970_s2 + $0x1a0] ss:$8 sps:$4 sm:$0xff]  }
 0x375   :  { %7219 = vmatprep.subr.bf16.mxu0 %v9701_v52  ;;  %v9758_v52 = vld [vmem:[%s14970_s2 + $0x194] ss:$8 sps:$4 sm:$0xff]  }
 0x376   :  { %7259 = vmatpush1.bf16.msra.mxu1 %v9696_v55  ;;  %v9753_v55 = vld [vmem:[%s14970_s2 + $0x90] ss:$8 sps:$4 sm:$0xff]  }
 0x377   :  { %7260 = vmatprep.subr.bf16.mxu1 %v9704_v7  ;;  %v9761_v7 = vld [vmem:[%s14970_s2 + $0x84] ss:$8 sps:$4 sm:$0xff]  }
 0x378   :  { %7220 = vmatpush1.bf16.msra.mxu0 %v9699_v60  ;;  %v9756_v60 = vld [vmem:[%s14970_s2 + $0x190] ss:$8 sps:$4 sm:$0xff]  }
 0x379   :  { %7221 = vmatprep.subr.bf16.mxu0 %v9707_v39  ;;  %v9764_v39 = vld [vmem:[%s14970_s2 + $0x184] ss:$8 sps:$4 sm:$0xff]  }
 0x37a   :  { %7261 = vmatpush1.bf16.msra.mxu1 %v9702_v12  ;;  %v9759_v12 = vld [vmem:[%s14970_s2 + $0x80] ss:$8 sps:$4 sm:$0xff]  }
 0x37b   :  { %7262 = vmatprep.subr.bf16.mxu1 %v9710_v21  ;;  %v9767_v21 = vld [vmem:[%s14970_s2 + $0x274] ss:$8 sps:$4 sm:$0xff]  }
 0x37c   :  { %7222 = vmatpush1.bf16.msra.mxu0 %v9705_v36  ;;  %v9762_v36 = vld [vmem:[%s14970_s2 + $0x180] ss:$8 sps:$4 sm:$0xff]  }
 0x37d   :  { %7223 = vmatprep.subr.bf16.mxu0 %v9713_v45  ;;  %v9770_v45 = vld [vmem:[%s14970_s2 + $0x374] ss:$8 sps:$4 sm:$0xff]  }
 0x37e   :  { %7263 = vmatpush1.bf16.msra.mxu1 %v9708_v40  ;;  %v9765_v40 = vld [vmem:[%s14970_s2 + $0x270] ss:$8 sps:$4 sm:$0xff]  }
 0x37f   :  { %7264 = vmatprep.subr.bf16.mxu1 %v9716_v11  ;;  %v9773_v11 = vld [vmem:[%s14970_s2 + $0x264] ss:$8 sps:$4 sm:$0xff]  }
 0x380   :  { %7224 = vmatpush1.bf16.msra.mxu0 %v9711_v23  ;;  %v9768_v23 = vld [vmem:[%s14970_s2 + $0x370] ss:$8 sps:$4 sm:$0xff]  }
 0x381   :  { %7225 = vmatprep.subr.bf16.mxu0 %v9719_v27 }
 0x382   :  { %7265 = vmatpush1.bf16.msra.mxu1 %v9714_v28  ;;  %v9776_v28 = vld [vmem:[%s14970_s2 + $0x364] ss:$8 sps:$4 sm:$0xff]  }
 0x383   :  { %7266 = vmatprep.subr.bf16.mxu1 %v9722_v31 }
 0x384   :  { %7226 = vmatpush2.bf16.msra.mxu0 %v9717_v32  ;;  %v9771_v32 = vld [vmem:[%s14970_s2 + $0x260] ss:$8 sps:$4 sm:$0xff]  }
 0x385   :  { %7227 = vmatprep.subr.bf16.mxu0 %v9725_v33 }
 0x386   :  { %7267 = vmatpush2.bf16.msra.mxu1 %v9720_v37 }
 0x387   :  { %7268 = vmatprep.subr.bf16.mxu1 %v9728_v1 }
 0x388   :  { %7228 = vmatpush2.bf16.msra.mxu0 %v9723_v13  ;;  %v9774_v13 = vld [vmem:[%s14970_s2 + $0x360] ss:$8 sps:$4 sm:$0xff]  }
 0x389   :  { %7229 = vmatprep.subr.bf16.mxu0 %v9731_v16 }
 0x38a   :  { %7269 = vmatpush2.bf16.msra.mxu1 %v9726_v57 }
 0x38b   :  { %7270 = vmatprep.subr.bf16.mxu1 %v9734_v4 }
 0x38c   :  { %7230 = vmatpush2.bf16.msra.mxu0 %v9729_v48 }
 0x38d   :  { %7231 = vmatprep.subr.bf16.mxu0 %v9737_v24  ;;  %v9780_v24 = vld [vmem:[%s14970_s2 + $0x350] ss:$8 sps:$4 sm:$0xff]  }
 0x38e   :  { %7271 = vmatpush2.bf16.msra.mxu1 %v9732_v20 }
 0x38f   :  { %7272 = vmatprep.subr.bf16.mxu1 %v9740_v47  ;;  %v9788_v47 = vld [vmem:[%s14970_s2 + $0x344] ss:$8 sps:$4 sm:$0xff]  }
 0x390   :  { %7232 = vmatpush2.bf16.msra.mxu0 %v9735_v22  ;;  %v9783_v22 = vld [vmem:[%s14970_s2 + $0x240] ss:$8 sps:$4 sm:$0xff]  }
 0x391   :  { %7233 = vmatprep.subr.bf16.mxu0 %v9743_v59  ;;  %v9791_v59 = vld [vmem:[%s14970_s2 + $0x234] ss:$8 sps:$4 sm:$0xff]  }
 0x392   :  { %7273 = vmatpush2.bf16.msra.mxu1 %v9738_v53  ;;  %v9786_v53 = vld [vmem:[%s14970_s2 + $0x340] ss:$8 sps:$4 sm:$0xff]  }
 0x393   :  { %7274 = vmatprep.subr.bf16.mxu1 %v9746_v42  ;;  %v9794_v42 = vld [vmem:[%s14970_s2 + $0x334] ss:$8 sps:$4 sm:$0xff]  }
 0x394   :  { %7234 = vmatpush2.bf16.msra.mxu0 %v9741_v43  ;;  %v9789_v43 = vld [vmem:[%s14970_s2 + $0x230] ss:$8 sps:$4 sm:$0xff]  }
 0x395   :  { %7235 = vmatprep.subr.bf16.mxu0 %v9749_v50  ;;  %v9797_v50 = vld [vmem:[%s14970_s2 + $0x224] ss:$8 sps:$4 sm:$0xff]  }
 0x396   :  { %7275 = vmatpush2.bf16.msra.mxu1 %v9744_v17  ;;  %v9792_v17 = vld [vmem:[%s14970_s2 + $0x330] ss:$8 sps:$4 sm:$0xff]  }
 0x397   :  { %7276 = vmatprep.subr.bf16.mxu1 %v9752_v30  ;;  %v9800_v30 = vld [vmem:[%s14970_s2 + $0x324] ss:$8 sps:$4 sm:$0xff]  }
 0x398   :  { %7236 = vmatpush2.bf16.msra.mxu0 %v9747_v61  ;;  %v9795_v61 = vld [vmem:[%s14970_s2 + $0x220] ss:$8 sps:$4 sm:$0xff]  }
 0x399   :  { %7237 = vmatprep.subr.bf16.mxu0 %v9755_v51  ;;  %v9803_v51 = vld [vmem:[%s14970_s2 + $0x214] ss:$8 sps:$4 sm:$0xff]  }
 0x39a   :  { %7277 = vmatpush2.bf16.msra.mxu1 %v9750_v35  ;;  %v9798_v35 = vld [vmem:[%s14970_s2 + $0x320] ss:$8 sps:$4 sm:$0xff]  }
 0x39b   :  { %7278 = vmatprep.subr.bf16.mxu1 %v9758_v52  ;;  %v9806_v52 = vld [vmem:[%s14970_s2 + $0x314] ss:$8 sps:$4 sm:$0xff]  }
 0x39c   :  { %7238 = vmatpush2.bf16.msra.mxu0 %v9753_v55  ;;  %v9801_v55 = vld [vmem:[%s14970_s2 + $0x210] ss:$8 sps:$4 sm:$0xff]  }
 0x39d   :  { %7239 = vmatprep.subr.bf16.mxu0 %v9761_v7  ;;  %v9809_v7 = vld [vmem:[%s14970_s2 + $0x204] ss:$8 sps:$4 sm:$0xff]  }
 0x39e   :  { %7279 = vmatpush2.bf16.msra.mxu1 %v9756_v60  ;;  %v9804_v60 = vld [vmem:[%s14970_s2 + $0x310] ss:$8 sps:$4 sm:$0xff]  }
 0x39f   :  { %7280 = vmatprep.subr.bf16.mxu1 %v9764_v39  ;;  %v9812_v39 = vld [vmem:[%s14970_s2 + $0x304] ss:$8 sps:$4 sm:$0xff]  }
 0x3a0   :  { %7240 = vmatpush2.bf16.msra.mxu0 %v9759_v12  ;;  %v9807_v12 = vld [vmem:[%s14970_s2 + $0x200] ss:$8 sps:$4 sm:$0xff]  }
 0x3a1   :  { %7291 = vmatprep.subr.bf16.mxu0 %v9767_v21  ;;  %v9815_v21 = vld [vmem:[%s14970_s2 + $0x2f4] ss:$8 sps:$4 sm:$0xff]  }
 0x3a2   :  { %7281 = vmatpush2.bf16.msra.mxu1 %v9762_v36  ;;  %v9810_v36 = vld [vmem:[%s14970_s2 + $0x300] ss:$8 sps:$4 sm:$0xff]  }
 0x3a3   :  { %v5077_v27 = vpop.f32.mrf.mxu0  ;;  %7242 = vmatmul.mubr.bf16.vlgmr.msra.gmra.mxu0 %v11189_v44  ;;  %7332 = vmatprep.subr.bf16.mxu1 %v9770_v45  ;;  %v9779_v44 = vld [vmem:[%s14970_s2 + $0x254] ss:$8 sps:$4 sm:$0xff]  }
 0x3a4   :  { %v5078_v31 = vadd.f32 %v5077_v27, %v13703_v18  ;;  %7292 = vmatpush1.bf16.msra.mxu0 %v9765_v40  ;;  %7323 = vmatprep.mubr.bf16.mxu0 %v11347_v41  ;;  %v9818_v45 = vld [vmem:[%s14970_s2 + $0x3f4] ss:$8 sps:$4 sm:$0xff]   ;;  %v9813_v40 = vld [vmem:[%s14970_s2 + $0x2f0] ss:$8 sps:$4 sm:$0xff]   ;;  %v9824_v27 = vld [vmem:[%s14970_s2 + $0x3e4] ss:$8 sps:$4 sm:$0xff]  }
 0x3a5   :  { %v5118_v33 = vpop.f32.mrf.mxu1  ;;  %7283 = vmatmul.mubr.bf16.vlgmr.msra.gmra.mxu1 %v11199_v49  ;;  %v5079_v37 = vpop.f32.mrf.mxu0  ;;  %7293 = vmatprep.subr.bf16.mxu0 %v9773_v11  ;;  %v9782_v49 = vld [vmem:[%s14970_s2 + $0x354] ss:$8 sps:$4 sm:$0xff]   ;;  %v9821_v11 = vld [vmem:[%s14970_s2 + $0x2e4] ss:$8 sps:$4 sm:$0xff]  }
 0x3a6   :  { %v13905_v1 = vadd.f32 %v5118_v33, %v5078_v31  ;;  %7333 = vmatpush1.bf16.msra.mxu1 %v9768_v23  ;;  %v5080_v18 = vadd.f32 %v5079_v37, %v13713_v3  ;;  %7364 = vmatprep.mubr.bf16.mxu1 %v11358_v2  ;;  %v9777_v3 = vld [vmem:[%s14970_s2 + $0x250] ss:$8 sps:$4 sm:$0xff]   ;;  %v9785_v2 = vld [vmem:[%s14970_s2 + $0x244] ss:$8 sps:$4 sm:$0xff]   ;;  %v9827_v31 = vld [vmem:[%s14970_s2 + $0x2d4] ss:$8 sps:$4 sm:$0xff]  }
 0x3a7   :  { %v5120_v41 = vpop.f32.mrf.mxu1  ;;  %v5081_v16 = vpop.f32.mrf.mxu0  ;;  %7334 = vmatprep.subr.bf16.mxu1 %v9776_v28  ;;  %v9816_v23 = vld [vmem:[%s14970_s2 + $0x3f0] ss:$8 sps:$4 sm:$0xff]   ;;  %v9819_v28 = vld [vmem:[%s14970_s2 + $0x2e0] ss:$8 sps:$4 sm:$0xff]   ;;  %v9830_v33 = vld [vmem:[%s14970_s2 + $0x3d4] ss:$8 sps:$4 sm:$0xff]  }
 0x3a8   :  { %v13915_v57 = vadd.f32 %v5120_v41, %v5080_v18  ;;  %7294 = vmatpush1.bf16.msra.mxu0 %v9771_v32  ;;  %v9822_v32 = vld [vmem:[%s14970_s2 + $0x3e0] ss:$8 sps:$4 sm:$0xff]   ;;  %v9825_v37 = vld [vmem:[%s14970_s2 + $0x2d0] ss:$8 sps:$4 sm:$0xff]   ;;  %v9839_v16 = vld [vmem:[%s14970_s2 + $0x2b4] ss:$8 sps:$4 sm:$0xff]  }
 0x3a9   :  { %v5122_v4 = vpop.f32.mrf.mxu1  ;;  %v5082_v48 = vpop.f32.mrf.mxu0  ;;  %7295 = vmatprep.subr.bf16.mxu0 %v9779_v44  ;;  %v9833_v44 = vld [vmem:[%s14970_s2 + $0x2c4] ss:$8 sps:$4 sm:$0xff]   ;;  %v9828_v18 = vld [vmem:[%s14970_s2 + $0x3d0] ss:$8 sps:$4 sm:$0xff]   ;;  %v9831_v41 = vld [vmem:[%s14970_s2 + $0x2c0] ss:$8 sps:$4 sm:$0xff]  }
 0x3aa   :  { %7335 = vmatpush1.bf16.msra.mxu1 %v9774_v13  ;;  %v9836_v13 = vld [vmem:[%s14970_s2 + $0x3c4] ss:$8 sps:$4 sm:$0xff]   ;;  %v9837_v4 = vld [vmem:[%s14970_s2 + $0x2b0] ss:$8 sps:$4 sm:$0xff]  }
 0x3ab   :  { %v5123_v20 = vpop.f32.mrf.mxu1  ;;  %7336 = vmatprep.subr.bf16.mxu1 %v9782_v49  ;;  %v9834_v49 = vld [vmem:[%s14970_s2 + $0x3c0] ss:$8 sps:$4 sm:$0xff]   ;;  %v9845_v48 = vld [vmem:[%s14970_s2 + $0x2a4] ss:$8 sps:$4 sm:$0xff]  }
 0x3ac   :  { %7296 = vmatpush1.bf16.msra.mxu0 %v9777_v3  ;;  %v9842_v3 = vld [vmem:[%s14970_s2 + $0x3b4] ss:$8 sps:$4 sm:$0xff]   ;;  %v9843_v20 = vld [vmem:[%s14970_s2 + $0x2a0] ss:$8 sps:$4 sm:$0xff]  }
 0x3ad   :  { %7297 = vmatprep.subr.bf16.mxu0 %v9785_v2  ;;  %v9840_v2 = vld [vmem:[%s14970_s2 + $0x3b0] ss:$8 sps:$4 sm:$0xff]  }
 0x3ae   :  { %7337 = vmatpush1.bf16.msra.mxu1 %v9780_v24  ;;  %v9848_v24 = vld [vmem:[%s14970_s2 + $0x3a4] ss:$8 sps:$4 sm:$0xff]  }
 0x3af   :  { %7338 = vmatprep.subr.bf16.mxu1 %v9788_v47  ;;  %v9851_v47 = vld [vmem:[%s14970_s2 + $0x294] ss:$8 sps:$4 sm:$0xff]  }
 0x3b0   :  { %7298 = vmatpush1.bf16.msra.mxu0 %v9783_v22  ;;  %v9846_v22 = vld [vmem:[%s14970_s2 + $0x3a0] ss:$8 sps:$4 sm:$0xff]  }
 0x3b1   :  { %7299 = vmatprep.subr.bf16.mxu0 %v9791_v59  ;;  %v9854_v59 = vld [vmem:[%s14970_s2 + $0x394] ss:$8 sps:$4 sm:$0xff]  }
 0x3b2   :  { %7339 = vmatpush1.bf16.msra.mxu1 %v9786_v53  ;;  %v9849_v53 = vld [vmem:[%s14970_s2 + $0x290] ss:$8 sps:$4 sm:$0xff]  }
 0x3b3   :  { %7340 = vmatprep.subr.bf16.mxu1 %v9794_v42  ;;  %v9857_v42 = vld [vmem:[%s14970_s2 + $0x284] ss:$8 sps:$4 sm:$0xff]  }
 0x3b4   :  { %7300 = vmatpush1.bf16.msra.mxu0 %v9789_v43  ;;  %v9852_v43 = vld [vmem:[%s14970_s2 + $0x390] ss:$8 sps:$4 sm:$0xff]  }
 0x3b5   :  { %7301 = vmatprep.subr.bf16.mxu0 %v9797_v50  ;;  %v9860_v50 = vld [vmem:[%s14970_s2 + $0x384] ss:$8 sps:$4 sm:$0xff]  }
 0x3b6   :  { %7341 = vmatpush1.bf16.msra.mxu1 %v9792_v17  ;;  %v9855_v17 = vld [vmem:[%s14970_s2 + $0x280] ss:$8 sps:$4 sm:$0xff]  }
 0x3b7   :  { %7342 = vmatprep.subr.bf16.mxu1 %v9800_v30  ;;  %v9863_v30 = vld [vmem:[%s14970_s2 + $0x474] ss:$8 sps:$4 sm:$0xff]  }
 0x3b8   :  { %7302 = vmatpush1.bf16.msra.mxu0 %v9795_v61  ;;  %v9858_v61 = vld [vmem:[%s14970_s2 + $0x380] ss:$8 sps:$4 sm:$0xff]  }
 0x3b9   :  { %7303 = vmatprep.subr.bf16.mxu0 %v9803_v51  ;;  %v9866_v51 = vld [vmem:[%s14970_s2 + $0x574] ss:$8 sps:$4 sm:$0xff]  }
 0x3ba   :  { %7343 = vmatpush1.bf16.msra.mxu1 %v9798_v35  ;;  %v9861_v35 = vld [vmem:[%s14970_s2 + $0x470] ss:$8 sps:$4 sm:$0xff]  }
 0x3bb   :  { %7344 = vmatprep.subr.bf16.mxu1 %v9806_v52  ;;  %v9869_v52 = vld [vmem:[%s14970_s2 + $0x464] ss:$8 sps:$4 sm:$0xff]  }
 0x3bc   :  { %7304 = vmatpush1.bf16.msra.mxu0 %v9801_v55  ;;  %v9864_v55 = vld [vmem:[%s14970_s2 + $0x570] ss:$8 sps:$4 sm:$0xff]  }
 0x3bd   :  { %7305 = vmatprep.subr.bf16.mxu0 %v9809_v7 }
 0x3be   :  { %7345 = vmatpush1.bf16.msra.mxu1 %v9804_v60  ;;  %v9872_v60 = vld [vmem:[%s14970_s2 + $0x564] ss:$8 sps:$4 sm:$0xff]  }
 0x3bf   :  { %7346 = vmatprep.subr.bf16.mxu1 %v9812_v39 }
 0x3c0   :  { %7306 = vmatpush1.bf16.msra.mxu0 %v9807_v12  ;;  %v9867_v12 = vld [vmem:[%s14970_s2 + $0x460] ss:$8 sps:$4 sm:$0xff]  }
 0x3c1   :  { %7307 = vmatprep.subr.bf16.mxu0 %v9815_v21 }
 0x3c2   :  { %7347 = vmatpush1.bf16.msra.mxu1 %v9810_v36 }
 0x3c3   :  { %7348 = vmatprep.subr.bf16.mxu1 %v9818_v45 }
 0x3c4   :  { %7308 = vmatpush2.bf16.msra.mxu0 %v9813_v40  ;;  %v9870_v40 = vld [vmem:[%s14970_s2 + $0x560] ss:$8 sps:$4 sm:$0xff]  }
 0x3c5   :  { %7309 = vmatprep.subr.bf16.mxu0 %v9821_v11 }
 0x3c6   :  { %7349 = vmatpush2.bf16.msra.mxu1 %v9816_v23 }
 0x3c7   :  { %7350 = vmatprep.subr.bf16.mxu1 %v9824_v27 }
 0x3c8   :  { %7310 = vmatpush2.bf16.msra.mxu0 %v9819_v28 }
 0x3c9   :  { %7311 = vmatprep.subr.bf16.mxu0 %v9827_v31  ;;  %v9876_v31 = vld [vmem:[%s14970_s2 + $0x550] ss:$8 sps:$4 sm:$0xff]  }
 0x3ca   :  { %7351 = vmatpush2.bf16.msra.mxu1 %v9822_v32 }
 0x3cb   :  { %7352 = vmatprep.subr.bf16.mxu1 %v9830_v33  ;;  %v9884_v33 = vld [vmem:[%s14970_s2 + $0x544] ss:$8 sps:$4 sm:$0xff]  }
 0x3cc   :  { %7312 = vmatpush2.bf16.msra.mxu0 %v9825_v37  ;;  %v9879_v37 = vld [vmem:[%s14970_s2 + $0x440] ss:$8 sps:$4 sm:$0xff]  }
 0x3cd   :  { %7313 = vmatprep.subr.bf16.mxu0 %v9833_v44  ;;  %v9887_v44 = vld [vmem:[%s14970_s2 + $0x434] ss:$8 sps:$4 sm:$0xff]  }
 0x3ce   :  { %7353 = vmatpush2.bf16.msra.mxu1 %v9828_v18  ;;  %v9882_v18 = vld [vmem:[%s14970_s2 + $0x540] ss:$8 sps:$4 sm:$0xff]  }
 0x3cf   :  { %7354 = vmatprep.subr.bf16.mxu1 %v9836_v13  ;;  %v9890_v13 = vld [vmem:[%s14970_s2 + $0x534] ss:$8 sps:$4 sm:$0xff]  }
 0x3d0   :  { %7314 = vmatpush2.bf16.msra.mxu0 %v9831_v41  ;;  %v9885_v41 = vld [vmem:[%s14970_s2 + $0x430] ss:$8 sps:$4 sm:$0xff]  }
 0x3d1   :  { %7315 = vmatprep.subr.bf16.mxu0 %v9839_v16  ;;  %v9893_v16 = vld [vmem:[%s14970_s2 + $0x424] ss:$8 sps:$4 sm:$0xff]  }
 0x3d2   :  { %7355 = vmatpush2.bf16.msra.mxu1 %v9834_v49  ;;  %v9888_v49 = vld [vmem:[%s14970_s2 + $0x530] ss:$8 sps:$4 sm:$0xff]  }
 0x3d3   :  { %7356 = vmatprep.subr.bf16.mxu1 %v9842_v3  ;;  %v9896_v3 = vld [vmem:[%s14970_s2 + $0x524] ss:$8 sps:$4 sm:$0xff]  }
 0x3d4   :  { %7316 = vmatpush2.bf16.msra.mxu0 %v9837_v4  ;;  %v9891_v4 = vld [vmem:[%s14970_s2 + $0x420] ss:$8 sps:$4 sm:$0xff]  }
 0x3d5   :  { %7317 = vmatprep.subr.bf16.mxu0 %v9845_v48  ;;  %v9899_v48 = vld [vmem:[%s14970_s2 + $0x414] ss:$8 sps:$4 sm:$0xff]  }
 0x3d6   :  { %7357 = vmatpush2.bf16.msra.mxu1 %v9840_v2  ;;  %v9894_v2 = vld [vmem:[%s14970_s2 + $0x520] ss:$8 sps:$4 sm:$0xff]  }
 0x3d7   :  { %7358 = vmatprep.subr.bf16.mxu1 %v9848_v24  ;;  %v9902_v24 = vld [vmem:[%s14970_s2 + $0x514] ss:$8 sps:$4 sm:$0xff]  }
 0x3d8   :  { %7318 = vmatpush2.bf16.msra.mxu0 %v9843_v20  ;;  %v9897_v20 = vld [vmem:[%s14970_s2 + $0x410] ss:$8 sps:$4 sm:$0xff]  }
 0x3d9   :  { %7319 = vmatprep.subr.bf16.mxu0 %v9851_v47  ;;  %v9905_v47 = vld [vmem:[%s14970_s2 + $0x404] ss:$8 sps:$4 sm:$0xff]  }
 0x3da   :  { %7359 = vmatpush2.bf16.msra.mxu1 %v9846_v22  ;;  %v9900_v22 = vld [vmem:[%s14970_s2 + $0x510] ss:$8 sps:$4 sm:$0xff]  }
 0x3db   :  { %7360 = vmatprep.subr.bf16.mxu1 %v9854_v59  ;;  %v9908_v59 = vld [vmem:[%s14970_s2 + $0x504] ss:$8 sps:$4 sm:$0xff]  }
 0x3dc   :  { %7320 = vmatpush2.bf16.msra.mxu0 %v9849_v53  ;;  %v9903_v53 = vld [vmem:[%s14970_s2 + $0x400] ss:$8 sps:$4 sm:$0xff]  }
 0x3dd   :  { %7321 = vmatprep.subr.bf16.mxu0 %v9857_v42  ;;  %v9911_v42 = vld [vmem:[%s14970_s2 + $0x4f4] ss:$8 sps:$4 sm:$0xff]  }
 0x3de   :  { %7361 = vmatpush2.bf16.msra.mxu1 %v9852_v43  ;;  %v9906_v43 = vld [vmem:[%s14970_s2 + $0x500] ss:$8 sps:$4 sm:$0xff]  }
 0x3df   :  { %7362 = vmatprep.subr.bf16.mxu1 %v9860_v50  ;;  %v9914_v50 = vld [vmem:[%s14970_s2 + $0x5f4] ss:$8 sps:$4 sm:$0xff]  }
 0x3e0   :  { %7322 = vmatpush2.bf16.msra.mxu0 %v9855_v17  ;;  %v9909_v17 = vld [vmem:[%s14970_s2 + $0x4f0] ss:$8 sps:$4 sm:$0xff]  }
 0x3e1   :  { %7373 = vmatprep.subr.bf16.mxu0 %v9863_v30  ;;  %v9917_v30 = vld [vmem:[%s14970_s2 + $0x4e4] ss:$8 sps:$4 sm:$0xff]  }
 0x3e2   :  { %7363 = vmatpush2.bf16.msra.mxu1 %v9858_v61  ;;  %v9912_v61 = vld [vmem:[%s14970_s2 + $0x5f0] ss:$8 sps:$4 sm:$0xff]  }
 0x3e3   :  { %v5159_v7 = vpop.f32.mrf.mxu0  ;;  %7324 = vmatmul.mubr.bf16.vlgmr.msra.gmra.mxu0 %v11339_v58  ;;  %7414 = vmatprep.subr.bf16.mxu1 %v9866_v51  ;;  %v9875_v58 = vld [vmem:[%s14970_s2 + $0x454] ss:$8 sps:$4 sm:$0xff]   ;;  %v9920_v51 = vld [vmem:[%s14970_s2 + $0x5e4] ss:$8 sps:$4 sm:$0xff]  }
 0x3e4   :  { %v5160_v39 = vadd.f32 %v5159_v7, %v13905_v1  ;;  %7374 = vmatpush1.bf16.msra.mxu0 %v9861_v35  ;;  %7405 = vmatprep.mubr.bf16.mxu0 %v11508_v14  ;;  %v9915_v35 = vld [vmem:[%s14970_s2 + $0x4e0] ss:$8 sps:$4 sm:$0xff]   ;;  %v9926_v7 = vld [vmem:[%s14970_s2 + $0x5d4] ss:$8 sps:$4 sm:$0xff]  }
 0x3e5   :  { %v5200_v21 = vpop.f32.mrf.mxu1  ;;  %7365 = vmatmul.mubr.bf16.vlgmr.msra.gmra.mxu1 %v11349_v62  ;;  %v5161_v36 = vpop.f32.mrf.mxu0  ;;  %7375 = vmatprep.subr.bf16.mxu0 %v9869_v52  ;;  %v9878_v62 = vld [vmem:[%s14970_s2 + $0x554] ss:$8 sps:$4 sm:$0xff]  }
 0x3e6   :  { %v14107_v45 = vadd.f32 %v5200_v21, %v5160_v39  ;;  %7415 = vmatpush1.bf16.msra.mxu1 %v9864_v55  ;;  %v5162_v1 = vadd.f32 %v5161_v36, %v13915_v57  ;;  %7446 = vmatprep.mubr.bf16.mxu1 %v11519_v19  ;;  %v9873_v57 = vld [vmem:[%s14970_s2 + $0x450] ss:$8 sps:$4 sm:$0xff]   ;;  %v9881_v19 = vld [vmem:[%s14970_s2 + $0x444] ss:$8 sps:$4 sm:$0xff]   ;;  %v9923_v52 = vld [vmem:[%s14970_s2 + $0x4d4] ss:$8 sps:$4 sm:$0xff]  }
 0x3e7   :  { %v5202_v14 = vpop.f32.mrf.mxu1  ;;  %v5163_v11 = vpop.f32.mrf.mxu0  ;;  %7416 = vmatprep.subr.bf16.mxu1 %v9872_v60  ;;  %v9918_v55 = vld [vmem:[%s14970_s2 + $0x5e0] ss:$8 sps:$4 sm:$0xff]   ;;  %v9921_v60 = vld [vmem:[%s14970_s2 + $0x4d0] ss:$8 sps:$4 sm:$0xff]   ;;  %v9929_v39 = vld [vmem:[%s14970_s2 + $0x4c4] ss:$8 sps:$4 sm:$0xff]  }
 0x3e8   :  { %v14117_v23 = vadd.f32 %v5202_v14, %v5162_v1  ;;  %7376 = vmatpush1.bf16.msra.mxu0 %v9867_v12  ;;  %v9924_v12 = vld [vmem:[%s14970_s2 + $0x5d0] ss:$8 sps:$4 sm:$0xff]   ;;  %v9932_v21 = vld [vmem:[%s14970_s2 + $0x5c4] ss:$8 sps:$4 sm:$0xff]   ;;  %v9927_v36 = vld [vmem:[%s14970_s2 + $0x4c0] ss:$8 sps:$4 sm:$0xff]  }
 0x3e9   :  { %v5204_v27 = vpop.f32.mrf.mxu1  ;;  %v5164_v28 = vpop.f32.mrf.mxu0  ;;  %7377 = vmatprep.subr.bf16.mxu0 %v9875_v58  ;;  %v9935_v58 = vld [vmem:[%s14970_s2 + $0x4b4] ss:$8 sps:$4 sm:$0xff]   ;;  %v9930_v1 = vld [vmem:[%s14970_s2 + $0x5c0] ss:$8 sps:$4 sm:$0xff]   ;;  %v9933_v14 = vld [vmem:[%s14970_s2 + $0x4b0] ss:$8 sps:$4 sm:$0xff]  }
 0x3ea   :  { %7417 = vmatpush1.bf16.msra.mxu1 %v9870_v40  ;;  %v9938_v40 = vld [vmem:[%s14970_s2 + $0x5b4] ss:$8 sps:$4 sm:$0xff]   ;;  %v9941_v11 = vld [vmem:[%s14970_s2 + $0x4a4] ss:$8 sps:$4 sm:$0xff]   ;;  %v9939_v27 = vld [vmem:[%s14970_s2 + $0x4a0] ss:$8 sps:$4 sm:$0xff]  }
 0x3eb   :  { %v5205_v32 = vpop.f32.mrf.mxu1  ;;  %7418 = vmatprep.subr.bf16.mxu1 %v9878_v62  ;;  %v9936_v62 = vld [vmem:[%s14970_s2 + $0x5b0] ss:$8 sps:$4 sm:$0xff]   ;;  %v9947_v28 = vld [vmem:[%s14970_s2 + $0x494] ss:$8 sps:$4 sm:$0xff]  }
 0x3ec   :  { %7378 = vmatpush1.bf16.msra.mxu0 %v9873_v57  ;;  %v9944_v57 = vld [vmem:[%s14970_s2 + $0x5a4] ss:$8 sps:$4 sm:$0xff]   ;;  %v9945_v32 = vld [vmem:[%s14970_s2 + $0x490] ss:$8 sps:$4 sm:$0xff]  }
 0x3ed   :  { %7379 = vmatprep.subr.bf16.mxu0 %v9881_v19  ;;  %v9942_v19 = vld [vmem:[%s14970_s2 + $0x5a0] ss:$8 sps:$4 sm:$0xff]  }
 0x3ee   :  { %7419 = vmatpush1.bf16.msra.mxu1 %v9876_v31  ;;  %v9950_v31 = vld [vmem:[%s14970_s2 + $0x594] ss:$8 sps:$4 sm:$0xff]  }
 0x3ef   :  { %7420 = vmatprep.subr.bf16.mxu1 %v9884_v33  ;;  %v9953_v33 = vld [vmem:[%s14970_s2 + $0x484] ss:$8 sps:$4 sm:$0xff]  }
 0x3f0   :  { %7380 = vmatpush1.bf16.msra.mxu0 %v9879_v37  ;;  %v9948_v37 = vld [vmem:[%s14970_s2 + $0x590] ss:$8 sps:$4 sm:$0xff]  }
 0x3f1   :  { %7381 = vmatprep.subr.bf16.mxu0 %v9887_v44  ;;  %v9956_v44 = vld [vmem:[%s14970_s2 + $0x584] ss:$8 sps:$4 sm:$0xff]  }
 0x3f2   :  { %7421 = vmatpush1.bf16.msra.mxu1 %v9882_v18  ;;  %v9951_v18 = vld [vmem:[%s14970_s2 + $0x480] ss:$8 sps:$4 sm:$0xff]  }
 0x3f3   :  { %7422 = vmatprep.subr.bf16.mxu1 %v9890_v13  ;;  %v9959_v13 = vld [vmem:[%s14970_s2 + $0x674] ss:$8 sps:$4 sm:$0xff]  }
 0x3f4   :  { %7382 = vmatpush1.bf16.msra.mxu0 %v9885_v41  ;;  %v9954_v41 = vld [vmem:[%s14970_s2 + $0x580] ss:$8 sps:$4 sm:$0xff]  }
 0x3f5   :  { %7383 = vmatprep.subr.bf16.mxu0 %v9893_v16  ;;  %v9962_v16 = vld [vmem:[%s14970_s2 + $0x774] ss:$8 sps:$4 sm:$0xff]  }
 0x3f6   :  { %7423 = vmatpush1.bf16.msra.mxu1 %v9888_v49  ;;  %v9957_v49 = vld [vmem:[%s14970_s2 + $0x670] ss:$8 sps:$4 sm:$0xff]  }
 0x3f7   :  { %7424 = vmatprep.subr.bf16.mxu1 %v9896_v3  ;;  %v9965_v3 = vld [vmem:[%s14970_s2 + $0x664] ss:$8 sps:$4 sm:$0xff]  }
 0x3f8   :  { %7384 = vmatpush1.bf16.msra.mxu0 %v9891_v4  ;;  %v9960_v4 = vld [vmem:[%s14970_s2 + $0x770] ss:$8 sps:$4 sm:$0xff]  }
 0x3f9   :  { %7385 = vmatprep.subr.bf16.mxu0 %v9899_v48 }
 0x3fa   :  { %7425 = vmatpush1.bf16.msra.mxu1 %v9894_v2  ;;  %v9968_v2 = vld [vmem:[%s14970_s2 + $0x764] ss:$8 sps:$4 sm:$0xff]  }
 0x3fb   :  { %7426 = vmatprep.subr.bf16.mxu1 %v9902_v24 }
 0x3fc   :  { %7386 = vmatpush1.bf16.msra.mxu0 %v9897_v20  ;;  %v9963_v20 = vld [vmem:[%s14970_s2 + $0x660] ss:$8 sps:$4 sm:$0xff]  }
 0x3fd   :  { %7387 = vmatprep.subr.bf16.mxu0 %v9905_v47 }
 0x3fe   :  { %7427 = vmatpush1.bf16.msra.mxu1 %v9900_v22 }
 0x3ff   :  { %7428 = vmatprep.subr.bf16.mxu1 %v9908_v59 }
 0x400   :  { %7388 = vmatpush1.bf16.msra.mxu0 %v9903_v53  ;;  %v9966_v53 = vld [vmem:[%s14970_s2 + $0x760] ss:$8 sps:$4 sm:$0xff]  }
 0x401   :  { %7389 = vmatprep.subr.bf16.mxu0 %v9911_v42 }
 0x402   :  { %7429 = vmatpush1.bf16.msra.mxu1 %v9906_v43 }
 0x403   :  { %7430 = vmatprep.subr.bf16.mxu1 %v9914_v50 }
 0x404   :  { %7390 = vmatpush2.bf16.msra.mxu0 %v9909_v17 }
 0x405   :  { %7391 = vmatprep.subr.bf16.mxu0 %v9917_v30  ;;  %v9972_v30 = vld [vmem:[%s14970_s2 + $0x750] ss:$8 sps:$4 sm:$0xff]  }
 0x406   :  { %7431 = vmatpush2.bf16.msra.mxu1 %v9912_v61 }
 0x407   :  { %7432 = vmatprep.subr.bf16.mxu1 %v9920_v51  ;;  %v9980_v51 = vld [vmem:[%s14970_s2 + $0x744] ss:$8 sps:$4 sm:$0xff]  }
 0x408   :  { %7392 = vmatpush2.bf16.msra.mxu0 %v9915_v35  ;;  %v9975_v35 = vld [vmem:[%s14970_s2 + $0x640] ss:$8 sps:$4 sm:$0xff]  }
 0x409   :  { %7393 = vmatprep.subr.bf16.mxu0 %v9923_v52  ;;  %v9983_v52 = vld [vmem:[%s14970_s2 + $0x634] ss:$8 sps:$4 sm:$0xff]  }
 0x40a   :  { %7433 = vmatpush2.bf16.msra.mxu1 %v9918_v55  ;;  %v9978_v55 = vld [vmem:[%s14970_s2 + $0x740] ss:$8 sps:$4 sm:$0xff]  }
 0x40b   :  { %7434 = vmatprep.subr.bf16.mxu1 %v9926_v7  ;;  %v9986_v7 = vld [vmem:[%s14970_s2 + $0x734] ss:$8 sps:$4 sm:$0xff]  }
 0x40c   :  { %7394 = vmatpush2.bf16.msra.mxu0 %v9921_v60  ;;  %v9981_v60 = vld [vmem:[%s14970_s2 + $0x630] ss:$8 sps:$4 sm:$0xff]  }
 0x40d   :  { %7395 = vmatprep.subr.bf16.mxu0 %v9929_v39  ;;  %v9989_v39 = vld [vmem:[%s14970_s2 + $0x624] ss:$8 sps:$4 sm:$0xff]  }
 0x40e   :  { %7435 = vmatpush2.bf16.msra.mxu1 %v9924_v12  ;;  %v9984_v12 = vld [vmem:[%s14970_s2 + $0x730] ss:$8 sps:$4 sm:$0xff]  }
 0x40f   :  { %7436 = vmatprep.subr.bf16.mxu1 %v9932_v21  ;;  %v9992_v21 = vld [vmem:[%s14970_s2 + $0x724] ss:$8 sps:$4 sm:$0xff]  }
 0x410   :  { %7396 = vmatpush2.bf16.msra.mxu0 %v9927_v36  ;;  %v9987_v36 = vld [vmem:[%s14970_s2 + $0x620] ss:$8 sps:$4 sm:$0xff]  }
 0x411   :  { %7397 = vmatprep.subr.bf16.mxu0 %v9935_v58  ;;  %v9995_v58 = vld [vmem:[%s14970_s2 + $0x614] ss:$8 sps:$4 sm:$0xff]  }
 0x412   :  { %7437 = vmatpush2.bf16.msra.mxu1 %v9930_v1  ;;  %v9990_v1 = vld [vmem:[%s14970_s2 + $0x720] ss:$8 sps:$4 sm:$0xff]  }
 0x413   :  { %7438 = vmatprep.subr.bf16.mxu1 %v9938_v40  ;;  %v9998_v40 = vld [vmem:[%s14970_s2 + $0x714] ss:$8 sps:$4 sm:$0xff]  }
 0x414   :  { %7398 = vmatpush2.bf16.msra.mxu0 %v9933_v14  ;;  %v9993_v14 = vld [vmem:[%s14970_s2 + $0x610] ss:$8 sps:$4 sm:$0xff]  }
 0x415   :  { %7399 = vmatprep.subr.bf16.mxu0 %v9941_v11  ;;  %v10001_v11 = vld [vmem:[%s14970_s2 + $0x604] ss:$8 sps:$4 sm:$0xff]  }
 0x416   :  { %7439 = vmatpush2.bf16.msra.mxu1 %v9936_v62  ;;  %v9996_v62 = vld [vmem:[%s14970_s2 + $0x710] ss:$8 sps:$4 sm:$0xff]  }
 0x417   :  { %7440 = vmatprep.subr.bf16.mxu1 %v9944_v57  ;;  %v10004_v57 = vld [vmem:[%s14970_s2 + $0x704] ss:$8 sps:$4 sm:$0xff]  }
 0x418   :  { %7400 = vmatpush2.bf16.msra.mxu0 %v9939_v27  ;;  %v9999_v27 = vld [vmem:[%s14970_s2 + $0x600] ss:$8 sps:$4 sm:$0xff]  }
 0x419   :  { %7401 = vmatprep.subr.bf16.mxu0 %v9947_v28  ;;  %v10007_v28 = vld [vmem:[%s14970_s2 + $0x6f4] ss:$8 sps:$4 sm:$0xff]  }
 0x41a   :  { %7441 = vmatpush2.bf16.msra.mxu1 %v9942_v19  ;;  %v10002_v19 = vld [vmem:[%s14970_s2 + $0x700] ss:$8 sps:$4 sm:$0xff]  }
 0x41b   :  { %7442 = vmatprep.subr.bf16.mxu1 %v9950_v31  ;;  %v10010_v31 = vld [vmem:[%s14970_s2 + $0x7f4] ss:$8 sps:$4 sm:$0xff]  }
 0x41c   :  { %7402 = vmatpush2.bf16.msra.mxu0 %v9945_v32  ;;  %v10005_v32 = vld [vmem:[%s14970_s2 + $0x6f0] ss:$8 sps:$4 sm:$0xff]  }
 0x41d   :  { %7403 = vmatprep.subr.bf16.mxu0 %v9953_v33  ;;  %v10013_v33 = vld [vmem:[%s14970_s2 + $0x6e4] ss:$8 sps:$4 sm:$0xff]  }
 0x41e   :  { %7443 = vmatpush2.bf16.msra.mxu1 %v9948_v37  ;;  %v10008_v37 = vld [vmem:[%s14970_s2 + $0x7f0] ss:$8 sps:$4 sm:$0xff]  }
 0x41f   :  { %7444 = vmatprep.subr.bf16.mxu1 %v9956_v44  ;;  %v10016_v44 = vld [vmem:[%s14970_s2 + $0x7e4] ss:$8 sps:$4 sm:$0xff]  }
 0x420   :  { %7404 = vmatpush2.bf16.msra.mxu0 %v9951_v18  ;;  %v10011_v18 = vld [vmem:[%s14970_s2 + $0x6e0] ss:$8 sps:$4 sm:$0xff]  }
 0x421   :  { %7455 = vmatprep.subr.bf16.mxu0 %v9959_v13  ;;  %v10019_v13 = vld [vmem:[%s14970_s2 + $0x6d4] ss:$8 sps:$4 sm:$0xff]  }
 0x422   :  { %7445 = vmatpush2.bf16.msra.mxu1 %v9954_v41  ;;  %v10014_v41 = vld [vmem:[%s14970_s2 + $0x7e0] ss:$8 sps:$4 sm:$0xff]  }
 0x423   :  { %v5241_v48 = vpop.f32.mrf.mxu0  ;;  %7406 = vmatmul.mubr.bf16.vlgmr.msra.gmra.mxu0 %v11500_v10  ;;  %7496 = vmatprep.subr.bf16.mxu1 %v9962_v16  ;;  %v9971_v10 = vld [vmem:[%s14970_s2 + $0x654] ss:$8 sps:$4 sm:$0xff]  }
 0x424   :  { %v5242_v24 = vadd.f32 %v5241_v48, %v14107_v45  ;;  %7456 = vmatpush1.bf16.msra.mxu0 %v9957_v49  ;;  %7487 = vmatprep.mubr.bf16.mxu0 %v11686_v63  ;;  %v10022_v16 = vld [vmem:[%s14970_s2 + $0x7d4] ss:$8 sps:$4 sm:$0xff]   ;;  %v10017_v49 = vld [vmem:[%s14970_s2 + $0x6d0] ss:$8 sps:$4 sm:$0xff]   ;;  %v10028_v48 = vld [vmem:[%s14970_s2 + $0x7c4] ss:$8 sps:$4 sm:$0xff]  }
 0x425   :  { %v5282_v47 = vpop.f32.mrf.mxu1  ;;  %7447 = vmatmul.mubr.bf16.vlgmr.msra.gmra.mxu1 %v11510_v15  ;;  %v5243_v22 = vpop.f32.mrf.mxu0  ;;  %7457 = vmatprep.subr.bf16.mxu0 %v9965_v3  ;;  %v9974_v15 = vld [vmem:[%s14970_s2 + $0x754] ss:$8 sps:$4 sm:$0xff]   ;;  %v10025_v3 = vld [vmem:[%s14970_s2 + $0x6c4] ss:$8 sps:$4 sm:$0xff]  }
 0x426   :  { %v14309_v59 = vadd.f32 %v5282_v47, %v5242_v24  ;;  %7497 = vmatpush1.bf16.msra.mxu1 %v9960_v4  ;;  %v5244_v45 = vadd.f32 %v5243_v22, %v14117_v23  ;;  %7528 = vmatprep.mubr.bf16.mxu1 %v11697_v8  ;;  %v9969_v23 = vld [vmem:[%s14970_s2 + $0x650] ss:$8 sps:$4 sm:$0xff]   ;;  %v9977_v8 = vld [vmem:[%s14970_s2 + $0x644] ss:$8 sps:$4 sm:$0xff]   ;;  %v10031_v24 = vld [vmem:[%s14970_s2 + $0x6b4] ss:$8 sps:$4 sm:$0xff]  }
 0x427   :  { %v5284_v63 = vpop.f32.mrf.mxu1  ;;  %v5245_v42 = vpop.f32.mrf.mxu0  ;;  %7498 = vmatprep.subr.bf16.mxu1 %v9968_v2  ;;  %v10020_v4 = vld [vmem:[%s14970_s2 + $0x7d0] ss:$8 sps:$4 sm:$0xff]   ;;  %v10023_v2 = vld [vmem:[%s14970_s2 + $0x6c0] ss:$8 sps:$4 sm:$0xff]   ;;  %v10034_v47 = vld [vmem:[%s14970_s2 + $0x7b4] ss:$8 sps:$4 sm:$0xff]  }
 0x428   :  { %v14319_v43 = vadd.f32 %v5284_v63, %v5244_v45  ;;  %7458 = vmatpush1.bf16.msra.mxu0 %v9963_v20  ;;  %v10026_v20 = vld [vmem:[%s14970_s2 + $0x7c0] ss:$8 sps:$4 sm:$0xff]   ;;  %v10029_v22 = vld [vmem:[%s14970_s2 + $0x6b0] ss:$8 sps:$4 sm:$0xff]   ;;  %v10043_v42 = vld [vmem:[%s14970_s2 + $0x694] ss:$8 sps:$4 sm:$0xff]  }
 0x429   :  { %v5286_v50 = vpop.f32.mrf.mxu1  ;;  %v5246_v17 = vpop.f32.mrf.mxu0  ;;  %7459 = vmatprep.subr.bf16.mxu0 %v9971_v10  ;;  %v10037_v10 = vld [vmem:[%s14970_s2 + $0x6a4] ss:$8 sps:$4 sm:$0xff]   ;;  %v10032_v45 = vld [vmem:[%s14970_s2 + $0x7b0] ss:$8 sps:$4 sm:$0xff]   ;;  %v10035_v63 = vld [vmem:[%s14970_s2 + $0x6a0] ss:$8 sps:$4 sm:$0xff]  }
 0x42a   :  { %7499 = vmatpush1.bf16.msra.mxu1 %v9966_v53  ;;  %v10040_v53 = vld [vmem:[%s14970_s2 + $0x7a4] ss:$8 sps:$4 sm:$0xff]   ;;  %v10041_v50 = vld [vmem:[%s14970_s2 + $0x690] ss:$8 sps:$4 sm:$0xff]  }
 0x42b   :  { %v5287_v61 = vpop.f32.mrf.mxu1  ;;  %7500 = vmatprep.subr.bf16.mxu1 %v9974_v15  ;;  %v10038_v15 = vld [vmem:[%s14970_s2 + $0x7a0] ss:$8 sps:$4 sm:$0xff]   ;;  %v10049_v17 = vld [vmem:[%s14970_s2 + $0x684] ss:$8 sps:$4 sm:$0xff]  }
 0x42c   :  { %7460 = vmatpush1.bf16.msra.mxu0 %v9969_v23  ;;  %v10046_v23 = vld [vmem:[%s14970_s2 + $0x794] ss:$8 sps:$4 sm:$0xff]   ;;  %v10047_v61 = vld [vmem:[%s14970_s2 + $0x680] ss:$8 sps:$4 sm:$0xff]  }
 0x42d   :  { %7461 = vmatprep.subr.bf16.mxu0 %v9977_v8  ;;  %v10044_v8 = vld [vmem:[%s14970_s2 + $0x790] ss:$8 sps:$4 sm:$0xff]  }
 0x42e   :  { %7501 = vmatpush1.bf16.msra.mxu1 %v9972_v30  ;;  %v10052_v30 = vld [vmem:[%s14970_s2 + $0x784] ss:$8 sps:$4 sm:$0xff]  }
 0x42f   :  { %7502 = vmatprep.subr.bf16.mxu1 %v9980_v51  ;;  %v10055_v51 = vld [vmem:[%s14970_s2 + $0x874] ss:$8 sps:$4 sm:$0xff]  }
 0x430   :  { %7462 = vmatpush1.bf16.msra.mxu0 %v9975_v35  ;;  %v10050_v35 = vld [vmem:[%s14970_s2 + $0x780] ss:$8 sps:$4 sm:$0xff]  }
 0x431   :  { %7463 = vmatprep.subr.bf16.mxu0 %v9983_v52  ;;  %v10058_v52 = vld [vmem:[%s14970_s2 + $0x974] ss:$8 sps:$4 sm:$0xff]  }
 0x432   :  { %7503 = vmatpush1.bf16.msra.mxu1 %v9978_v55  ;;  %v10053_v55 = vld [vmem:[%s14970_s2 + $0x870] ss:$8 sps:$4 sm:$0xff]  }
 0x433   :  { %7504 = vmatprep.subr.bf16.mxu1 %v9986_v7  ;;  %v10061_v7 = vld [vmem:[%s14970_s2 + $0x864] ss:$8 sps:$4 sm:$0xff]  }
 0x434   :  { %7464 = vmatpush1.bf16.msra.mxu0 %v9981_v60  ;;  %v10056_v60 = vld [vmem:[%s14970_s2 + $0x970] ss:$8 sps:$4 sm:$0xff]  }
 0x435   :  { %7465 = vmatprep.subr.bf16.mxu0 %v9989_v39 }
 0x436   :  { %7505 = vmatpush1.bf16.msra.mxu1 %v9984_v12  ;;  %v10064_v12 = vld [vmem:[%s14970_s2 + $0x964] ss:$8 sps:$4 sm:$0xff]  }
 0x437   :  { %7506 = vmatprep.subr.bf16.mxu1 %v9992_v21  ;;  %v10059_v21 = vld [vmem:[%s14970_s2 + $0x860] ss:$8 sps:$4 sm:$0xff]  }
 0x438   :  { %7466 = vmatpush1.bf16.msra.mxu0 %v9987_v36 }
 0x439   :  { %7467 = vmatprep.subr.bf16.mxu0 %v9995_v58 }
 0x43a   :  { %7507 = vmatpush1.bf16.msra.mxu1 %v9990_v1 }
 0x43b   :  { %7508 = vmatprep.subr.bf16.mxu1 %v9998_v40  ;;  %v10062_v40 = vld [vmem:[%s14970_s2 + $0x960] ss:$8 sps:$4 sm:$0xff]  }
 0x43c   :  { %7468 = vmatpush1.bf16.msra.mxu0 %v9993_v14 }
 0x43d   :  { %7469 = vmatprep.subr.bf16.mxu0 %v10001_v11 }
 0x43e   :  { %7509 = vmatpush1.bf16.msra.mxu1 %v9996_v62  ;;  %v10065_v62 = vld [vmem:[%s14970_s2 + $0x850] ss:$8 sps:$4 sm:$0xff]  }
 0x43f   :  { %7510 = vmatprep.subr.bf16.mxu1 %v10004_v57 }
 0x440   :  { %7470 = vmatpush1.bf16.msra.mxu0 %v9999_v27 }
 0x441   :  { %7471 = vmatprep.subr.bf16.mxu0 %v10007_v28  ;;  %v10068_v28 = vld [vmem:[%s14970_s2 + $0x950] ss:$8 sps:$4 sm:$0xff]  }
 0x442   :  { %7511 = vmatpush1.bf16.msra.mxu1 %v10002_v19 }
 0x443   :  { %7512 = vmatprep.subr.bf16.mxu1 %v10010_v31  ;;  %v10076_v31 = vld [vmem:[%s14970_s2 + $0x944] ss:$8 sps:$4 sm:$0xff]  }
 0x444   :  { %7472 = vmatpush2.bf16.msra.mxu0 %v10005_v32  ;;  %v10071_v32 = vld [vmem:[%s14970_s2 + $0x840] ss:$8 sps:$4 sm:$0xff]  }
 0x445   :  { %7473 = vmatprep.subr.bf16.mxu0 %v10013_v33  ;;  %v10079_v33 = vld [vmem:[%s14970_s2 + $0x834] ss:$8 sps:$4 sm:$0xff]  }
 0x446   :  { %7513 = vmatpush2.bf16.msra.mxu1 %v10008_v37  ;;  %v10074_v37 = vld [vmem:[%s14970_s2 + $0x940] ss:$8 sps:$4 sm:$0xff]  }
 0x447   :  { %7514 = vmatprep.subr.bf16.mxu1 %v10016_v44  ;;  %v10082_v44 = vld [vmem:[%s14970_s2 + $0x934] ss:$8 sps:$4 sm:$0xff]  }
 0x448   :  { %7474 = vmatpush2.bf16.msra.mxu0 %v10011_v18  ;;  %v10077_v18 = vld [vmem:[%s14970_s2 + $0x830] ss:$8 sps:$4 sm:$0xff]  }
 0x449   :  { %7475 = vmatprep.subr.bf16.mxu0 %v10019_v13  ;;  %v10085_v13 = vld [vmem:[%s14970_s2 + $0x824] ss:$8 sps:$4 sm:$0xff]  }
 0x44a   :  { %7515 = vmatpush2.bf16.msra.mxu1 %v10014_v41  ;;  %v10080_v41 = vld [vmem:[%s14970_s2 + $0x930] ss:$8 sps:$4 sm:$0xff]  }
 0x44b   :  { %7516 = vmatprep.subr.bf16.mxu1 %v10022_v16  ;;  %v10088_v16 = vld [vmem:[%s14970_s2 + $0x924] ss:$8 sps:$4 sm:$0xff]  }
 0x44c   :  { %7476 = vmatpush2.bf16.msra.mxu0 %v10017_v49  ;;  %v10083_v49 = vld [vmem:[%s14970_s2 + $0x820] ss:$8 sps:$4 sm:$0xff]  }
 0x44d   :  { %7477 = vmatprep.subr.bf16.mxu0 %v10025_v3  ;;  %v10091_v3 = vld [vmem:[%s14970_s2 + $0x814] ss:$8 sps:$4 sm:$0xff]  }
 0x44e   :  { %7517 = vmatpush2.bf16.msra.mxu1 %v10020_v4  ;;  %v10086_v4 = vld [vmem:[%s14970_s2 + $0x920] ss:$8 sps:$4 sm:$0xff]  }
 0x44f   :  { %7518 = vmatprep.subr.bf16.mxu1 %v10028_v48  ;;  %v10094_v48 = vld [vmem:[%s14970_s2 + $0x914] ss:$8 sps:$4 sm:$0xff]  }
 0x450   :  { %7478 = vmatpush2.bf16.msra.mxu0 %v10023_v2  ;;  %v10089_v2 = vld [vmem:[%s14970_s2 + $0x810] ss:$8 sps:$4 sm:$0xff]  }
 0x451   :  { %7479 = vmatprep.subr.bf16.mxu0 %v10031_v24  ;;  %v10097_v24 = vld [vmem:[%s14970_s2 + $0x804] ss:$8 sps:$4 sm:$0xff]  }
 0x452   :  { %7519 = vmatpush2.bf16.msra.mxu1 %v10026_v20  ;;  %v10092_v20 = vld [vmem:[%s14970_s2 + $0x910] ss:$8 sps:$4 sm:$0xff]  }
 0x453   :  { %7520 = vmatprep.subr.bf16.mxu1 %v10034_v47  ;;  %v10100_v47 = vld [vmem:[%s14970_s2 + $0x904] ss:$8 sps:$4 sm:$0xff]  }
 0x454   :  { %7480 = vmatpush2.bf16.msra.mxu0 %v10029_v22  ;;  %v10095_v22 = vld [vmem:[%s14970_s2 + $0x800] ss:$8 sps:$4 sm:$0xff]  }
 0x455   :  { %7481 = vmatprep.subr.bf16.mxu0 %v10037_v10  ;;  %v10103_v10 = vld [vmem:[%s14970_s2 + $0x8f4] ss:$8 sps:$4 sm:$0xff]  }
 0x456   :  { %7521 = vmatpush2.bf16.msra.mxu1 %v10032_v45  ;;  %v10098_v45 = vld [vmem:[%s14970_s2 + $0x900] ss:$8 sps:$4 sm:$0xff]  }
 0x457   :  { %7522 = vmatprep.subr.bf16.mxu1 %v10040_v53  ;;  %v10106_v53 = vld [vmem:[%s14970_s2 + $0x9f4] ss:$8 sps:$4 sm:$0xff]  }
 0x458   :  { %7482 = vmatpush2.bf16.msra.mxu0 %v10035_v63  ;;  %v10101_v63 = vld [vmem:[%s14970_s2 + $0x8f0] ss:$8 sps:$4 sm:$0xff]  }
 0x459   :  { %7483 = vmatprep.subr.bf16.mxu0 %v10043_v42  ;;  %v10109_v42 = vld [vmem:[%s14970_s2 + $0x8e4] ss:$8 sps:$4 sm:$0xff]  }
 0x45a   :  { %7523 = vmatpush2.bf16.msra.mxu1 %v10038_v15  ;;  %v10104_v15 = vld [vmem:[%s14970_s2 + $0x9f0] ss:$8 sps:$4 sm:$0xff]  }
 0x45b   :  { %7524 = vmatprep.subr.bf16.mxu1 %v10046_v23  ;;  %v10112_v23 = vld [vmem:[%s14970_s2 + $0x9e4] ss:$8 sps:$4 sm:$0xff]  }
 0x45c   :  { %7484 = vmatpush2.bf16.msra.mxu0 %v10041_v50  ;;  %v10107_v50 = vld [vmem:[%s14970_s2 + $0x8e0] ss:$8 sps:$4 sm:$0xff]  }
 0x45d   :  { %7485 = vmatprep.subr.bf16.mxu0 %v10049_v17  ;;  %v10115_v17 = vld [vmem:[%s14970_s2 + $0x8d4] ss:$8 sps:$4 sm:$0xff]  }
 0x45e   :  { %7525 = vmatpush2.bf16.msra.mxu1 %v10044_v8  ;;  %v10110_v8 = vld [vmem:[%s14970_s2 + $0x9e0] ss:$8 sps:$4 sm:$0xff]  }
 0x45f   :  { %7526 = vmatprep.subr.bf16.mxu1 %v10052_v30  ;;  %v10118_v30 = vld [vmem:[%s14970_s2 + $0x9d4] ss:$8 sps:$4 sm:$0xff]  }
 0x460   :  { %7486 = vmatpush2.bf16.msra.mxu0 %v10047_v61  ;;  %v10113_v61 = vld [vmem:[%s14970_s2 + $0x8d0] ss:$8 sps:$4 sm:$0xff]  }
 0x461   :  { %7537 = vmatprep.subr.bf16.mxu0 %v10055_v51  ;;  %v10121_v51 = vld [vmem:[%s14970_s2 + $0x8c4] ss:$8 sps:$4 sm:$0xff]  }
 0x462   :  { %7527 = vmatpush2.bf16.msra.mxu1 %v10050_v35  ;;  %v10116_v35 = vld [vmem:[%s14970_s2 + $0x9d0] ss:$8 sps:$4 sm:$0xff]  }
 0x463   :  { %v7243_v39 = vpop.f32.mrf.mxu0  ;;  %7488 = vmatmul.mubr.bf16.vlgmr.msra.gmra.mxu0 %v11676_v54  ;;  %7578 = vmatprep.subr.bf16.mxu1 %v10058_v52  ;;  %v10067_v54 = vld [vmem:[%s14970_s2 + $0x854] ss:$8 sps:$4 sm:$0xff]   ;;  %v10124_v52 = vld [vmem:[%s14970_s2 + $0x9c4] ss:$8 sps:$4 sm:$0xff]  }
 0x464   :  { %7538 = vmatpush1.bf16.msra.mxu0 %v10053_v55  ;;  %7569 = vmatprep.mubr.bf16.mxu0 %v11900_v56  ;;  %v10119_v55 = vld [vmem:[%s14970_s2 + $0x8c0] ss:$8 sps:$4 sm:$0xff]  }
 0x465   :  { %v7284_v36 = vpop.f32.mrf.mxu1  ;;  %7529 = vmatmul.mubr.bf16.vlgmr.msra.gmra.mxu1 %v11688_v0  ;;  %v7245_v58 = vpop.f32.mrf.mxu0  ;;  %7539 = vmatprep.subr.bf16.mxu0 %v10061_v7  ;;  %v10070_v0 = vld [vmem:[%s14970_s2 + $0x954] ss:$8 sps:$4 sm:$0xff]  }
 0x466   :  { %v14510_v1 = vadd.f32 %v7284_v36, %v7243_v39  ;;  %7579 = vmatpush1.bf16.msra.mxu1 %v10056_v60  ;;  %7610 = vmatprep.mubr.bf16.mxu1 %v11904_v26  ;;  %v10073_v26 = vld [vmem:[%s14970_s2 + $0x844] ss:$8 sps:$4 sm:$0xff]   ;;  %v10127_v7 = vld [vmem:[%s14970_s2 + $0x8b4] ss:$8 sps:$4 sm:$0xff]   ;;  %v10122_v60 = vld [vmem:[%s14970_s2 + $0x9c0] ss:$8 sps:$4 sm:$0xff]  }
 0x467   :  { %v7286_v14 = vpop.f32.mrf.mxu1  ;;  %v7247_v56 = vpop.f32.mrf.mxu0  ;;  %7580 = vmatprep.subr.bf16.mxu1 %v10064_v12  ;;  %v10130_v39 = vld [vmem:[%s14970_s2 + $0x9b4] ss:$8 sps:$4 sm:$0xff]   ;;  %v10125_v12 = vld [vmem:[%s14970_s2 + $0x8b0] ss:$8 sps:$4 sm:$0xff]  }
 0x468   :  { %v14519_v11 = vadd.f32 %v7286_v14, %v7245_v58  ;;  %7540 = vmatpush1.bf16.msra.mxu0 %v10059_v21  ;;  %v10133_v21 = vld [vmem:[%s14970_s2 + $0x8a4] ss:$8 sps:$4 sm:$0xff]   ;;  %v10128_v36 = vld [vmem:[%s14970_s2 + $0x9b0] ss:$8 sps:$4 sm:$0xff]   ;;  %v10134_v14 = vld [vmem:[%s14970_s2 + $0x9a0] ss:$8 sps:$4 sm:$0xff]  }
 0x469   :  { %v7288_v57 = vpop.f32.mrf.mxu1  ;;  %v7248_v27 = vpop.f32.mrf.mxu0  ;;  %7541 = vmatprep.subr.bf16.mxu0 %v10067_v54  ;;  %v10136_v58 = vld [vmem:[%s14970_s2 + $0x9a4] ss:$8 sps:$4 sm:$0xff]   ;;  %v10131_v54 = vld [vmem:[%s14970_s2 + $0x8a0] ss:$8 sps:$4 sm:$0xff]   ;;  %v10142_v56 = vld [vmem:[%s14970_s2 + $0x994] ss:$8 sps:$4 sm:$0xff]  }
 0x46a   :  { %7581 = vmatpush1.bf16.msra.mxu1 %v10062_v40  ;;  %v10139_v40 = vld [vmem:[%s14970_s2 + $0x894] ss:$8 sps:$4 sm:$0xff]   ;;  %v10140_v57 = vld [vmem:[%s14970_s2 + $0x990] ss:$8 sps:$4 sm:$0xff]   ;;  %v10148_v27 = vld [vmem:[%s14970_s2 + $0x984] ss:$8 sps:$4 sm:$0xff]  }
 0x46b   :  { %v7289_v19 = vpop.f32.mrf.mxu1  ;;  %7582 = vmatprep.subr.bf16.mxu1 %v10070_v0  ;;  %v10137_v0 = vld [vmem:[%s14970_s2 + $0x890] ss:$8 sps:$4 sm:$0xff]  }
 0x46c   :  { %7542 = vmatpush1.bf16.msra.mxu0 %v10065_v62  ;;  %v10145_v62 = vld [vmem:[%s14970_s2 + $0x884] ss:$8 sps:$4 sm:$0xff]   ;;  %v10146_v19 = vld [vmem:[%s14970_s2 + $0x980] ss:$8 sps:$4 sm:$0xff]  }
 0x46d   :  { %7543 = vmatprep.subr.bf16.mxu0 %v10073_v26  ;;  %v10143_v26 = vld [vmem:[%s14970_s2 + $0x880] ss:$8 sps:$4 sm:$0xff]  }
 0x46e   :  { %7583 = vmatpush1.bf16.msra.mxu1 %v10068_v28  ;;  %v10151_v28 = vld [vmem:[%s14970_s2 + $0xa74] ss:$8 sps:$4 sm:$0xff]  }
 0x46f   :  { %7584 = vmatprep.subr.bf16.mxu1 %v10076_v31  ;;  %v10154_v31 = vld [vmem:[%s14970_s2 + $0xb74] ss:$8 sps:$4 sm:$0xff]  }
 0x470   :  { %7544 = vmatpush1.bf16.msra.mxu0 %v10071_v32  ;;  %v10149_v32 = vld [vmem:[%s14970_s2 + $0xa70] ss:$8 sps:$4 sm:$0xff]  }
 0x471   :  { %7545 = vmatprep.subr.bf16.mxu0 %v10079_v33  ;;  %v10157_v33 = vld [vmem:[%s14970_s2 + $0xa64] ss:$8 sps:$4 sm:$0xff]  }
 0x472   :  { %7585 = vmatpush1.bf16.msra.mxu1 %v10074_v37  ;;  %v10152_v37 = vld [vmem:[%s14970_s2 + $0xb70] ss:$8 sps:$4 sm:$0xff]  }
 0x473   :  { %7586 = vmatprep.subr.bf16.mxu1 %v10082_v44 }
 0x474   :  { %7546 = vmatpush1.bf16.msra.mxu0 %v10077_v18  ;;  %v10160_v18 = vld [vmem:[%s14970_s2 + $0xb64] ss:$8 sps:$4 sm:$0xff]  }
 0x475   :  { %7547 = vmatprep.subr.bf16.mxu0 %v10085_v13 }
 0x476   :  { %7587 = vmatpush1.bf16.msra.mxu1 %v10080_v41  ;;  %v10155_v41 = vld [vmem:[%s14970_s2 + $0xa60] ss:$8 sps:$4 sm:$0xff]  }
 0x477   :  { %7588 = vmatprep.subr.bf16.mxu1 %v10088_v16 }
 0x478   :  { %7548 = vmatpush1.bf16.msra.mxu0 %v10083_v49 }
 0x479   :  { %7549 = vmatprep.subr.bf16.mxu0 %v10091_v3 }
 0x47a   :  { %7589 = vmatpush1.bf16.msra.mxu1 %v10086_v4  ;;  %v10158_v4 = vld [vmem:[%s14970_s2 + $0xb60] ss:$8 sps:$4 sm:$0xff]  }
 0x47b   :  { %7590 = vmatprep.subr.bf16.mxu1 %v10094_v48 }
 0x47c   :  { %7550 = vmatpush1.bf16.msra.mxu0 %v10089_v2 }
 0x47d   :  { %7551 = vmatprep.subr.bf16.mxu0 %v10097_v24 }
 0x47e   :  { %7591 = vmatpush1.bf16.msra.mxu1 %v10092_v20 }
 0x47f   :  { %7592 = vmatprep.subr.bf16.mxu1 %v10100_v47  ;;  %v10164_v47 = vld [vmem:[%s14970_s2 + $0xb50] ss:$8 sps:$4 sm:$0xff]  }
 0x480   :  { %7552 = vmatpush1.bf16.msra.mxu0 %v10095_v22 }
 0x481   :  { %7553 = vmatprep.subr.bf16.mxu0 %v10103_v10  ;;  %v10172_v10 = vld [vmem:[%s14970_s2 + $0xb44] ss:$8 sps:$4 sm:$0xff]  }
 0x482   :  { %7593 = vmatpush1.bf16.msra.mxu1 %v10098_v45  ;;  %v10167_v45 = vld [vmem:[%s14970_s2 + $0xa40] ss:$8 sps:$4 sm:$0xff]  }
 0x483   :  { %7594 = vmatprep.subr.bf16.mxu1 %v10106_v53  ;;  %v10175_v53 = vld [vmem:[%s14970_s2 + $0xa34] ss:$8 sps:$4 sm:$0xff]  }
 0x484   :  { %7554 = vmatpush2.bf16.msra.mxu0 %v10101_v63  ;;  %v10170_v63 = vld [vmem:[%s14970_s2 + $0xb40] ss:$8 sps:$4 sm:$0xff]  }
 0x485   :  { %7555 = vmatprep.subr.bf16.mxu0 %v10109_v42  ;;  %v10178_v42 = vld [vmem:[%s14970_s2 + $0xb34] ss:$8 sps:$4 sm:$0xff]  }
 0x486   :  { %7595 = vmatpush2.bf16.msra.mxu1 %v10104_v15  ;;  %v10173_v15 = vld [vmem:[%s14970_s2 + $0xa30] ss:$8 sps:$4 sm:$0xff]  }
 0x487   :  { %7596 = vmatprep.subr.bf16.mxu1 %v10112_v23  ;;  %v10181_v23 = vld [vmem:[%s14970_s2 + $0xa24] ss:$8 sps:$4 sm:$0xff]  }
 0x488   :  { %7556 = vmatpush2.bf16.msra.mxu0 %v10107_v50  ;;  %v10176_v50 = vld [vmem:[%s14970_s2 + $0xb30] ss:$8 sps:$4 sm:$0xff]  }
 0x489   :  { %7557 = vmatprep.subr.bf16.mxu0 %v10115_v17  ;;  %v10184_v17 = vld [vmem:[%s14970_s2 + $0xb24] ss:$8 sps:$4 sm:$0xff]  }
 0x48a   :  { %7597 = vmatpush2.bf16.msra.mxu1 %v10110_v8  ;;  %v10179_v8 = vld [vmem:[%s14970_s2 + $0xa20] ss:$8 sps:$4 sm:$0xff]  }
 0x48b   :  { %7598 = vmatprep.subr.bf16.mxu1 %v10118_v30  ;;  %v10187_v30 = vld [vmem:[%s14970_s2 + $0xa14] ss:$8 sps:$4 sm:$0xff]  }
 0x48c   :  { %7558 = vmatpush2.bf16.msra.mxu0 %v10113_v61  ;;  %v10182_v61 = vld [vmem:[%s14970_s2 + $0xb20] ss:$8 sps:$4 sm:$0xff]  }
 0x48d   :  { %7559 = vmatprep.subr.bf16.mxu0 %v10121_v51  ;;  %v10190_v51 = vld [vmem:[%s14970_s2 + $0xb14] ss:$8 sps:$4 sm:$0xff]  }
 0x48e   :  { %7599 = vmatpush2.bf16.msra.mxu1 %v10116_v35  ;;  %v10185_v35 = vld [vmem:[%s14970_s2 + $0xa10] ss:$8 sps:$4 sm:$0xff]  }
 0x48f   :  { %7600 = vmatprep.subr.bf16.mxu1 %v10124_v52  ;;  %v10193_v52 = vld [vmem:[%s14970_s2 + $0xa04] ss:$8 sps:$4 sm:$0xff]  }
 0x490   :  { %7560 = vmatpush2.bf16.msra.mxu0 %v10119_v55  ;;  %v10188_v55 = vld [vmem:[%s14970_s2 + $0xb10] ss:$8 sps:$4 sm:$0xff]  }
 0x491   :  { %7561 = vmatprep.subr.bf16.mxu0 %v10127_v7  ;;  %v10196_v7 = vld [vmem:[%s14970_s2 + $0xb04] ss:$8 sps:$4 sm:$0xff]  }
 0x492   :  { %7601 = vmatpush2.bf16.msra.mxu1 %v10122_v60  ;;  %v10191_v60 = vld [vmem:[%s14970_s2 + $0xa00] ss:$8 sps:$4 sm:$0xff]  }
 0x493   :  { %7602 = vmatprep.subr.bf16.mxu1 %v10130_v39  ;;  %v10199_v39 = vld [vmem:[%s14970_s2 + $0xaf4] ss:$8 sps:$4 sm:$0xff]  }
 0x494   :  { %7562 = vmatpush2.bf16.msra.mxu0 %v10125_v12  ;;  %v10194_v12 = vld [vmem:[%s14970_s2 + $0xb00] ss:$8 sps:$4 sm:$0xff]  }
 0x495   :  { %7563 = vmatprep.subr.bf16.mxu0 %v10133_v21  ;;  %v10202_v21 = vld [vmem:[%s14970_s2 + $0xbf4] ss:$8 sps:$4 sm:$0xff]  }
 0x496   :  { %7603 = vmatpush2.bf16.msra.mxu1 %v10128_v36  ;;  %v10197_v36 = vld [vmem:[%s14970_s2 + $0xaf0] ss:$8 sps:$4 sm:$0xff]  }
 0x497   :  { %7604 = vmatprep.subr.bf16.mxu1 %v10136_v58  ;;  %v10205_v58 = vld [vmem:[%s14970_s2 + $0xae4] ss:$8 sps:$4 sm:$0xff]  }
 0x498   :  { %7564 = vmatpush2.bf16.msra.mxu0 %v10131_v54  ;;  %v10200_v54 = vld [vmem:[%s14970_s2 + $0xbf0] ss:$8 sps:$4 sm:$0xff]  }
 0x499   :  { %7565 = vmatprep.subr.bf16.mxu0 %v10139_v40  ;;  %v10208_v40 = vld [vmem:[%s14970_s2 + $0xbe4] ss:$8 sps:$4 sm:$0xff]  }
 0x49a   :  { %7605 = vmatpush2.bf16.msra.mxu1 %v10134_v14  ;;  %v10203_v14 = vld [vmem:[%s14970_s2 + $0xae0] ss:$8 sps:$4 sm:$0xff]  }
 0x49b   :  { %7606 = vmatprep.subr.bf16.mxu1 %v10142_v56  ;;  %v10211_v56 = vld [vmem:[%s14970_s2 + $0xad4] ss:$8 sps:$4 sm:$0xff]  }
 0x49c   :  { %7566 = vmatpush2.bf16.msra.mxu0 %v10137_v0  ;;  %v10206_v0 = vld [vmem:[%s14970_s2 + $0xbe0] ss:$8 sps:$4 sm:$0xff]  }
 0x49d   :  { %7567 = vmatprep.subr.bf16.mxu0 %v10145_v62  ;;  %v10214_v62 = vld [vmem:[%s14970_s2 + $0xbd4] ss:$8 sps:$4 sm:$0xff]  }
 0x49e   :  { %7607 = vmatpush2.bf16.msra.mxu1 %v10140_v57  ;;  %v10209_v57 = vld [vmem:[%s14970_s2 + $0xad0] ss:$8 sps:$4 sm:$0xff]  }
 0x49f   :  { %7608 = vmatprep.subr.bf16.mxu1 %v10148_v27  ;;  %v10217_v27 = vld [vmem:[%s14970_s2 + $0xac4] ss:$8 sps:$4 sm:$0xff]  }
 0x4a0   :  { %7568 = vmatpush2.bf16.msra.mxu0 %v10143_v26  ;;  %v10212_v26 = vld [vmem:[%s14970_s2 + $0xbd0] ss:$8 sps:$4 sm:$0xff]  }
 0x4a1   :  { %7619 = vmatprep.subr.bf16.mxu0 %v10151_v28  ;;  %v10220_v28 = vld [vmem:[%s14970_s2 + $0xbc4] ss:$8 sps:$4 sm:$0xff]  }
 0x4a2   :  { %7609 = vmatpush2.bf16.msra.mxu1 %v10146_v19  ;;  %v10215_v19 = vld [vmem:[%s14970_s2 + $0xac0] ss:$8 sps:$4 sm:$0xff]  }
 0x4a3   :  { %v7325_v44 = vpop.f32.mrf.mxu0  ;;  %7570 = vmatmul.mubr.bf16.vlgmr.msra.gmra.mxu0 %v11898_v46  ;;  %7660 = vmatprep.subr.bf16.mxu1 %v10154_v31  ;;  %v10163_v46 = vld [vmem:[%s14970_s2 + $0xa54] ss:$8 sps:$4 sm:$0xff]  }
 0x4a4   :  { %v7326_v13 = vadd.f32 %v7325_v44, %v14510_v1  ;;  %7620 = vmatpush1.bf16.msra.mxu0 %v10149_v32  ;;  %7651 = vmatprep.mubr.bf16.mxu0 %v12141_v6  ;;  %v10223_v31 = vld [vmem:[%s14970_s2 + $0xab4] ss:$8 sps:$4 sm:$0xff]   ;;  %v10218_v32 = vld [vmem:[%s14970_s2 + $0xbc0] ss:$8 sps:$4 sm:$0xff]   ;;  %v10229_v44 = vld [vmem:[%s14970_s2 + $0xaa4] ss:$8 sps:$4 sm:$0xff]  }
 0x4a5   :  { %v7366_v16 = vpop.f32.mrf.mxu1  ;;  %7611 = vmatmul.mubr.bf16.vlgmr.msra.gmra.mxu1 %v11902_v25  ;;  %v7327_v49 = vpop.f32.mrf.mxu0  ;;  %7621 = vmatprep.subr.bf16.mxu0 %v10157_v33  ;;  %v10166_v25 = vld [vmem:[%s14970_s2 + $0xb54] ss:$8 sps:$4 sm:$0xff]  }
 0x4a6   :  { %v14711_v3 = vadd.f32 %v7366_v16, %v7326_v13  ;;  %7661 = vmatpush1.bf16.msra.mxu1 %v10152_v37  ;;  %v7328_v1 = vadd.f32 %v7327_v49, %v14519_v11  ;;  %7692 = vmatprep.mubr.bf16.mxu1 %v12145_v38  ;;  %v10161_v11 = vld [vmem:[%s14970_s2 + $0xa50] ss:$8 sps:$4 sm:$0xff]   ;;  %v10169_v38 = vld [vmem:[%s14970_s2 + $0xa44] ss:$8 sps:$4 sm:$0xff]   ;;  %v10226_v33 = vld [vmem:[%s14970_s2 + $0xbb4] ss:$8 sps:$4 sm:$0xff]  }
 0x4a7   :  { %v7368_v6 = vpop.f32.mrf.mxu1  ;;  %v7329_v48 = vpop.f32.mrf.mxu0  ;;  %7662 = vmatprep.subr.bf16.mxu1 %v10160_v18  ;;  %v10221_v37 = vld [vmem:[%s14970_s2 + $0xab0] ss:$8 sps:$4 sm:$0xff]   ;;  %v10232_v13 = vld [vmem:[%s14970_s2 + $0xba4] ss:$8 sps:$4 sm:$0xff]   ;;  %v10235_v16 = vld [vmem:[%s14970_s2 + $0xa94] ss:$8 sps:$4 sm:$0xff]  }
 0x4a8   :  { %v14721_v2 = vadd.f32 %v7368_v6, %v7328_v1  ;;  %7622 = vmatpush1.bf16.msra.mxu0 %v10155_v41  ;;  %v10224_v18 = vld [vmem:[%s14970_s2 + $0xbb0] ss:$8 sps:$4 sm:$0xff]   ;;  %v10227_v41 = vld [vmem:[%s14970_s2 + $0xaa0] ss:$8 sps:$4 sm:$0xff]   ;;  %v10244_v48 = vld [vmem:[%s14970_s2 + $0xb84] ss:$8 sps:$4 sm:$0xff]  }
 0x4a9   :  { %v7370_v24 = vpop.f32.mrf.mxu1  ;;  %v7330_v20 = vpop.f32.mrf.mxu0  ;;  %7623 = vmatprep.subr.bf16.mxu0 %v10163_v46  ;;  %v10230_v49 = vld [vmem:[%s14970_s2 + $0xba0] ss:$8 sps:$4 sm:$0xff]   ;;  %v10238_v46 = vld [vmem:[%s14970_s2 + $0xb94] ss:$8 sps:$4 sm:$0xff]   ;;  %v10233_v1 = vld [vmem:[%s14970_s2 + $0xa90] ss:$8 sps:$4 sm:$0xff]  }
 0x4aa   :  { %7663 = vmatpush1.bf16.msra.mxu1 %v10158_v4  ;;  %v10241_v4 = vld [vmem:[%s14970_s2 + $0xa84] ss:$8 sps:$4 sm:$0xff]   ;;  %v10236_v6 = vld [vmem:[%s14970_s2 + $0xb90] ss:$8 sps:$4 sm:$0xff]  }
 0x4ab   :  { %v7371_v22 = vpop.f32.mrf.mxu1  ;;  %7664 = vmatprep.subr.bf16.mxu1 %v10166_v25  ;;  %v10239_v25 = vld [vmem:[%s14970_s2 + $0xa80] ss:$8 sps:$4 sm:$0xff]  }
 0x4ac   :  { %7624 = vmatpush1.bf16.msra.mxu0 %v10161_v11  ;;  %v10242_v11 = vld [vmem:[%s14970_s2 + $0xb80] ss:$8 sps:$4 sm:$0xff]  }
 0x4ad   :  { %7625 = vmatprep.subr.bf16.mxu0 %v10169_v38 }
 0x4ae   :  { %7665 = vmatpush1.bf16.msra.mxu1 %v10164_v47 }
 0x4af   :  { %7666 = vmatprep.subr.bf16.mxu1 %v10172_v10 }
 0x4b0   :  { %7626 = vmatpush1.bf16.msra.mxu0 %v10167_v45 }
 0x4b1   :  { %7627 = vmatprep.subr.bf16.mxu0 %v10175_v53 }
 0x4b2   :  { %7667 = vmatpush1.bf16.msra.mxu1 %v10170_v63 }
 0x4b3   :  { %7668 = vmatprep.subr.bf16.mxu1 %v10178_v42 }
 0x4b4   :  { %7628 = vmatpush1.bf16.msra.mxu0 %v10173_v15 }
 0x4b5   :  { %7629 = vmatprep.subr.bf16.mxu0 %v10181_v23 }
 0x4b6   :  { %7669 = vmatpush1.bf16.msra.mxu1 %v10176_v50 }
 0x4b7   :  { %7670 = vmatprep.subr.bf16.mxu1 %v10184_v17 }
 0x4b8   :  { %7630 = vmatpush1.bf16.msra.mxu0 %v10179_v8 }
 0x4b9   :  { %7631 = vmatprep.subr.bf16.mxu0 %v10187_v30 }
 0x4ba   :  { %7671 = vmatpush1.bf16.msra.mxu1 %v10182_v61 }
 0x4bb   :  { %7672 = vmatprep.subr.bf16.mxu1 %v10190_v51 }
 0x4bc   :  { %7632 = vmatpush1.bf16.msra.mxu0 %v10185_v35 }
 0x4bd   :  { %7633 = vmatprep.subr.bf16.mxu0 %v10193_v52 }
 0x4be   :  { %7673 = vmatpush1.bf16.msra.mxu1 %v10188_v55 }
 0x4bf   :  { %7674 = vmatprep.subr.bf16.mxu1 %v10196_v7 }
 0x4c0   :  { %7634 = vmatpush1.bf16.msra.mxu0 %v10191_v60 }
 0x4c1   :  { %7635 = vmatprep.subr.bf16.mxu0 %v10199_v39 }
 0x4c2   :  { %7675 = vmatpush1.bf16.msra.mxu1 %v10194_v12 }
 0x4c3   :  { %7676 = vmatprep.subr.bf16.mxu1 %v10202_v21 }
 0x4c4   :  { %7636 = vmatpush2.bf16.msra.mxu0 %v10197_v36 }
 0x4c5   :  { %7637 = vmatprep.subr.bf16.mxu0 %v10205_v58 }
 0x4c6   :  { %7677 = vmatpush2.bf16.msra.mxu1 %v10200_v54 }
 0x4c7   :  { %7678 = vmatprep.subr.bf16.mxu1 %v10208_v40 }
 0x4c8   :  { %7638 = vmatpush2.bf16.msra.mxu0 %v10203_v14 }
 0x4c9   :  { %7639 = vmatprep.subr.bf16.mxu0 %v10211_v56  ;;  %v7707_v56 = vsub.s32 0, %v10854_v34 }
 0x4ca   :  { %7679 = vmatpush2.bf16.msra.mxu1 %v10206_v0 }
 0x4cb   :  { %7680 = vmatprep.subr.bf16.mxu1 %v10214_v62  ;;  %v7703_v62 = vld [vmem:[%s14971_s3] sm:$0x3]  ;;  %s10691_s3 = smov 80  }
 0x4cc   :  { %7640 = vmatpush2.bf16.msra.mxu0 %v10209_v57 }
 0x4cd   :  { %7641 = vmatprep.subr.bf16.mxu0 %v10217_v27 }
 0x4ce   :  { %7681 = vmatpush2.bf16.msra.mxu1 %v10212_v26  ;;  %v7711_v26 = vsub.s32 1, %v10854_v34 }
 0x4cf   :  { %7682 = vmatprep.subr.bf16.mxu1 %v10220_v28 }
 0x4d0   :  { %7642 = vmatpush2.bf16.msra.mxu0 %v10215_v19 }
 0x4d1   :  { %7643 = vmatprep.subr.bf16.mxu0 %v10223_v31 }
 0x4d2   :  { %7683 = vmatpush2.bf16.msra.mxu1 %v10218_v32  ;;  %v7708_v32 = vrot.slane %v7703_v62, %v7707_v56 }
 0x4d3   :  { %7684 = vmatprep.subr.bf16.mxu1 %v10226_v33 }
 0x4d4   :  { %7644 = vmatpush2.bf16.msra.mxu0 %v10221_v37 }
 0x4d5   :  { %7645 = vmatprep.subr.bf16.mxu0 %v10229_v44 }
 0x4d6   :  { %7685 = vmatpush2.bf16.msra.mxu1 %v10224_v18 }
 0x4d7   :  { %7686 = vmatprep.subr.bf16.mxu1 %v10232_v13 }
 0x4d8   :  { %7646 = vmatpush2.bf16.msra.mxu0 %v10227_v41  ;;  %v7712_v41 = vrot.slane %v7703_v62, %v7711_v26 }
 0x4d9   :  { %7647 = vmatprep.subr.bf16.mxu0 %v10235_v16 }
 0x4da   :  { %7687 = vmatpush2.bf16.msra.mxu1 %v10230_v49 }
 0x4db   :  { %7688 = vmatprep.subr.bf16.mxu1 %v10238_v46 }
 0x4dc   :  { %7648 = vmatpush2.bf16.msra.mxu0 %v10233_v1 }
 0x4dd   :  { %7649 = vmatprep.subr.bf16.mxu0 %v10241_v4 }
 0x4de   :  { %7689 = vmatpush2.bf16.msra.mxu1 %v10236_v6 }
 0x4df   :  { %7690 = vmatprep.subr.bf16.mxu1 %v10244_v48 }
 0x4e0   :  { %7650 = vmatpush2.bf16.msra.mxu0 %v10239_v25 }
 0x4e2   :  { %7691 = vmatpush2.bf16.msra.mxu1 %v10242_v11 }
 0x4e3   :  { %v7407_v24 = vpop.f32.mrf.mxu0  ;;  %7652 = vmatmul.mubr.bf16.vlgmr.msra.gmra.mxu0 %v12139_v5 }
 0x4e4   :  { %v7408_v20 = vadd.f32 %v7407_v24, %v14711_v3 }
 0x4e5   :  { %v7448_v38 = vpop.f32.mrf.mxu1  ;;  %7693 = vmatmul.mubr.bf16.vlgmr.msra.gmra.mxu1 %v12143_v9  ;;  %v7409_v47 = vpop.f32.mrf.mxu0 }
 0x4e6   :  { %v7449_v22 = vadd.f32 %v7448_v38, %v7408_v20  ;;  %v7410_v10 = vadd.f32 %v7409_v47, %v14721_v2 }
 0x4e7   :  { %v7450_v45 = vpop.f32.mrf.mxu1  ;;  %v7411_v53 = vpop.f32.mrf.mxu0 }
 0x4e8   :  { %v7451_v63 = vadd.f32 %v7450_v45, %v7410_v10 }
 0x4e9   :  { %v7452_v42 = vpop.f32.mrf.mxu1  ;;  %v7412_v15 = vpop.f32.mrf.mxu0 }
 0x4eb   :  { %v7453_v23 = vpop.f32.mrf.mxu1 }
 0x523   :  { %v7489_v50 = vpop.f32.mrf.mxu0 }
 0x524   :  { %v7490_v17 = vadd.f32 %v7489_v50, %v7449_v22 }
 0x525   :  { %v7530_v8 = vpop.f32.mrf.mxu1  ;;  %v7491_v30 = vpop.f32.mrf.mxu0 }
 0x526   :  { %v7531_v5 = vadd.f32 %v7530_v8, %v7490_v17  ;;  %v7492_v61 = vadd.f32 %v7491_v30, %v7451_v63 }
 0x527   :  { %v7532_v3 = vpop.f32.mrf.mxu1  ;;  %v7493_v51 = vpop.f32.mrf.mxu0 }
 0x528   :  { %v7533_v35 = vadd.f32 %v7532_v3, %v7492_v61 }
 0x529   :  { %v7534_v9 = vpop.f32.mrf.mxu1  ;;  %v7494_v52 = vpop.f32.mrf.mxu0 }
 0x52b   :  { %v7535_v55 = vpop.f32.mrf.mxu1 }
 0x563   :  { %v7571_v7 = vpop.f32.mrf.mxu0 }
 0x564   :  { %v7572_v54 = vadd.f32 %v7571_v7, %v7531_v5 }
 0x565   :  { %v7612_v2 = vpop.f32.mrf.mxu1  ;;  %v7573_v60 = vpop.f32.mrf.mxu0 }
 0x566   :  { %v7574_v40 = vadd.f32 %v7573_v60, %v7533_v35  ;;  %v7613_v14 = vadd.f32 %v7612_v2, %v7572_v54 }
 0x567   :  { %v7614_v39 = vpop.f32.mrf.mxu1  ;;  %v7575_v12 = vpop.f32.mrf.mxu0 }
 0x568   :  { %v7615_v57 = vadd.f32 %v7614_v39, %v7574_v40 }
 0x569   :  { %v7616_v21 = vpop.f32.mrf.mxu1  ;;  %v7576_v36 = vpop.f32.mrf.mxu0 }
 0x56b   :  { %v7617_v58 = vpop.f32.mrf.mxu1 }
 0x5a3   :  { %v7653_v0 = vpop.f32.mrf.mxu0 }
 0x5a4   :  { %v7654_v27 = vadd.f32 %v7653_v0, %v7613_v14 }
 0x5a5   :  { %v7694_v28 = vpop.f32.mrf.mxu1  ;;  %v7655_v19 = vpop.f32.mrf.mxu0 }
 0x5a6   :  { %v7695_v31 = vadd.f32 %v7694_v28, %v7654_v27  ;;  %v7656_v33 = vadd.f32 %v7655_v19, %v7615_v57 }
 0x5a7   :  { %v7696_v37 = vpop.f32.mrf.mxu1  ;;  %v7657_v44 = vpop.f32.mrf.mxu0 }
 0x5a8   :  { %v7701_v18 = vadd.f32 %v7695_v31, %v14309_v59  ;;  %v7697_v13 = vadd.f32 %v7696_v37, %v7656_v33 }
 0x5a9   :  { %v7698_v16 = vpop.f32.mrf.mxu1  ;;  %v7658_v49 = vpop.f32.mrf.mxu0 }
 0x5aa   :  { %v14895_v46 = vadd.f32 %v7708_v32, %v7701_v18  ;;  %v7702_v1 = vadd.f32 %v7697_v13, %v14319_v43 }
 0x5ab   :  { %v7699_v4 = vpop.f32.mrf.mxu1 }
 0x5ac   :  { %v7732_v34 = vmul.f32 %v14895_v46, %v14895_v46  ;;  %v7716_v6 = vadd.f32 %v7712_v41, %v7702_v1 }
 0x5ae   :  { %7734 = vrot.lane.b32.xlu0 %v7732_v34, %s10691_s3  ;;  %v7719_v59 = vcombine.low %v14895_v46, %v7716_v6 }
 0x5b0   :  { %v7726_v48 = vrot.slane %v7719_v59, %v11161_v29 }
 0x5b2   :  { %7738 = vrot.lane.b32.xlu0 %v7732_v34, %s10692_s26  ;;  %7731 = vst.msk [vmem:[#allocation2] sm:$0xf] %vm7730_vm2, %v7726_v48 }
 0x5b6   :  { %7754 = vrot.lane.b32.xlu0 %v14895_v46, %s10693_s27 }
 0x620   :  { %v7735_v43 = vpop.permute.xlu0 %7734 }
 0x621   :  { %v7737_v25 = vadd.f32 %v7735_v43, %v7732_v34 }
 0x624   :  { %v7739_v11 = vpop.permute.xlu0 %7738 }
 0x625   :  { %v7741_v24 = vadd.f32 %v7739_v11, %v7737_v25 }
 0x627   :  { %v7742_v20 = vmax.f32 %v7741_v24, 1e-24 }
 0x628   :  { %v7755_v10 = vpop.permute.xlu0 %7754 }
 0x629   :  { %10245 = vrsqrt.f32 %v7742_v20 }
 0x636   :  { %v10246_v38 = vpop.eup %10245 }
 0x637   :  { %7746 = vrot.lane.b32.xlu1 %v10246_v38, %s10694_s28  ;;  %v14923_v50 = vmul.f32 %v10246_v38, %v14895_v46 }
 0x639   :  { %v7757_v8 = vmul.f32 %v7755_v10, %v14923_v50 }
 0x63b   :  { %7750 = vrot.lane.b32.xlu1 %v10246_v38, %s10695_s4 }
 0x63f   :  { %7764 = vrot.lane.b32.xlu1 %v7716_v6, %s10693_s27 }
 0x6a9   :  { %v7747_v47 = vpop.permute.xlu1 %7746 }
 0x6aa   :  { %v14909_v22 = vmul.f32 %v7747_v47, %v14895_v46 }
 0x6ac   :  { %v7758_v45 = vmul.f32 %v7755_v10, %v14909_v22 }
 0x6ad   :  { %v7751_v53 = vpop.permute.xlu1 %7750 }
 0x6ae   :  { %7760 = vrot.lane.b32.xlu0 %v7758_v45, %s10691_s3  ;;  %v14914_v63 = vmul.f32 %v7751_v53, %v14895_v46 }
 0x6b1   :  { %v7765_v42 = vpop.permute.xlu1 %7764 }
 0x6b2   :  { %v7767_v15 = vsel %vm7766_vm3, %v7755_v10, %v7765_v42  ;;  %7782 = vrot.lane.b32.xlu0 %v14909_v22, %s10691_s3 }
 0x6b3   :  { %v7769_v23 = vmul.f32 %v7767_v15, %v14914_v63 }
 0x6b5   :  { %7771 = vrot.lane.b32.xlu1 %v7769_v23, %s10692_s26 }
 0x6b9   :  { %7792 = vrot.lane.b32.xlu1 %v14914_v63, %s10692_s26 }
 0x720   :  { %v7761_v17 = vpop.permute.xlu0 %7760 }
 0x721   :  { %v7763_v30 = vadd.f32 %v7761_v17, %v7757_v8 }
 0x724   :  { %v7783_v3 = vpop.permute.xlu0 %7782 }
 0x727   :  { %v7772_v5 = vpop.permute.xlu1 %7771 }
 0x728   :  { %v7774_v61 = vadd.f32 %v7772_v5, %v7763_v30 }
 0x72a   :  { %v7785_v51 = vmul.f32 %v7783_v3, %v7774_v61  ;;  %v7775_v52 = vmul.f32 %v7774_v61, %v14923_v50 }
 0x72b   :  { %v7793_v35 = vpop.permute.xlu1 %7792 }
 0x72c   :  { %v7795_v9 = vmul.f32 %v7793_v35, %v7774_v61  ;;  %7787 = vrot.lane.b32.xlu0 %v7785_v51, %s10696_s29 }
 0x72e   :  { %7797 = vrot.lane.b32.xlu1 %v7795_v9, %s10697_s30 }
 0x730   :  { %7777 = vrot.lane.b32.xlu0 %v7775_v52, %s10698_s10 }
 0x79e   :  { %v7788_v55 = vpop.permute.xlu0 %7787 }
 0x79f   :  { %v7790_v7 = vsub.f32 %v14895_v46, %v7788_v55 }
 0x7a0   :  { %v7798_v2 = vpop.permute.xlu1 %7797 }
 0x7a1   :  { %v7803_v60 = vmul.f32 %v7790_v7, %v7790_v7  ;;  %v7800_v39 = vsub.f32 %v14895_v46, %v7798_v2  ;;  %v7801_v12 = vsub.f32 %v7716_v6, %v7798_v2 }
 0x7a2   :  { %v7778_v58 = vpop.permute.xlu0 %7777 }
 0x7a3   :  { %v7809_v21 = vmul.f32 %v7800_v39, %v7800_v39  ;;  %7805 = vrot.lane.b32.xlu1 %v7803_v60, %s10691_s3  ;;  %v7810_v36 = vmul.f32 %v7801_v12, %v7801_v12  ;;  %v7780_v54 = vsub.f32 %v14895_v46, %v7778_v58 }
 0x7a5   :  { %7813 = vrot.lane.b32.xlu0 %v7809_v21, %s10692_s26  ;;  %v7802_v14 = vmul.f32 %v7780_v54, %v7780_v54 }
 0x7a7   :  { %7815 = vrot.lane.b32.xlu1 %v7810_v36, %s10692_s26 }
 0x815   :  { %v7806_v40 = vpop.permute.xlu1 %7805 }
 0x816   :  { %v7808_v56 = vadd.f32 %v7806_v40, %v7802_v14 }
 0x817   :  { %v7814_v0 = vpop.permute.xlu0 %7813 }
 0x819   :  { %v7816_v62 = vpop.permute.xlu1 %7815 }
 0x81a   :  { %v7818_v57 = vsel %vm7817_vm4, %v7814_v0, %v7816_v62 }
 0x81b   :  { %v7820_v27 = vadd.f32 %v7818_v57, %v7808_v56 }
 0x81d   :  { %v7821_v26 = vmax.f32 %v7820_v27, 1e-24 }
 0x81f   :  { %10247 = vrsqrt.f32 %v7821_v26 }
 0x82c   :  { %v10248_v28 = vpop.eup %10247 }
 0x82d   :  { %7825 = vrot.lane.b32.xlu1 %v10248_v28, %s10694_s28  ;;  %7829 = vrot.lane.b32.xlu0 %v10248_v28, %s10695_s4  ;;  %v7823_v44 = vmul.f32 %v10248_v28, %v7780_v54 }
 0x89f   :  { %v7830_v19 = vpop.permute.xlu0 %7829  ;;  %v7826_v33 = vpop.permute.xlu1 %7825 }
 0x8a0   :  { %v7832_v31 = vmul.f32 %v7830_v19, %v7800_v39  ;;  %v7833_v32 = vmul.f32 %v7830_v19, %v7801_v12  ;;  %v7828_v37 = vmul.f32 %v7826_v33, %v7790_v7 }
 0x8a2   :  { %7861 = vrot.lane.b32.xlu1 %v7833_v32, %s10699_s11  ;;  %7859 = vrot.lane.b32.xlu0 %v7832_v31, %s10699_s11 }
 0x8a6   :  { %7845 = vrot.lane.b32.xlu1 %v7828_v37, %s10698_s10  ;;  %7876 = vrot.lane.b32.xlu0 %v7823_v44, %s10698_s10 }
 0x8aa   :  { %7855 = vrot.lane.b32.xlu0 %v7823_v44, %s10696_s29 }
 0x8ae   :  { %7872 = vrot.lane.b32.xlu0 %v7828_v37, %s10700_s6 }
 0x8b2   :  { %7836 = vrot.lane.b32.xlu0 %v7832_v31, %s10700_s6 }
 0x914   :  { %v7862_v18 = vpop.permute.xlu1 %7861  ;;  %v7860_v13 = vpop.permute.xlu0 %7859 }
 0x915   :  { %v7864_v41 = vsel %vm7863_vm5, %v7860_v13, %v7862_v18 }
 0x916   :  { %v7866_v16 = vmul.f32 %v7864_v41, %v14923_v50 }
 0x918   :  { %v7846_v49 = vpop.permute.xlu1 %7845  ;;  %7868 = vrot.lane.b32.xlu1 %v7866_v16, %s10695_s4  ;;  %v7877_v46 = vpop.permute.xlu0 %7876 }
 0x919   :  { %v7848_v1 = vmul.f32 %v7846_v49, %v14914_v63  ;;  %v7879_v4 = vmul.f32 %v7877_v46, %v14909_v22 }
 0x91b   :  { %7850 = vrot.lane.b32.xlu0 %v7848_v1, %s10691_s3 }
 0x91c   :  { %7881 = vrot.lane.b32.xlu1 %v7879_v4, %s10691_s3  ;;  %v7856_v34 = vpop.permute.xlu0 %7855 }
 0x91d   :  { %v7858_v6 = vmul.f32 %v7856_v34, %v14914_v63 }
 0x91f   :  { %7895 = vrot.lane.b32.xlu0 %v7832_v31, %s10694_s28 }
 0x920   :  { %7838 = vrot.lane.b32.xlu1 %v7833_v32, %s10700_s6  ;;  %v7873_v59 = vpop.permute.xlu0 %7872 }
 0x921   :  { %v7875_v25 = vmul.f32 %v7873_v59, %v14923_v50 }
 0x924   :  { %7885 = vrot.lane.b32.xlu1 %v14909_v22, %s10698_s10 }
 0x928   :  { %7892 = vrot.lane.b32.xlu1 %v14914_v63, %s10694_s28 }
 0x92c   :  { %7897 = vrot.lane.b32.xlu1 %v7833_v32, %s10694_s28 }
 0x98a   :  { %v7869_v48 = vpop.permute.xlu1 %7868 }
 0x98b   :  { %v7871_v43 = vsub.f32 %v7858_v6, %v7869_v48 }
 0x98d   :  { %7889 = vrot.lane.b32.xlu0 %v7871_v43, %s10698_s10 }
 0x98e   :  { %10636 = shalt.err (!%p10633_p4)
}
 0x98f   :  { %7944 = dma.vmem_to_hbm [thread:$0]  %s7942_s13, 64, %s14975_s7, [#allocation3]   ;;  %v7882_v11 = vpop.permute.xlu1 %7881  ;;  %vm7840_vm6 = vcmask 457728   ;;  %v7837_v38 = vpop.permute.xlu0 %7836  ;;  %vm7906_vm7 = vcmask 195584   ;;  %vm7899_vm8 = vcmask 392192   ;;  %vm7909_vm9 = vcmask 588800  }
 0x990   :  { %v7884_v24 = vsub.f32 %v7875_v25, %v7882_v11  ;;  %s10702_s17 = smov 64   ;;  %v7907_v23 = vsel %vm7906_vm7, %v14923_v50, %v7823_v44  ;;  %vm7915_vm10 = vcmask 130048   ;;  %vm7911_vm11 = vcmask 785408   ;;  %s10703_s7 = smov [#allocation4]  }
 0x991   :  { %vm7917_vm12 = vcmask 326656   ;;  %vm7913_vm13 = vcmask 982016   ;;  %vm7919_vm14 = vcmask 523264   ;;  %vm7932_vm15 = vcmask 715778   ;;  %s7951_s1 = sshll.u32 %s10703_s7, 4  ;;  %s10704_s18 = smov [#allocation6]   ;;  %s7952_s1 = int_to_ptr.vmem [resolvable:$true] %s7951_s1 }
 0x992   :  { %7903 = vrot.lane.b32.xlu0 %v7884_v24, %s10702_s17  ;;  %s7961_s19 = sshll.u32 %s10704_s18, 4  ;;  %vm7933_vm1 = vmor %vm7932_vm15, %vm7728_vm0  ;;  %s10645_s20 = scalar_lea.vmem %s7952_s1, 64  ;;  %s7962_s19 = int_to_ptr.vmem [resolvable:$true] %s7961_s19 }
 0x993   :  { %v7839_v20 = vpop.permute.xlu1 %7838  ;;  %v7851_v45 = vpop.permute.xlu0 %7850  ;;  %p10646_p5 = scmp.ne.s32.totalorder %s7952_s1, %s10645_s20  ;;  %p10650_p6 = scmp.lt.s32.totalorder %s7952_s1, %s7952_s1 }
 0x994   :  { %v7841_v47 = vsel %vm7840_vm6, %v7837_v38, %v7839_v20  ;;  %p10651_p7 = scmp.lt.s32.totalorder %s10645_s20, %s10645_s20 }
 0x995   :  { %v7843_v53 = vmul.f32 %v7841_v47, %v14909_v22 }
 0x996   :  { %p10652_p8 = por %p10651_p7, %p10650_p6 }
 0x997   :  { %v7886_v10 = vpop.permute.xlu1 %7885  ;;  %v7853_v63 = vsub.f32 %v7843_v53, %v7851_v45  ;;  %v7896_v15 = vpop.permute.xlu0 %7895 }
 0x998   :  { %p10653_p9 = pnand %p10652_p8, %p10646_p5 }
 0x999   :  { %v7908_v17 = vsel %vm7899_vm8, %v7907_v23, %v7853_v63 }
 0x99a   :  { %v7910_v5 = vsel %vm7909_vm9, %v7908_v17, %v7886_v10 }
 0x99b   :  { %v7893_v42 = vpop.permute.xlu1 %7892  ;;  %v7912_v22 = vsel %vm7911_vm11, %v7910_v5, %v7846_v49 }
 0x99f   :  { %v7898_v8 = vpop.permute.xlu1 %7897 }
 0x9a0   :  { %v7900_v3 = vsel %vm7899_vm8, %v7896_v15, %v7898_v8 }
 0x9ff   :  { %v7890_v30 = vpop.permute.xlu0 %7889 }
 0xa00   :  { %v7916_v61 = vsel %vm7915_vm10, %v7890_v30, %v7893_v42  ;;  %v7914_v9 = vsel %vm7913_vm13, %v7912_v22, %v7890_v30 }
 0xa01   :  { %v7918_v51 = vsel %vm7917_vm12, %v7916_v61, %v7900_v3 }
 0xa04   :  { %v7904_v35 = vpop.permute.xlu0 %7903 }
 0xa05   :  { %v7920_v52 = vsel %vm7919_vm14, %v7918_v51, %v7904_v35 }
 0xa06   :  { %v7923_v50 = vcombine.low %v7914_v9, %v7920_v52 }
 0xa08   :  { %v7930_v55 = vrot.slane %v7923_v50, %v11161_v29 }
 0xa0a   :  { %7934 = vst.msk [vmem:[#allocation4] sm:$0xf] %vm7933_vm1, %v7930_v55 }
 0xa0b   :  { %10656 = shalt.err (!%p10653_p9)
}
 0xa0c   :  { %7954 = dma.vmem_to_hbm [thread:$0]  %s7952_s1, 64, %s14976_s8, [#allocation5]  }
 0xa0d   :  { %s10665_s23 = scalar_lea.vmem %s7962_s19, 32  ;;  %p10670_p11 = scmp.lt.s32.totalorder %s7962_s19, %s7962_s19 }
 0xa0e   :  { %p10666_p10 = scmp.ne.s32.totalorder %s7962_s19, %s10665_s23  ;;  %p10671_p12 = scmp.lt.s32.totalorder %s10665_s23, %s10665_s23 }
 0xa10   :  { %p10672_p13 = por %p10671_p12, %p10670_p11 }
 0xa12   :  { %p10673_p0 = pnand %p10672_p13, %p10666_p10 }
 0xa14   :  { %10676 = shalt.err (!%p10673_p0)
}
 0xa15   :  { %7964 = dma.vmem_to_hbm [thread:$0]  %s7962_s19, 32, %s14977_s9, [#allocation5]  }
 0xa16   :  { %10685 = dma.done.wait [#allocation3], 64  }
 0xa17   :  { %10686 = vsyncadd [#allocation3], 4294967232 }
 0xa18   :  { %10687 = dma.done.wait [#allocation5], 96  }
 0xa19   :  { %10688 = vsyncadd [#allocation5], 4294967200 }
 0xa1a   :  { %7974 = vsyncpa [#allocation3], 1 }
 0xa1b   :  { %7975 = vsyncpa [#allocation5], 1 }

</bundles_post_ra>
